<compile_context>
chip_gen: v7x
topology: tpu7x:2x2x1
jax: 0.10.0
libtpu: 0.0.40
codegen_flags: <defaults>
</compile_context>

<pallas_src>
import functools

import jax
import jax.numpy as jnp
from jax import lax
from jax.experimental import pallas as pl
from jax.experimental.pallas import tpu as pltpu


def _round_up(x, m):
    return ((x + m - 1) // m) * m


def _cdiv(x, m):
    return (x + m - 1) // m


# ----------------------------------------------------------------------------
# LSTM kernel: grid = (batch_chunks [parallel], time_chunks [arbitrary]).
# (h, c) state persists in VMEM scratch across time chunks.
# ----------------------------------------------------------------------------
def _lstm_kernel(xproj_ref, whh0_ref, wcomb_ref, bcomb_ref, out_ref, h_sc, c_sc,
                 *, n_layers, hid, t_chunk, bc):
    H = hid

    @pl.when(pl.program_id(1) == 0)        # new batch chunk -> reset recurrent state
    def _():
        h_sc[...] = jnp.zeros_like(h_sc)
        c_sc[...] = jnp.zeros_like(c_sc)

    # Hoist all weight / bias loads (and bias broadcasts) out of the time loop.
    whh0 = whh0_ref[...]                                       # (H, 4H)
    if n_layers > 1:
        wcomb = [wcomb_ref[l] for l in range(n_layers - 1)]    # each (2H, 4H)
        bcomb = [jnp.broadcast_to(bcomb_ref[l], (bc, 4 * H))   # pre-broadcast once
                 for l in range(n_layers - 1)]

    def gates_to_hc(g, c_prev):
        i_g = jax.nn.sigmoid(g[:, :H])
        f_g = jax.nn.sigmoid(g[:, H:2 * H])
        g_g = jnp.tanh(g[:, 2 * H:3 * H])
        o_g = jax.nn.sigmoid(g[:, 3 * H:])
        c_new = f_g * c_prev + i_g * g_g
        h_new = o_g * jnp.tanh(c_new)
        return h_new, c_new

    def step(t, carry):
        # Layer 0: hoisted input projection (bias folded in) + recurrent dot.
        xp = xproj_ref[t]                                      # (bc, 4H)
        g = xp + jnp.dot(h_sc[0], whh0, preferred_element_type=jnp.float32)
        h_new, c_new = gates_to_hc(g, c_sc[0])
        h_sc[0] = h_new
        c_sc[0] = c_new
        x = h_new
        # Layers >= 1: single fused (bc, 2H) @ (2H, 4H) dot per layer-step.
        for l in range(1, n_layers):                           # static unroll (small)
            lhs = jnp.concatenate([h_sc[l], x], axis=-1)       # (bc, 2H)
            g = (jnp.dot(lhs, wcomb[l - 1], preferred_element_type=jnp.float32)
                 + bcomb[l - 1])
            h_new, c_new = gates_to_hc(g, c_sc[l])
            h_sc[l] = h_new
            c_sc[l] = c_new
            x = h_new
        out_ref[t] = x.astype(out_ref.dtype)
        return carry

    # Unroll capped (time is already blocked into chunks by the grid).
    lax.fori_loop(0, t_chunk, step, 0, unroll=min(4, t_chunk))


def run_lstm(xproj, whh0, wcomb, bcomb, *, n_layers, hid, t_chunk, n_tchunks,
             bc, n_bchunks):
    H = hid
    T_pad = t_chunk * n_tchunks
    b_pad = bc * n_bchunks
    kernel = functools.partial(_lstm_kernel, n_layers=n_layers, hid=H,
                               t_chunk=t_chunk, bc=bc)
    return pl.pallas_call(
        kernel,
        out_shape=jax.ShapeDtypeStruct((T_pad, b_pad, H), jnp.float32),
        grid=(n_bchunks, n_tchunks),
        in_specs=[
            pl.BlockSpec((t_chunk, bc, 4 * H), lambda b, t: (t, b, 0)),   # xproj
            pl.BlockSpec(whh0.shape, lambda b, t: (0, 0)),                # (H, 4H)
            pl.BlockSpec(wcomb.shape, lambda b, t: (0, 0, 0)),            # (L-1, 2H, 4H)
            pl.BlockSpec(bcomb.shape, lambda b, t: (0, 0, 0)),            # (L-1, 1, 4H)
        ],
        out_specs=pl.BlockSpec((t_chunk, bc, H), lambda b, t: (t, b, 0)),
        scratch_shapes=[
            pltpu.VMEM((n_layers, bc, H), jnp.float32),                   # h per layer
            pltpu.VMEM((n_layers, bc, H), jnp.float32),                   # c per layer
        ],
        compiler_params=pltpu.CompilerParams(
            dimension_semantics=("parallel", "arbitrary")),
    )(xproj, whh0, wcomb, bcomb)


# ----------------------------------------------------------------------------
# Fused coupling kernel: all n_couple ReLUNets + final `h + output`, tiled over
# rows (N = T*B); "parallel" row grid with >= 2 steps for v7x megacore.
# ----------------------------------------------------------------------------
def _couple_kernel(x_ref, ctx_ref, win_ref, bin_ref, wc_ref, bcell_ref,
                   wout_ref, bout_ref, o_ref, *, n_couple, n_relu, half):
    x = x_ref[...]                                 # (tile, E)
    ctx = ctx_ref[...]                             # (tile, H)
    h1 = x[:, :half]
    h2 = x[:, half:]
    for i in range(n_couple):                      # static unroll over couplings
        xin = h1 if i % 2 == 0 else h2
        lhs = jnp.concatenate([xin, ctx], axis=-1)                      # (tile, half+H)
        h = jnp.dot(lhs, win_ref[i], preferred_element_type=jnp.float32) + bin_ref[i]
        h = jnp.maximum(h, 0.0)
        for j in range(n_relu):
            h = jnp.maximum(
                jnp.dot(h, wc_ref[i, j], preferred_element_type=jnp.float32)
                + bcell_ref[i, j], 0.0)
        delta = jnp.dot(h, wout_ref[i], preferred_element_type=jnp.float32) + bout_ref[i]
        if i % 2 == 0:
            h2 = h2 + delta
        else:
            h1 = h1 + delta
    o_ref[...] = (jnp.concatenate([h1, h2], axis=-1) + ctx).astype(o_ref.dtype)


def run_couple(x2d, ctx2d, packed, *, n_couple, n_relu, tile_rows=512):
    N, E = x2d.shape
    half = E // 2
    H = ctx2d.shape[1]
    win, bin_, wc, bcell, wout, bout = packed

    n8 = _round_up(N, 8)
    # >= 2 grid steps when possible (v7x second TensorCore), big tiles otherwise.
    tile = max(8, min(tile_rows, _round_up(_cdiv(n8, 2), 8)))
    grid = _cdiv(n8, tile)
    n_pad = grid * tile
    if n_pad != N:
        pad = ((0, n_pad - N), (0, 0))
        x2d = jnp.pad(x2d, pad)
        ctx2d = jnp.pad(ctx2d, pad)

    kernel = functools.partial(_couple_kernel, n_couple=n_couple, n_relu=n_relu,
                               half=half)
    out = pl.pallas_call(
        kernel,
        out_shape=jax.ShapeDtypeStruct((n_pad, E), jnp.float32),
        grid=(grid,),
        in_specs=[
            pl.BlockSpec((tile, E), lambda r: (r, 0)),
            pl.BlockSpec((tile, H), lambda r: (r, 0)),
            pl.BlockSpec(win.shape, lambda r: (0, 0, 0)),
            pl.BlockSpec(bin_.shape, lambda r: (0, 0, 0)),
            pl.BlockSpec(wc.shape, lambda r: (0, 0, 0, 0)),
            pl.BlockSpec(bcell.shape, lambda r: (0, 0, 0, 0)),
            pl.BlockSpec(wout.shape, lambda r: (0, 0, 0)),
            pl.BlockSpec(bout.shape, lambda r: (0, 0, 0)),
        ],
        out_specs=pl.BlockSpec((tile, E), lambda r: (r, 0)),
        compiler_params=pltpu.CompilerParams(dimension_semantics=("parallel",)),
    )(x2d, ctx2d, win, bin_, wc, bcell, wout, bout)
    return out[:N]


# ----------------------------------------------------------------------------
# Parameter construction (PyTorch-shaped "raw") and packing for the kernels.
# ----------------------------------------------------------------------------
def init_params(key, *, n_lstm_layer, n_couple_layer, n_relu_layer,
                n_hid_lstm, n_hid_nice, n_emb):
    assert n_emb == n_hid_lstm, "final `h + output` add requires n_emb == n_hid_lstm"
    assert n_emb % 2 == 0
    half = n_emb // 2
    in_feat = half + n_hid_lstm
    keys = jax.random.split(key, 3)

    start_emb = jax.random.uniform(keys[0], (n_emb,), jnp.float32, -0.01, 0.01)

    k_l = 1.0 / float(n_hid_lstm) ** 0.5
    lk = jax.random.split(keys[1], 4 * n_lstm_layer)
    lstm_raw = []
    for l in range(n_lstm_layer):
        in_sz = n_emb if l == 0 else n_hid_lstm
        w_ih = jax.random.uniform(lk[4 * l + 0], (4 * n_hid_lstm, in_sz), jnp.float32, -k_l, k_l)
        w_hh = jax.random.uniform(lk[4 * l + 1], (4 * n_hid_lstm, n_hid_lstm), jnp.float32, -k_l, k_l)
        b_ih = jax.random.uniform(lk[4 * l + 2], (4 * n_hid_lstm,), jnp.float32, -k_l, k_l)
        b_hh = jax.random.uniform(lk[4 * l + 3], (4 * n_hid_lstm,), jnp.float32, -k_l, k_l)
        lstm_raw.append((w_ih, w_hh, b_ih, b_hh))

    ck = jax.random.split(keys[2], n_couple_layer)
    couple_raw = []
    for i in range(n_couple_layer):
        sk = jax.random.split(ck[i], 4 + 2 * n_relu_layer)
        k_in = 1.0 / float(in_feat) ** 0.5
        k_h = 1.0 / float(n_hid_nice) ** 0.5
        w_in = jax.random.uniform(sk[0], (n_hid_nice, in_feat), jnp.float32, -k_in, k_in)
        b_in = jax.random.uniform(sk[1], (n_hid_nice,), jnp.float32, -k_in, k_in)
        cells = []
        for j in range(n_relu_layer):
            cw = jax.random.uniform(sk[2 + 2 * j], (n_hid_nice, n_hid_nice), jnp.float32, -k_h, k_h)
            cb = jax.random.uniform(sk[3 + 2 * j], (n_hid_nice,), jnp.float32, -k_h, k_h)
            cells.append((cw, cb))
        w_out = jax.random.uniform(sk[-2], (half, n_hid_nice), jnp.float32, -k_h, k_h)
        b_out = jax.random.uniform(sk[-1], (half,), jnp.float32, -k_h, k_h)
        couple_raw.append((w_in, b_in, tuple(cells), w_out, b_out))
    return start_emb, lstm_raw, couple_raw


def pack_params(lstm_raw, couple_raw, *, n_hid_lstm):
    H = n_hid_lstm

    # --- LSTM: lane-major (in, 4H) weights; gates fused along lanes (i,f,g,o). ---
    w_ih0, w_hh0, b_ih0, b_hh0 = lstm_raw[0]
    wih0 = w_ih0.T                                          # (E, 4H)  — hoisted to wrapper
    b0 = (b_ih0 + b_hh0).reshape(1, 4 * H)                  # layer-0 bias, folded into xproj
    whh0 = w_hh0.T                                          # (H, 4H)
    wcomb_l, bcomb_l = [], []
    for (w_ih, w_hh, b_ih, b_hh) in lstm_raw[1:]:
        assert w_ih.shape[1] == H
        wcomb_l.append(jnp.concatenate([w_hh.T, w_ih.T], axis=0))   # (2H, 4H); LHS = [h_prev, x]
        bcomb_l.append((b_ih + b_hh).reshape(1, 4 * H))
    if not wcomb_l:                                          # placeholder so shapes stay valid
        wcomb_l.append(jnp.zeros((2 * H, 4 * H), jnp.float32))
        bcomb_l.append(jnp.zeros((1, 4 * H), jnp.float32))
    lstm_packed = (wih0, b0, whh0, jnp.stack(wcomb_l), jnp.stack(bcomb_l))

    # --- Couplings: fused input layer, LHS = [xin, ctx]. ---
    win_l, bin_l, wc_l, bcell_l, wout_l, bout_l = [], [], [], [], [], []
    for (w_in, b_in, cells, w_out, b_out) in couple_raw:
        win_l.append(w_in.T)                                 # (half+H, n_hid): rows = [x-part; ctx-part]
        bin_l.append(b_in.reshape(1, -1))
        wc_l.append(jnp.stack([cw.T for (cw, _) in cells]))  # (R, n_hid, n_hid)
        bcell_l.append(jnp.stack([cb.reshape(1, -1) for (_, cb) in cells]))
        wout_l.append(w_out.T)                               # (n_hid, half)
        bout_l.append(b_out.reshape(1, -1))
    couple_packed = (jnp.stack(win_l), jnp.stack(bin_l), jnp.stack(wc_l),
                     jnp.stack(bcell_l), jnp.stack(wout_l), jnp.stack(bout_l))
    return lstm_packed, couple_packed


# ----------------------------------------------------------------------------
# Full LSTMNICE forward (masks=None path)
# ----------------------------------------------------------------------------
def lstm_nice_forward(x, start_emb, lstm_packed, couple_packed, *,
                      n_lstm_layer, n_couple_layer, n_relu_layer,
                      n_hid_lstm, n_hid_nice, n_emb,
                      t_chunk=16, couple_tile_rows=512):
    T, B, E = x.shape
    H = n_hid_lstm
    wih0, b0, whh0, wcomb, bcomb = lstm_packed

    # Only lstm_out[:-1] is consumed ⇒ feed exactly T steps: [start_emb, x[0..T-2]].
    pad_start = jnp.broadcast_to(start_emb.reshape(1, 1, E), (1, B, E))
    lstm_in = jnp.concatenate([pad_start, x[:-1]], axis=0)              # (T, B, E)

    # Lane-packed layer-0 projection for all T steps, bias folded in: (T, B, 4H).
    xproj = jnp.einsum('tbe,eg->tbg', lstm_in, wih0) + b0

    # Batch chunking: 2 "parallel" chunks when it gives each core real work.
    b8 = _round_up(B, 8)
    n_bchunks = 2 if b8 >= 16 else 1
    bc = _round_up(_cdiv(b8, n_bchunks), 8)
    b_pad = n_bchunks * bc

    # Time blocking ("arbitrary" axis); padded tail steps are sliced off below.
    tc = max(1, min(t_chunk, T))
    T_pad = _round_up(T, tc)
    n_tchunks = T_pad // tc

    if (T_pad, b_pad) != (T, B):
        xproj = jnp.pad(xproj, ((0, T_pad - T), (0, b_pad - B), (0, 0)))

    ctx_pad = run_lstm(xproj, whh0, wcomb, bcomb,
                       n_layers=n_lstm_layer, hid=H, t_chunk=tc,
                       n_tchunks=n_tchunks, bc=bc, n_bchunks=n_bchunks)
    ctx = ctx_pad[:T, :B]                                               # (T, B, H)

    # Fused couplings + final `h + output` on flattened rows.
    N = T * B
    x2d = x.reshape(N, E)
    ctx2d = ctx.reshape(N, H)
    out2d = run_couple(x2d, ctx2d, couple_packed,
                       n_couple=n_couple_layer, n_relu=n_relu_layer,
                       tile_rows=couple_tile_rows)                      # (N, E)

    jacobian_loss = jnp.zeros((1,), dtype=jnp.float32)
    # TODO(synk): masks / pack_padded_sequence path not implemented (masks=None only).
    return out2d.reshape(T, B, E), jacobian_loss


# ----------------------------------------------------------------------------
# Pure-JAX reference (mirrors the PyTorch module) for a correctness check.
# ----------------------------------------------------------------------------
def reference_forward(x, start_emb, lstm_raw, couple_raw, *,
                      n_lstm_layer, n_couple_layer, n_relu_layer,
                      n_hid_lstm, n_hid_nice, n_emb):
    T, B, E = x.shape
    half = E // 2
    H = n_hid_lstm
    pad_start = jnp.broadcast_to(start_emb.reshape(1, 1, E), (1, B, E))
    seq = jnp.concatenate([pad_start, x], axis=0)                      # (T+1, B, E)

    layer_in = seq
    for l in range(n_lstm_layer):
        w_ih, w_hh, b_ih, b_hh = lstm_raw[l]
        h_t = jnp.zeros((B, H), jnp.float32)
        c_t = jnp.zeros((B, H), jnp.float32)
        outs = []
        for t in range(T + 1):
            g = layer_in[t] @ w_ih.T + h_t @ w_hh.T + b_ih + b_hh
            i_g = jax.nn.sigmoid(g[:, :H])
            f_g = jax.nn.sigmoid(g[:, H:2 * H])
            g_g = jnp.tanh(g[:, 2 * H:3 * H])
            o_g = jax.nn.sigmoid(g[:, 3 * H:])
            c_t = f_g * c_t + i_g * g_g
            h_t = o_g * jnp.tanh(c_t)
            outs.append(h_t)
        layer_in = jnp.stack(outs)
    output = layer_in[:-1]                                             # (T, B, H)

    def relunet(p, inp):
        w_in, b_in, cells, w_out, b_out = p
        h = jnp.maximum(inp @ w_in.T + b_in, 0.0)
        for (cw, cb) in cells:
            h = jnp.maximum(h @ cw.T + cb, 0.0)
        return h @ w_out.T + b_out

    h = x
    for i in range(n_couple_layer):
        h1 = h[..., :half]
        h2 = h[..., half:]
        if i % 2 == 0:
            d = relunet(couple_raw[i], jnp.concatenate([h1, output], axis=-1))
            h = jnp.concatenate([h1, h2 + d], axis=-1)
        else:
            d = relunet(couple_raw[i], jnp.concatenate([h2, output], axis=-1))
            h = jnp.concatenate([h1 + d, h2], axis=-1)
    return h + output, jnp.zeros((1,), jnp.float32)


if __name__ == "__main__":
    cfg = dict(n_lstm_layer=2, n_couple_layer=4, n_relu_layer=2,
               n_hid_lstm=32, n_hid_nice=64, n_emb=32)
    T, B = 8, 16   # B=16 exercises both "parallel" batch chunks of the LSTM grid

    key = jax.random.PRNGKey(0)
    k_x, k_p = jax.random.split(key)
    x = jax.random.normal(k_x, (T, B, cfg["n_emb"]), jnp.float32)

    start_emb, lstm_raw, couple_raw = init_params(k_p, **cfg)
    lstm_packed, couple_packed = pack_params(lstm_raw, couple_raw,
                                             n_hid_lstm=cfg["n_hid_lstm"])

    # t_chunk=4 -> time grid of 2 chunks: exercises h/c persistence + pl.when re-init.
    fwd = jax.jit(functools.partial(lstm_nice_forward, t_chunk=4, **cfg))
    out, jac = fwd(x, start_emb, lstm_packed, couple_packed)
    out = jax.block_until_ready(out)
    jac = jax.block_until_ready(jac)

    assert out.shape == (T, B, cfg["n_emb"])
    assert jac.shape == (1,)

    ref_fwd = jax.jit(functools.partial(reference_forward, **cfg))
    ref_out, _ = ref_fwd(x, start_emb, lstm_raw, couple_raw)
    ref_out = jax.block_until_ready(ref_out)
    err = float(jnp.max(jnp.abs(out - ref_out)))
    assert err < 2e-3, f"max abs error vs reference: {err}"

    print("KERNEL_OK")
</pallas_src>

<mosaic_0001>
module attributes {stable_mosaic.version = 11 : i64} {
  func.func @_lstm_kernel(%arg0: i32, %arg1: i32, %arg2: memref<4x8x128xf32, #tpu.memory_space<vmem>>, %arg3: memref<32x128xf32, #tpu.memory_space<vmem>>, %arg4: memref<1x64x128xf32, #tpu.memory_space<vmem>>, %arg5: memref<1x1x128xf32, #tpu.memory_space<vmem>>, %arg6: memref<4x8x32xf32, #tpu.memory_space<vmem>>, %arg7: memref<2x8x32xf32, #tpu.memory_space<vmem>>, %arg8: memref<2x8x32xf32, #tpu.memory_space<vmem>>) attributes {dimension_semantics = [#tpu.dimension_semantics<parallel>, #tpu.dimension_semantics<arbitrary>], iteration_bounds = array<i64: 2, 2>, scalar_prefetch = 0 : i64, scratch_operands = 2 : i64, tpu.core_type = #tpu.core_type<tc>, window_params = [{transform_indices = @transform_0, window_bounds = array<i64: 4, 8, 128>}, {pipeline_mode = #tpu.pipeline_mode<synchronous>, transform_indices = @transform_1, window_bounds = array<i64: 32, 128>}, {pipeline_mode = #tpu.pipeline_mode<synchronous>, transform_indices = @transform_2, window_bounds = array<i64: 1, 64, 128>}, {pipeline_mode = #tpu.pipeline_mode<synchronous>, transform_indices = @transform_3, window_bounds = array<i64: 1, 1, 128>}, {transform_indices = @transform_4, window_bounds = array<i64: 4, 8, 32>}]} {
    %c0_i32 = arith.constant 0 : i32
    %0 = arith.cmpi eq, %arg1, %c0_i32 : i32
    %1 = arith.extui %0 : i1 to i32
    %c0_i32_0 = arith.constant 0 : i32
    %2 = arith.cmpi ne, %1, %c0_i32_0 : i32
    scf.if %2 {
      %cst_151 = arith.constant 0.000000e+00 : f32
      %338 = vector.broadcast %cst_151 : f32 to vector<2x8x32xf32>
      %c0_152 = arith.constant 0 : index
      %c0_153 = arith.constant 0 : index
      %c0_154 = arith.constant 0 : index
      %339 = vector.load %arg7[%c0_152, %c0_153, %c0_154] : memref<2x8x32xf32, #tpu.memory_space<vmem>>, vector<2x8x32xf32>
      tpu.vector_store %arg7[%c0_152, %c0_153, %c0_154], %338 {strides = array<i32>} : memref<2x8x32xf32, #tpu.memory_space<vmem>>, vector<2x8x32xf32>,
      %cst_155 = arith.constant 0.000000e+00 : f32
      %340 = vector.broadcast %cst_155 : f32 to vector<2x8x32xf32>
      %c0_156 = arith.constant 0 : index
      %c0_157 = arith.constant 0 : index
      %c0_158 = arith.constant 0 : index
      %341 = vector.load %arg8[%c0_156, %c0_157, %c0_158] : memref<2x8x32xf32, #tpu.memory_space<vmem>>, vector<2x8x32xf32>
      tpu.vector_store %arg8[%c0_156, %c0_157, %c0_158], %340 {strides = array<i32>} : memref<2x8x32xf32, #tpu.memory_space<vmem>>, vector<2x8x32xf32>,
    } else {
    }
    %c0 = arith.constant 0 : index
    %c0_1 = arith.constant 0 : index
    %3 = vector.load %arg3[%c0, %c0_1] : memref<32x128xf32, #tpu.memory_space<vmem>>, vector<32x128xf32>
    %c0_2 = arith.constant 0 : index
    %c0_3 = arith.constant 0 : index
    %c0_4 = arith.constant 0 : index
    %4 = vector.load %arg4[%c0_2, %c0_3, %c0_4] : memref<1x64x128xf32, #tpu.memory_space<vmem>>, vector<1x64x128xf32>
    %5 = vector.shape_cast %4 : vector<1x64x128xf32> to vector<64x128xf32>
    %c0_5 = arith.constant 0 : index
    %c0_6 = arith.constant 0 : index
    %c0_7 = arith.constant 0 : index
    %6 = vector.load %arg5[%c0_5, %c0_6, %c0_7] : memref<1x1x128xf32, #tpu.memory_space<vmem>>, vector<1x1x128xf32>
    %7 = vector.shape_cast %6 : vector<1x1x128xf32> to vector<1x128xf32>
    %8 = vector.shape_cast %7 : vector<1x128xf32> to vector<1x128xf32>
    %9 = vector.broadcast %8 : vector<1x128xf32> to vector<8x128xf32>
    %c0_i32_8 = arith.constant 0 : i32
    %10 = arith.index_cast %c0_i32_8 : i32 to index
    %c0_9 = arith.constant 0 : index
    %c0_10 = arith.constant 0 : index
    %11 = vector.load %arg2[%10, %c0_9, %c0_10] : memref<4x8x128xf32, #tpu.memory_space<vmem>>, vector<1x8x128xf32>
    %12 = vector.shape_cast %11 : vector<1x8x128xf32> to vector<8x128xf32>
    %c0_11 = arith.constant 0 : index
    %c0_12 = arith.constant 0 : index
    %c0_13 = arith.constant 0 : index
    %13 = vector.load %arg7[%c0_11, %c0_12, %c0_13] : memref<2x8x32xf32, #tpu.memory_space<vmem>>, vector<1x8x32xf32>
    %14 = vector.shape_cast %13 : vector<1x8x32xf32> to vector<8x32xf32>
    %cst = arith.constant dense<0.000000e+00> : vector<8x128xf32>
    %15 = tpu.matmul %14, %3, %cst {dimension_numbers = #tpu.dot_dimension_numbers<[1], [0], [0], [1], [0, 0, 1, 1], [], []>} : vector<8x32xf32>, vector<32x128xf32>, vector<8x128xf32> -> vector<8x128xf32>
    %16 = arith.addf %12, %15 : vector<8x128xf32>
    %c0_14 = arith.constant 0 : index
    %c0_15 = arith.constant 0 : index
    %c0_16 = arith.constant 0 : index
    %17 = vector.load %arg8[%c0_14, %c0_15, %c0_16] : memref<2x8x32xf32, #tpu.memory_space<vmem>>, vector<1x8x32xf32>
    %18 = vector.shape_cast %17 : vector<1x8x32xf32> to vector<8x32xf32>
    %19 = vector.extract_strided_slice %16 {offsets = [0, 0], sizes = [8, 32], strides = [1, 1]} : vector<8x128xf32> to vector<8x32xf32>
    %20 = arith.negf %19 : vector<8x32xf32>
    %21 = math.exp %20 : vector<8x32xf32>
    %cst_17 = arith.constant 1.000000e+00 : f32
    %22 = vector.broadcast %cst_17 : f32 to vector<8x32xf32>
    %23 = arith.addf %22, %21 : vector<8x32xf32>
    %24 = arith.divf %22, %23 : vector<8x32xf32>
    %25 = vector.extract_strided_slice %16 {offsets = [0, 32], sizes = [8, 32], strides = [1, 1]} : vector<8x128xf32> to vector<8x32xf32>
    %26 = arith.negf %25 : vector<8x32xf32>
    %27 = math.exp %26 : vector<8x32xf32>
    %cst_18 = arith.constant 1.000000e+00 : f32
    %28 = vector.broadcast %cst_18 : f32 to vector<8x32xf32>
    %29 = arith.addf %28, %27 : vector<8x32xf32>
    %30 = arith.divf %28, %29 : vector<8x32xf32>
    %31 = vector.extract_strided_slice %16 {offsets = [0, 64], sizes = [8, 32], strides = [1, 1]} : vector<8x128xf32> to vector<8x32xf32>
    %32 = math.tanh %31 : vector<8x32xf32>
    %33 = vector.extract_strided_slice %16 {offsets = [0, 96], sizes = [8, 32], strides = [1, 1]} : vector<8x128xf32> to vector<8x32xf32>
    %34 = arith.negf %33 : vector<8x32xf32>
    %35 = math.exp %34 : vector<8x32xf32>
    %cst_19 = arith.constant 1.000000e+00 : f32
    %36 = vector.broadcast %cst_19 : f32 to vector<8x32xf32>
    %37 = arith.addf %36, %35 : vector<8x32xf32>
    %38 = arith.divf %36, %37 : vector<8x32xf32>
    %39 = arith.mulf %30, %18 : vector<8x32xf32>
    %40 = arith.mulf %24, %32 : vector<8x32xf32>
    %41 = arith.addf %39, %40 : vector<8x32xf32>
    %42 = math.tanh %41 : vector<8x32xf32>
    %43 = arith.mulf %38, %42 : vector<8x32xf32>
    %c0_20 = arith.constant 0 : index
    %c0_21 = arith.constant 0 : index
    %c0_22 = arith.constant 0 : index
    %44 = vector.load %arg7[%c0_20, %c0_21, %c0_22] : memref<2x8x32xf32, #tpu.memory_space<vmem>>, vector<1x8x32xf32>
    %45 = vector.shape_cast %44 : vector<1x8x32xf32> to vector<8x32xf32>
    %46 = vector.shape_cast %43 : vector<8x32xf32> to vector<1x8x32xf32>
    tpu.vector_store %arg7[%c0_20, %c0_21, %c0_22], %46 {strides = array<i32>} : memref<2x8x32xf32, #tpu.memory_space<vmem>>, vector<1x8x32xf32>,
    %c0_23 = arith.constant 0 : index
    %c0_24 = arith.constant 0 : index
    %c0_25 = arith.constant 0 : index
    %47 = vector.load %arg8[%c0_23, %c0_24, %c0_25] : memref<2x8x32xf32, #tpu.memory_space<vmem>>, vector<1x8x32xf32>
    %48 = vector.shape_cast %47 : vector<1x8x32xf32> to vector<8x32xf32>
    %49 = vector.shape_cast %41 : vector<8x32xf32> to vector<1x8x32xf32>
    tpu.vector_store %arg8[%c0_23, %c0_24, %c0_25], %49 {strides = array<i32>} : memref<2x8x32xf32, #tpu.memory_space<vmem>>, vector<1x8x32xf32>,
    %c1 = arith.constant 1 : index
    %c0_26 = arith.constant 0 : index
    %c0_27 = arith.constant 0 : index
    %50 = vector.load %arg7[%c1, %c0_26, %c0_27] : memref<2x8x32xf32, #tpu.memory_space<vmem>>, vector<1x8x32xf32>
    %51 = vector.shape_cast %50 : vector<1x8x32xf32> to vector<8x32xf32>
    %52 = tpu.concatenate %51, %43 in 1 : vector<8x32xf32>, vector<8x32xf32> -> vector<8x64xf32>
    %cst_28 = arith.constant dense<0.000000e+00> : vector<8x128xf32>
    %53 = tpu.matmul %52, %5, %cst_28 {dimension_numbers = #tpu.dot_dimension_numbers<[1], [0], [0], [1], [0, 0, 1, 1], [], []>} : vector<8x64xf32>, vector<64x128xf32>, vector<8x128xf32> -> vector<8x128xf32>
    %54 = arith.addf %53, %9 : vector<8x128xf32>
    %c1_29 = arith.constant 1 : index
    %c0_30 = arith.constant 0 : index
    %c0_31 = arith.constant 0 : index
    %55 = vector.load %arg8[%c1_29, %c0_30, %c0_31] : memref<2x8x32xf32, #tpu.memory_space<vmem>>, vector<1x8x32xf32>
    %56 = vector.shape_cast %55 : vector<1x8x32xf32> to vector<8x32xf32>
    %57 = vector.extract_strided_slice %54 {offsets = [0, 0], sizes = [8, 32], strides = [1, 1]} : vector<8x128xf32> to vector<8x32xf32>
    %58 = arith.negf %57 : vector<8x32xf32>
    %59 = math.exp %58 : vector<8x32xf32>
    %cst_32 = arith.constant 1.000000e+00 : f32
    %60 = vector.broadcast %cst_32 : f32 to vector<8x32xf32>
    %61 = arith.addf %60, %59 : vector<8x32xf32>
    %62 = arith.divf %60, %61 : vector<8x32xf32>
    %63 = vector.extract_strided_slice %54 {offsets = [0, 32], sizes = [8, 32], strides = [1, 1]} : vector<8x128xf32> to vector<8x32xf32>
    %64 = arith.negf %63 : vector<8x32xf32>
    %65 = math.exp %64 : vector<8x32xf32>
    %cst_33 = arith.constant 1.000000e+00 : f32
    %66 = vector.broadcast %cst_33 : f32 to vector<8x32xf32>
    %67 = arith.addf %66, %65 : vector<8x32xf32>
    %68 = arith.divf %66, %67 : vector<8x32xf32>
    %69 = vector.extract_strided_slice %54 {offsets = [0, 64], sizes = [8, 32], strides = [1, 1]} : vector<8x128xf32> to vector<8x32xf32>
    %70 = math.tanh %69 : vector<8x32xf32>
    %71 = vector.extract_strided_slice %54 {offsets = [0, 96], sizes = [8, 32], strides = [1, 1]} : vector<8x128xf32> to vector<8x32xf32>
    %72 = arith.negf %71 : vector<8x32xf32>
    %73 = math.exp %72 : vector<8x32xf32>
    %cst_34 = arith.constant 1.000000e+00 : f32
    %74 = vector.broadcast %cst_34 : f32 to vector<8x32xf32>
    %75 = arith.addf %74, %73 : vector<8x32xf32>
    %76 = arith.divf %74, %75 : vector<8x32xf32>
    %77 = arith.mulf %68, %56 : vector<8x32xf32>
    %78 = arith.mulf %62, %70 : vector<8x32xf32>
    %79 = arith.addf %77, %78 : vector<8x32xf32>
    %80 = math.tanh %79 : vector<8x32xf32>
    %81 = arith.mulf %76, %80 : vector<8x32xf32>
    %c1_35 = arith.constant 1 : index
    %c0_36 = arith.constant 0 : index
    %c0_37 = arith.constant 0 : index
    %82 = vector.load %arg7[%c1_35, %c0_36, %c0_37] : memref<2x8x32xf32, #tpu.memory_space<vmem>>, vector<1x8x32xf32>
    %83 = vector.shape_cast %82 : vector<1x8x32xf32> to vector<8x32xf32>
    %84 = vector.shape_cast %81 : vector<8x32xf32> to vector<1x8x32xf32>
    tpu.vector_store %arg7[%c1_35, %c0_36, %c0_37], %84 {strides = array<i32>} : memref<2x8x32xf32, #tpu.memory_space<vmem>>, vector<1x8x32xf32>,
    %c1_38 = arith.constant 1 : index
    %c0_39 = arith.constant 0 : index
    %c0_40 = arith.constant 0 : index
    %85 = vector.load %arg8[%c1_38, %c0_39, %c0_40] : memref<2x8x32xf32, #tpu.memory_space<vmem>>, vector<1x8x32xf32>
    %86 = vector.shape_cast %85 : vector<1x8x32xf32> to vector<8x32xf32>
    %87 = vector.shape_cast %79 : vector<8x32xf32> to vector<1x8x32xf32>
    tpu.vector_store %arg8[%c1_38, %c0_39, %c0_40], %87 {strides = array<i32>} : memref<2x8x32xf32, #tpu.memory_space<vmem>>, vector<1x8x32xf32>,
    %88 = arith.index_cast %c0_i32_8 : i32 to index
    %c0_41 = arith.constant 0 : index
    %c0_42 = arith.constant 0 : index
    %89 = vector.load %arg6[%88, %c0_41, %c0_42] : memref<4x8x32xf32, #tpu.memory_space<vmem>>, vector<1x8x32xf32>
    %90 = vector.shape_cast %89 : vector<1x8x32xf32> to vector<8x32xf32>
    %91 = vector.shape_cast %81 : vector<8x32xf32> to vector<1x8x32xf32>
    tpu.vector_store %arg6[%88, %c0_41, %c0_42], %91 {strides = array<i32>} : memref<4x8x32xf32, #tpu.memory_space<vmem>>, vector<1x8x32xf32>,
    %c1_i32 = arith.constant 1 : i32
    %92 = arith.index_cast %c1_i32 : i32 to index
    %c0_43 = arith.constant 0 : index
    %c0_44 = arith.constant 0 : index
    %93 = vector.load %arg2[%92, %c0_43, %c0_44] : memref<4x8x128xf32, #tpu.memory_space<vmem>>, vector<1x8x128xf32>
    %94 = vector.shape_cast %93 : vector<1x8x128xf32> to vector<8x128xf32>
    %c0_45 = arith.constant 0 : index
    %c0_46 = arith.constant 0 : index
    %c0_47 = arith.constant 0 : index
    %95 = vector.load %arg7[%c0_45, %c0_46, %c0_47] : memref<2x8x32xf32, #tpu.memory_space<vmem>>, vector<1x8x32xf32>
    %96 = vector.shape_cast %95 : vector<1x8x32xf32> to vector<8x32xf32>
    %cst_48 = arith.constant dense<0.000000e+00> : vector<8x128xf32>
    %97 = tpu.matmul %96, %3, %cst_48 {dimension_numbers = #tpu.dot_dimension_numbers<[1], [0], [0], [1], [0, 0, 1, 1], [], []>} : vector<8x32xf32>, vector<32x128xf32>, vector<8x128xf32> -> vector<8x128xf32>
    %98 = arith.addf %94, %97 : vector<8x128xf32>
    %c0_49 = arith.constant 0 : index
    %c0_50 = arith.constant 0 : index
    %c0_51 = arith.constant 0 : index
    %99 = vector.load %arg8[%c0_49, %c0_50, %c0_51] : memref<2x8x32xf32, #tpu.memory_space<vmem>>, vector<1x8x32xf32>
    %100 = vector.shape_cast %99 : vector<1x8x32xf32> to vector<8x32xf32>
    %101 = vector.extract_strided_slice %98 {offsets = [0, 0], sizes = [8, 32], strides = [1, 1]} : vector<8x128xf32> to vector<8x32xf32>
    %102 = arith.negf %101 : vector<8x32xf32>
    %103 = math.exp %102 : vector<8x32xf32>
    %cst_52 = arith.constant 1.000000e+00 : f32
    %104 = vector.broadcast %cst_52 : f32 to vector<8x32xf32>
    %105 = arith.addf %104, %103 : vector<8x32xf32>
    %106 = arith.divf %104, %105 : vector<8x32xf32>
    %107 = vector.extract_strided_slice %98 {offsets = [0, 32], sizes = [8, 32], strides = [1, 1]} : vector<8x128xf32> to vector<8x32xf32>
    %108 = arith.negf %107 : vector<8x32xf32>
    %109 = math.exp %108 : vector<8x32xf32>
    %cst_53 = arith.constant 1.000000e+00 : f32
    %110 = vector.broadcast %cst_53 : f32 to vector<8x32xf32>
    %111 = arith.addf %110, %109 : vector<8x32xf32>
    %112 = arith.divf %110, %111 : vector<8x32xf32>
    %113 = vector.extract_strided_slice %98 {offsets = [0, 64], sizes = [8, 32], strides = [1, 1]} : vector<8x128xf32> to vector<8x32xf32>
    %114 = math.tanh %113 : vector<8x32xf32>
    %115 = vector.extract_strided_slice %98 {offsets = [0, 96], sizes = [8, 32], strides = [1, 1]} : vector<8x128xf32> to vector<8x32xf32>
    %116 = arith.negf %115 : vector<8x32xf32>
    %117 = math.exp %116 : vector<8x32xf32>
    %cst_54 = arith.constant 1.000000e+00 : f32
    %118 = vector.broadcast %cst_54 : f32 to vector<8x32xf32>
    %119 = arith.addf %118, %117 : vector<8x32xf32>
    %120 = arith.divf %118, %119 : vector<8x32xf32>
    %121 = arith.mulf %112, %100 : vector<8x32xf32>
    %122 = arith.mulf %106, %114 : vector<8x32xf32>
    %123 = arith.addf %121, %122 : vector<8x32xf32>
    %124 = math.tanh %123 : vector<8x32xf32>
    %125 = arith.mulf %120, %124 : vector<8x32xf32>
    %c0_55 = arith.constant 0 : index
    %c0_56 = arith.constant 0 : index
    %c0_57 = arith.constant 0 : index
    %126 = vector.load %arg7[%c0_55, %c0_56, %c0_57] : memref<2x8x32xf32, #tpu.memory_space<vmem>>, vector<1x8x32xf32>
    %127 = vector.shape_cast %126 : vector<1x8x32xf32> to vector<8x32xf32>
    %128 = vector.shape_cast %125 : vector<8x32xf32> to vector<1x8x32xf32>
    tpu.vector_store %arg7[%c0_55, %c0_56, %c0_57], %128 {strides = array<i32>} : memref<2x8x32xf32, #tpu.memory_space<vmem>>, vector<1x8x32xf32>,
    %c0_58 = arith.constant 0 : index
    %c0_59 = arith.constant 0 : index
    %c0_60 = arith.constant 0 : index
    %129 = vector.load %arg8[%c0_58, %c0_59, %c0_60] : memref<2x8x32xf32, #tpu.memory_space<vmem>>, vector<1x8x32xf32>
    %130 = vector.shape_cast %129 : vector<1x8x32xf32> to vector<8x32xf32>
    %131 = vector.shape_cast %123 : vector<8x32xf32> to vector<1x8x32xf32>
    tpu.vector_store %arg8[%c0_58, %c0_59, %c0_60], %131 {strides = array<i32>} : memref<2x8x32xf32, #tpu.memory_space<vmem>>, vector<1x8x32xf32>,
    %c1_61 = arith.constant 1 : index
    %c0_62 = arith.constant 0 : index
    %c0_63 = arith.constant 0 : index
    %132 = vector.load %arg7[%c1_61, %c0_62, %c0_63] : memref<2x8x32xf32, #tpu.memory_space<vmem>>, vector<1x8x32xf32>
    %133 = vector.shape_cast %132 : vector<1x8x32xf32> to vector<8x32xf32>
    %134 = tpu.concatenate %133, %125 in 1 : vector<8x32xf32>, vector<8x32xf32> -> vector<8x64xf32>
    %cst_64 = arith.constant dense<0.000000e+00> : vector<8x128xf32>
    %135 = tpu.matmul %134, %5, %cst_64 {dimension_numbers = #tpu.dot_dimension_numbers<[1], [0], [0], [1], [0, 0, 1, 1], [], []>} : vector<8x64xf32>, vector<64x128xf32>, vector<8x128xf32> -> vector<8x128xf32>
    %136 = arith.addf %135, %9 : vector<8x128xf32>
    %c1_65 = arith.constant 1 : index
    %c0_66 = arith.constant 0 : index
    %c0_67 = arith.constant 0 : index
    %137 = vector.load %arg8[%c1_65, %c0_66, %c0_67] : memref<2x8x32xf32, #tpu.memory_space<vmem>>, vector<1x8x32xf32>
    %138 = vector.shape_cast %137 : vector<1x8x32xf32> to vector<8x32xf32>
    %139 = vector.extract_strided_slice %136 {offsets = [0, 0], sizes = [8, 32], strides = [1, 1]} : vector<8x128xf32> to vector<8x32xf32>
    %140 = arith.negf %139 : vector<8x32xf32>
    %141 = math.exp %140 : vector<8x32xf32>
    %cst_68 = arith.constant 1.000000e+00 : f32
    %142 = vector.broadcast %cst_68 : f32 to vector<8x32xf32>
    %143 = arith.addf %142, %141 : vector<8x32xf32>
    %144 = arith.divf %142, %143 : vector<8x32xf32>
    %145 = vector.extract_strided_slice %136 {offsets = [0, 32], sizes = [8, 32], strides = [1, 1]} : vector<8x128xf32> to vector<8x32xf32>
    %146 = arith.negf %145 : vector<8x32xf32>
    %147 = math.exp %146 : vector<8x32xf32>
    %cst_69 = arith.constant 1.000000e+00 : f32
    %148 = vector.broadcast %cst_69 : f32 to vector<8x32xf32>
    %149 = arith.addf %148, %147 : vector<8x32xf32>
    %150 = arith.divf %148, %149 : vector<8x32xf32>
    %151 = vector.extract_strided_slice %136 {offsets = [0, 64], sizes = [8, 32], strides = [1, 1]} : vector<8x128xf32> to vector<8x32xf32>
    %152 = math.tanh %151 : vector<8x32xf32>
    %153 = vector.extract_strided_slice %136 {offsets = [0, 96], sizes = [8, 32], strides = [1, 1]} : vector<8x128xf32> to vector<8x32xf32>
    %154 = arith.negf %153 : vector<8x32xf32>
    %155 = math.exp %154 : vector<8x32xf32>
    %cst_70 = arith.constant 1.000000e+00 : f32
    %156 = vector.broadcast %cst_70 : f32 to vector<8x32xf32>
    %157 = arith.addf %156, %155 : vector<8x32xf32>
    %158 = arith.divf %156, %157 : vector<8x32xf32>
    %159 = arith.mulf %150, %138 : vector<8x32xf32>
    %160 = arith.mulf %144, %152 : vector<8x32xf32>
    %161 = arith.addf %159, %160 : vector<8x32xf32>
    %162 = math.tanh %161 : vector<8x32xf32>
    %163 = arith.mulf %158, %162 : vector<8x32xf32>
    %c1_71 = arith.constant 1 : index
    %c0_72 = arith.constant 0 : index
    %c0_73 = arith.constant 0 : index
    %164 = vector.load %arg7[%c1_71, %c0_72, %c0_73] : memref<2x8x32xf32, #tpu.memory_space<vmem>>, vector<1x8x32xf32>
    %165 = vector.shape_cast %164 : vector<1x8x32xf32> to vector<8x32xf32>
    %166 = vector.shape_cast %163 : vector<8x32xf32> to vector<1x8x32xf32>
    tpu.vector_store %arg7[%c1_71, %c0_72, %c0_73], %166 {strides = array<i32>} : memref<2x8x32xf32, #tpu.memory_space<vmem>>, vector<1x8x32xf32>,
    %c1_74 = arith.constant 1 : index
    %c0_75 = arith.constant 0 : index
    %c0_76 = arith.constant 0 : index
    %167 = vector.load %arg8[%c1_74, %c0_75, %c0_76] : memref<2x8x32xf32, #tpu.memory_space<vmem>>, vector<1x8x32xf32>
    %168 = vector.shape_cast %167 : vector<1x8x32xf32> to vector<8x32xf32>
    %169 = vector.shape_cast %161 : vector<8x32xf32> to vector<1x8x32xf32>
    tpu.vector_store %arg8[%c1_74, %c0_75, %c0_76], %169 {strides = array<i32>} : memref<2x8x32xf32, #tpu.memory_space<vmem>>, vector<1x8x32xf32>,
    %170 = arith.index_cast %c1_i32 : i32 to index
    %c0_77 = arith.constant 0 : index
    %c0_78 = arith.constant 0 : index
    %171 = vector.load %arg6[%170, %c0_77, %c0_78] : memref<4x8x32xf32, #tpu.memory_space<vmem>>, vector<1x8x32xf32>
    %172 = vector.shape_cast %171 : vector<1x8x32xf32> to vector<8x32xf32>
    %173 = vector.shape_cast %163 : vector<8x32xf32> to vector<1x8x32xf32>
    tpu.vector_store %arg6[%170, %c0_77, %c0_78], %173 {strides = array<i32>} : memref<4x8x32xf32, #tpu.memory_space<vmem>>, vector<1x8x32xf32>,
    %c2_i32 = arith.constant 2 : i32
    %174 = arith.index_cast %c2_i32 : i32 to index
    %c0_79 = arith.constant 0 : index
    %c0_80 = arith.constant 0 : index
    %175 = vector.load %arg2[%174, %c0_79, %c0_80] : memref<4x8x128xf32, #tpu.memory_space<vmem>>, vector<1x8x128xf32>
    %176 = vector.shape_cast %175 : vector<1x8x128xf32> to vector<8x128xf32>
    %c0_81 = arith.constant 0 : index
    %c0_82 = arith.constant 0 : index
    %c0_83 = arith.constant 0 : index
    %177 = vector.load %arg7[%c0_81, %c0_82, %c0_83] : memref<2x8x32xf32, #tpu.memory_space<vmem>>, vector<1x8x32xf32>
    %178 = vector.shape_cast %177 : vector<1x8x32xf32> to vector<8x32xf32>
    %cst_84 = arith.constant dense<0.000000e+00> : vector<8x128xf32>
    %179 = tpu.matmul %178, %3, %cst_84 {dimension_numbers = #tpu.dot_dimension_numbers<[1], [0], [0], [1], [0, 0, 1, 1], [], []>} : vector<8x32xf32>, vector<32x128xf32>, vector<8x128xf32> -> vector<8x128xf32>
    %180 = arith.addf %176, %179 : vector<8x128xf32>
    %c0_85 = arith.constant 0 : index
    %c0_86 = arith.constant 0 : index
    %c0_87 = arith.constant 0 : index
    %181 = vector.load %arg8[%c0_85, %c0_86, %c0_87] : memref<2x8x32xf32, #tpu.memory_space<vmem>>, vector<1x8x32xf32>
    %182 = vector.shape_cast %181 : vector<1x8x32xf32> to vector<8x32xf32>
    %183 = vector.extract_strided_slice %180 {offsets = [0, 0], sizes = [8, 32], strides = [1, 1]} : vector<8x128xf32> to vector<8x32xf32>
    %184 = arith.negf %183 : vector<8x32xf32>
    %185 = math.exp %184 : vector<8x32xf32>
    %cst_88 = arith.constant 1.000000e+00 : f32
    %186 = vector.broadcast %cst_88 : f32 to vector<8x32xf32>
    %187 = arith.addf %186, %185 : vector<8x32xf32>
    %188 = arith.divf %186, %187 : vector<8x32xf32>
    %189 = vector.extract_strided_slice %180 {offsets = [0, 32], sizes = [8, 32], strides = [1, 1]} : vector<8x128xf32> to vector<8x32xf32>
    %190 = arith.negf %189 : vector<8x32xf32>
    %191 = math.exp %190 : vector<8x32xf32>
    %cst_89 = arith.constant 1.000000e+00 : f32
    %192 = vector.broadcast %cst_89 : f32 to vector<8x32xf32>
    %193 = arith.addf %192, %191 : vector<8x32xf32>
    %194 = arith.divf %192, %193 : vector<8x32xf32>
    %195 = vector.extract_strided_slice %180 {offsets = [0, 64], sizes = [8, 32], strides = [1, 1]} : vector<8x128xf32> to vector<8x32xf32>
    %196 = math.tanh %195 : vector<8x32xf32>
    %197 = vector.extract_strided_slice %180 {offsets = [0, 96], sizes = [8, 32], strides = [1, 1]} : vector<8x128xf32> to vector<8x32xf32>
    %198 = arith.negf %197 : vector<8x32xf32>
    %199 = math.exp %198 : vector<8x32xf32>
    %cst_90 = arith.constant 1.000000e+00 : f32
    %200 = vector.broadcast %cst_90 : f32 to vector<8x32xf32>
    %201 = arith.addf %200, %199 : vector<8x32xf32>
    %202 = arith.divf %200, %201 : vector<8x32xf32>
    %203 = arith.mulf %194, %182 : vector<8x32xf32>
    %204 = arith.mulf %188, %196 : vector<8x32xf32>
    %205 = arith.addf %203, %204 : vector<8x32xf32>
    %206 = math.tanh %205 : vector<8x32xf32>
    %207 = arith.mulf %202, %206 : vector<8x32xf32>
    %c0_91 = arith.constant 0 : index
    %c0_92 = arith.constant 0 : index
    %c0_93 = arith.constant 0 : index
    %208 = vector.load %arg7[%c0_91, %c0_92, %c0_93] : memref<2x8x32xf32, #tpu.memory_space<vmem>>, vector<1x8x32xf32>
    %209 = vector.shape_cast %208 : vector<1x8x32xf32> to vector<8x32xf32>
    %210 = vector.shape_cast %207 : vector<8x32xf32> to vector<1x8x32xf32>
    tpu.vector_store %arg7[%c0_91, %c0_92, %c0_93], %210 {strides = array<i32>} : memref<2x8x32xf32, #tpu.memory_space<vmem>>, vector<1x8x32xf32>,
    %c0_94 = arith.constant 0 : index
    %c0_95 = arith.constant 0 : index
    %c0_96 = arith.constant 0 : index
    %211 = vector.load %arg8[%c0_94, %c0_95, %c0_96] : memref<2x8x32xf32, #tpu.memory_space<vmem>>, vector<1x8x32xf32>
    %212 = vector.shape_cast %211 : vector<1x8x32xf32> to vector<8x32xf32>
    %213 = vector.shape_cast %205 : vector<8x32xf32> to vector<1x8x32xf32>
    tpu.vector_store %arg8[%c0_94, %c0_95, %c0_96], %213 {strides = array<i32>} : memref<2x8x32xf32, #tpu.memory_space<vmem>>, vector<1x8x32xf32>,
    %c1_97 = arith.constant 1 : index
    %c0_98 = arith.constant 0 : index
    %c0_99 = arith.constant 0 : index
    %214 = vector.load %arg7[%c1_97, %c0_98, %c0_99] : memref<2x8x32xf32, #tpu.memory_space<vmem>>, vector<1x8x32xf32>
    %215 = vector.shape_cast %214 : vector<1x8x32xf32> to vector<8x32xf32>
    %216 = tpu.concatenate %215, %207 in 1 : vector<8x32xf32>, vector<8x32xf32> -> vector<8x64xf32>
    %cst_100 = arith.constant dense<0.000000e+00> : vector<8x128xf32>
    %217 = tpu.matmul %216, %5, %cst_100 {dimension_numbers = #tpu.dot_dimension_numbers<[1], [0], [0], [1], [0, 0, 1, 1], [], []>} : vector<8x64xf32>, vector<64x128xf32>, vector<8x128xf32> -> vector<8x128xf32>
    %218 = arith.addf %217, %9 : vector<8x128xf32>
    %c1_101 = arith.constant 1 : index
    %c0_102 = arith.constant 0 : index
    %c0_103 = arith.constant 0 : index
    %219 = vector.load %arg8[%c1_101, %c0_102, %c0_103] : memref<2x8x32xf32, #tpu.memory_space<vmem>>, vector<1x8x32xf32>
    %220 = vector.shape_cast %219 : vector<1x8x32xf32> to vector<8x32xf32>
    %221 = vector.extract_strided_slice %218 {offsets = [0, 0], sizes = [8, 32], strides = [1, 1]} : vector<8x128xf32> to vector<8x32xf32>
    %222 = arith.negf %221 : vector<8x32xf32>
    %223 = math.exp %222 : vector<8x32xf32>
    %cst_104 = arith.constant 1.000000e+00 : f32
    %224 = vector.broadcast %cst_104 : f32 to vector<8x32xf32>
    %225 = arith.addf %224, %223 : vector<8x32xf32>
    %226 = arith.divf %224, %225 : vector<8x32xf32>
    %227 = vector.extract_strided_slice %218 {offsets = [0, 32], sizes = [8, 32], strides = [1, 1]} : vector<8x128xf32> to vector<8x32xf32>
    %228 = arith.negf %227 : vector<8x32xf32>
    %229 = math.exp %228 : vector<8x32xf32>
    %cst_105 = arith.constant 1.000000e+00 : f32
    %230 = vector.broadcast %cst_105 : f32 to vector<8x32xf32>
    %231 = arith.addf %230, %229 : vector<8x32xf32>
    %232 = arith.divf %230, %231 : vector<8x32xf32>
    %233 = vector.extract_strided_slice %218 {offsets = [0, 64], sizes = [8, 32], strides = [1, 1]} : vector<8x128xf32> to vector<8x32xf32>
    %234 = math.tanh %233 : vector<8x32xf32>
    %235 = vector.extract_strided_slice %218 {offsets = [0, 96], sizes = [8, 32], strides = [1, 1]} : vector<8x128xf32> to vector<8x32xf32>
    %236 = arith.negf %235 : vector<8x32xf32>
    %237 = math.exp %236 : vector<8x32xf32>
    %cst_106 = arith.constant 1.000000e+00 : f32
    %238 = vector.broadcast %cst_106 : f32 to vector<8x32xf32>
    %239 = arith.addf %238, %237 : vector<8x32xf32>
    %240 = arith.divf %238, %239 : vector<8x32xf32>
    %241 = arith.mulf %232, %220 : vector<8x32xf32>
    %242 = arith.mulf %226, %234 : vector<8x32xf32>
    %243 = arith.addf %241, %242 : vector<8x32xf32>
    %244 = math.tanh %243 : vector<8x32xf32>
    %245 = arith.mulf %240, %244 : vector<8x32xf32>
    %c1_107 = arith.constant 1 : index
    %c0_108 = arith.constant 0 : index
    %c0_109 = arith.constant 0 : index
    %246 = vector.load %arg7[%c1_107, %c0_108, %c0_109] : memref<2x8x32xf32, #tpu.memory_space<vmem>>, vector<1x8x32xf32>
    %247 = vector.shape_cast %246 : vector<1x8x32xf32> to vector<8x32xf32>
    %248 = vector.shape_cast %245 : vector<8x32xf32> to vector<1x8x32xf32>
    tpu.vector_store %arg7[%c1_107, %c0_108, %c0_109], %248 {strides = array<i32>} : memref<2x8x32xf32, #tpu.memory_space<vmem>>, vector<1x8x32xf32>,
    %c1_110 = arith.constant 1 : index
    %c0_111 = arith.constant 0 : index
    %c0_112 = arith.constant 0 : index
    %249 = vector.load %arg8[%c1_110, %c0_111, %c0_112] : memref<2x8x32xf32, #tpu.memory_space<vmem>>, vector<1x8x32xf32>
    %250 = vector.shape_cast %249 : vector<1x8x32xf32> to vector<8x32xf32>
    %251 = vector.shape_cast %243 : vector<8x32xf32> to vector<1x8x32xf32>
    tpu.vector_store %arg8[%c1_110, %c0_111, %c0_112], %251 {strides = array<i32>} : memref<2x8x32xf32, #tpu.memory_space<vmem>>, vector<1x8x32xf32>,
    %252 = arith.index_cast %c2_i32 : i32 to index
    %c0_113 = arith.constant 0 : index
    %c0_114 = arith.constant 0 : index
    %253 = vector.load %arg6[%252, %c0_113, %c0_114] : memref<4x8x32xf32, #tpu.memory_space<vmem>>, vector<1x8x32xf32>
    %254 = vector.shape_cast %253 : vector<1x8x32xf32> to vector<8x32xf32>
    %255 = vector.shape_cast %245 : vector<8x32xf32> to vector<1x8x32xf32>
    tpu.vector_store %arg6[%252, %c0_113, %c0_114], %255 {strides = array<i32>} : memref<4x8x32xf32, #tpu.memory_space<vmem>>, vector<1x8x32xf32>,
    %c3_i32 = arith.constant 3 : i32
    %256 = arith.index_cast %c3_i32 : i32 to index
    %c0_115 = arith.constant 0 : index
    %c0_116 = arith.constant 0 : index
    %257 = vector.load %arg2[%256, %c0_115, %c0_116] : memref<4x8x128xf32, #tpu.memory_space<vmem>>, vector<1x8x128xf32>
    %258 = vector.shape_cast %257 : vector<1x8x128xf32> to vector<8x128xf32>
    %c0_117 = arith.constant 0 : index
    %c0_118 = arith.constant 0 : index
    %c0_119 = arith.constant 0 : index
    %259 = vector.load %arg7[%c0_117, %c0_118, %c0_119] : memref<2x8x32xf32, #tpu.memory_space<vmem>>, vector<1x8x32xf32>
    %260 = vector.shape_cast %259 : vector<1x8x32xf32> to vector<8x32xf32>
    %cst_120 = arith.constant dense<0.000000e+00> : vector<8x128xf32>
    %261 = tpu.matmul %260, %3, %cst_120 {dimension_numbers = #tpu.dot_dimension_numbers<[1], [0], [0], [1], [0, 0, 1, 1], [], []>} : vector<8x32xf32>, vector<32x128xf32>, vector<8x128xf32> -> vector<8x128xf32>
    %262 = arith.addf %258, %261 : vector<8x128xf32>
    %c0_121 = arith.constant 0 : index
    %c0_122 = arith.constant 0 : index
    %c0_123 = arith.constant 0 : index
    %263 = vector.load %arg8[%c0_121, %c0_122, %c0_123] : memref<2x8x32xf32, #tpu.memory_space<vmem>>, vector<1x8x32xf32>
    %264 = vector.shape_cast %263 : vector<1x8x32xf32> to vector<8x32xf32>
    %265 = vector.extract_strided_slice %262 {offsets = [0, 0], sizes = [8, 32], strides = [1, 1]} : vector<8x128xf32> to vector<8x32xf32>
    %266 = arith.negf %265 : vector<8x32xf32>
    %267 = math.exp %266 : vector<8x32xf32>
    %cst_124 = arith.constant 1.000000e+00 : f32
    %268 = vector.broadcast %cst_124 : f32 to vector<8x32xf32>
    %269 = arith.addf %268, %267 : vector<8x32xf32>
    %270 = arith.divf %268, %269 : vector<8x32xf32>
    %271 = vector.extract_strided_slice %262 {offsets = [0, 32], sizes = [8, 32], strides = [1, 1]} : vector<8x128xf32> to vector<8x32xf32>
    %272 = arith.negf %271 : vector<8x32xf32>
    %273 = math.exp %272 : vector<8x32xf32>
    %cst_125 = arith.constant 1.000000e+00 : f32
    %274 = vector.broadcast %cst_125 : f32 to vector<8x32xf32>
    %275 = arith.addf %274, %273 : vector<8x32xf32>
    %276 = arith.divf %274, %275 : vector<8x32xf32>
    %277 = vector.extract_strided_slice %262 {offsets = [0, 64], sizes = [8, 32], strides = [1, 1]} : vector<8x128xf32> to vector<8x32xf32>
    %278 = math.tanh %277 : vector<8x32xf32>
    %279 = vector.extract_strided_slice %262 {offsets = [0, 96], sizes = [8, 32], strides = [1, 1]} : vector<8x128xf32> to vector<8x32xf32>
    %280 = arith.negf %279 : vector<8x32xf32>
    %281 = math.exp %280 : vector<8x32xf32>
    %cst_126 = arith.constant 1.000000e+00 : f32
    %282 = vector.broadcast %cst_126 : f32 to vector<8x32xf32>
    %283 = arith.addf %282, %281 : vector<8x32xf32>
    %284 = arith.divf %282, %283 : vector<8x32xf32>
    %285 = arith.mulf %276, %264 : vector<8x32xf32>
    %286 = arith.mulf %270, %278 : vector<8x32xf32>
    %287 = arith.addf %285, %286 : vector<8x32xf32>
    %288 = math.tanh %287 : vector<8x32xf32>
    %289 = arith.mulf %284, %288 : vector<8x32xf32>
    %c0_127 = arith.constant 0 : index
    %c0_128 = arith.constant 0 : index
    %c0_129 = arith.constant 0 : index
    %290 = vector.load %arg7[%c0_127, %c0_128, %c0_129] : memref<2x8x32xf32, #tpu.memory_space<vmem>>, vector<1x8x32xf32>
    %291 = vector.shape_cast %290 : vector<1x8x32xf32> to vector<8x32xf32>
    %292 = vector.shape_cast %289 : vector<8x32xf32> to vector<1x8x32xf32>
    tpu.vector_store %arg7[%c0_127, %c0_128, %c0_129], %292 {strides = array<i32>} : memref<2x8x32xf32, #tpu.memory_space<vmem>>, vector<1x8x32xf32>,
    %c0_130 = arith.constant 0 : index
    %c0_131 = arith.constant 0 : index
    %c0_132 = arith.constant 0 : index
    %293 = vector.load %arg8[%c0_130, %c0_131, %c0_132] : memref<2x8x32xf32, #tpu.memory_space<vmem>>, vector<1x8x32xf32>
    %294 = vector.shape_cast %293 : vector<1x8x32xf32> to vector<8x32xf32>
    %295 = vector.shape_cast %287 : vector<8x32xf32> to vector<1x8x32xf32>
    tpu.vector_store %arg8[%c0_130, %c0_131, %c0_132], %295 {strides = array<i32>} : memref<2x8x32xf32, #tpu.memory_space<vmem>>, vector<1x8x32xf32>,
    %c1_133 = arith.constant 1 : index
    %c0_134 = arith.constant 0 : index
    %c0_135 = arith.constant 0 : index
    %296 = vector.load %arg7[%c1_133, %c0_134, %c0_135] : memref<2x8x32xf32, #tpu.memory_space<vmem>>, vector<1x8x32xf32>
    %297 = vector.shape_cast %296 : vector<1x8x32xf32> to vector<8x32xf32>
    %298 = tpu.concatenate %297, %289 in 1 : vector<8x32xf32>, vector<8x32xf32> -> vector<8x64xf32>
    %cst_136 = arith.constant dense<0.000000e+00> : vector<8x128xf32>
    %299 = tpu.matmul %298, %5, %cst_136 {dimension_numbers = #tpu.dot_dimension_numbers<[1], [0], [0], [1], [0, 0, 1, 1], [], []>} : vector<8x64xf32>, vector<64x128xf32>, vector<8x128xf32> -> vector<8x128xf32>
    %300 = arith.addf %299, %9 : vector<8x128xf32>
    %c1_137 = arith.constant 1 : index
    %c0_138 = arith.constant 0 : index
    %c0_139 = arith.constant 0 : index
    %301 = vector.load %arg8[%c1_137, %c0_138, %c0_139] : memref<2x8x32xf32, #tpu.memory_space<vmem>>, vector<1x8x32xf32>
    %302 = vector.shape_cast %301 : vector<1x8x32xf32> to vector<8x32xf32>
    %303 = vector.extract_strided_slice %300 {offsets = [0, 0], sizes = [8, 32], strides = [1, 1]} : vector<8x128xf32> to vector<8x32xf32>
    %304 = arith.negf %303 : vector<8x32xf32>
    %305 = math.exp %304 : vector<8x32xf32>
    %cst_140 = arith.constant 1.000000e+00 : f32
    %306 = vector.broadcast %cst_140 : f32 to vector<8x32xf32>
    %307 = arith.addf %306, %305 : vector<8x32xf32>
    %308 = arith.divf %306, %307 : vector<8x32xf32>
    %309 = vector.extract_strided_slice %300 {offsets = [0, 32], sizes = [8, 32], strides = [1, 1]} : vector<8x128xf32> to vector<8x32xf32>
    %310 = arith.negf %309 : vector<8x32xf32>
    %311 = math.exp %310 : vector<8x32xf32>
    %cst_141 = arith.constant 1.000000e+00 : f32
    %312 = vector.broadcast %cst_141 : f32 to vector<8x32xf32>
    %313 = arith.addf %312, %311 : vector<8x32xf32>
    %314 = arith.divf %312, %313 : vector<8x32xf32>
    %315 = vector.extract_strided_slice %300 {offsets = [0, 64], sizes = [8, 32], strides = [1, 1]} : vector<8x128xf32> to vector<8x32xf32>
    %316 = math.tanh %315 : vector<8x32xf32>
    %317 = vector.extract_strided_slice %300 {offsets = [0, 96], sizes = [8, 32], strides = [1, 1]} : vector<8x128xf32> to vector<8x32xf32>
    %318 = arith.negf %317 : vector<8x32xf32>
    %319 = math.exp %318 : vector<8x32xf32>
    %cst_142 = arith.constant 1.000000e+00 : f32
    %320 = vector.broadcast %cst_142 : f32 to vector<8x32xf32>
    %321 = arith.addf %320, %319 : vector<8x32xf32>
    %322 = arith.divf %320, %321 : vector<8x32xf32>
    %323 = arith.mulf %314, %302 : vector<8x32xf32>
    %324 = arith.mulf %308, %316 : vector<8x32xf32>
    %325 = arith.addf %323, %324 : vector<8x32xf32>
    %326 = math.tanh %325 : vector<8x32xf32>
    %327 = arith.mulf %322, %326 : vector<8x32xf32>
    %c1_143 = arith.constant 1 : index
    %c0_144 = arith.constant 0 : index
    %c0_145 = arith.constant 0 : index
    %328 = vector.load %arg7[%c1_143, %c0_144, %c0_145] : memref<2x8x32xf32, #tpu.memory_space<vmem>>, vector<1x8x32xf32>
    %329 = vector.shape_cast %328 : vector<1x8x32xf32> to vector<8x32xf32>
    %330 = vector.shape_cast %327 : vector<8x32xf32> to vector<1x8x32xf32>
    tpu.vector_store %arg7[%c1_143, %c0_144, %c0_145], %330 {strides = array<i32>} : memref<2x8x32xf32, #tpu.memory_space<vmem>>, vector<1x8x32xf32>,
    %c1_146 = arith.constant 1 : index
    %c0_147 = arith.constant 0 : index
    %c0_148 = arith.constant 0 : index
    %331 = vector.load %arg8[%c1_146, %c0_147, %c0_148] : memref<2x8x32xf32, #tpu.memory_space<vmem>>, vector<1x8x32xf32>
    %332 = vector.shape_cast %331 : vector<1x8x32xf32> to vector<8x32xf32>
    %333 = vector.shape_cast %325 : vector<8x32xf32> to vector<1x8x32xf32>
    tpu.vector_store %arg8[%c1_146, %c0_147, %c0_148], %333 {strides = array<i32>} : memref<2x8x32xf32, #tpu.memory_space<vmem>>, vector<1x8x32xf32>,
    %334 = arith.index_cast %c3_i32 : i32 to index
    %c0_149 = arith.constant 0 : index
    %c0_150 = arith.constant 0 : index
    %335 = vector.load %arg6[%334, %c0_149, %c0_150] : memref<4x8x32xf32, #tpu.memory_space<vmem>>, vector<1x8x32xf32>
    %336 = vector.shape_cast %335 : vector<1x8x32xf32> to vector<8x32xf32>
    %337 = vector.shape_cast %327 : vector<8x32xf32> to vector<1x8x32xf32>
    tpu.vector_store %arg6[%334, %c0_149, %c0_150], %337 {strides = array<i32>} : memref<4x8x32xf32, #tpu.memory_space<vmem>>, vector<1x8x32xf32>,
    %c4_i32 = arith.constant 4 : i32
    return
  }
  func.func @transform_0(%arg0: i32, %arg1: i32) -> (i32, i32, i32) {
    %c0_i32 = arith.constant 0 : i32
    %c0_i32_0 = arith.constant 0 : i32
    return %arg1, %arg0, %c0_i32 : i32, i32, i32
  }
  func.func @transform_1(%arg0: i32, %arg1: i32) -> (i32, i32) {
    %c0_i32 = arith.constant 0 : i32
    %c0_i32_0 = arith.constant 0 : i32
    %c0_i32_1 = arith.constant 0 : i32
    return %c0_i32, %c0_i32_0 : i32, i32
  }
  func.func @transform_2(%arg0: i32, %arg1: i32) -> (i32, i32, i32) {
    %c0_i32 = arith.constant 0 : i32
    %c0_i32_0 = arith.constant 0 : i32
    %c0_i32_1 = arith.constant 0 : i32
    %c0_i32_2 = arith.constant 0 : i32
    return %c0_i32, %c0_i32_0, %c0_i32_1 : i32, i32, i32
  }
  func.func @transform_3(%arg0: i32, %arg1: i32) -> (i32, i32, i32) {
    %c0_i32 = arith.constant 0 : i32
    %c0_i32_0 = arith.constant 0 : i32
    %c0_i32_1 = arith.constant 0 : i32
    %c0_i32_2 = arith.constant 0 : i32
    return %c0_i32, %c0_i32_0, %c0_i32_1 : i32, i32, i32
  }
  func.func @transform_4(%arg0: i32, %arg1: i32) -> (i32, i32, i32) {
    %c0_i32 = arith.constant 0 : i32
    %c0_i32_0 = arith.constant 0 : i32
    return %arg1, %arg0, %c0_i32 : i32, i32, i32
  }
}

module attributes {stable_mosaic.version = 11 : i64} {
  func.func @_couple_kernel(%arg0: i32, %arg1: memref<64x32xf32, #tpu.memory_space<vmem>>, %arg2: memref<64x32xf32, #tpu.memory_space<vmem>>, %arg3: memref<4x48x64xf32, #tpu.memory_space<vmem>>, %arg4: memref<4x1x64xf32, #tpu.memory_space<vmem>>, %arg5: memref<4x2x64x64xf32, #tpu.memory_space<vmem>>, %arg6: memref<4x2x1x64xf32, #tpu.memory_space<vmem>>, %arg7: memref<4x64x16xf32, #tpu.memory_space<vmem>>, %arg8: memref<4x1x16xf32, #tpu.memory_space<vmem>>, %arg9: memref<64x32xf32, #tpu.memory_space<vmem>>) attributes {dimension_semantics = [#tpu.dimension_semantics<parallel>], iteration_bounds = array<i64: 2>, scalar_prefetch = 0 : i64, scratch_operands = 0 : i64, tpu.core_type = #tpu.core_type<tc>, window_params = [{transform_indices = @transform_0, window_bounds = array<i64: 64, 32>}, {transform_indices = @transform_1, window_bounds = array<i64: 64, 32>}, {pipeline_mode = #tpu.pipeline_mode<synchronous>, transform_indices = @transform_2, window_bounds = array<i64: 4, 48, 64>}, {pipeline_mode = #tpu.pipeline_mode<synchronous>, transform_indices = @transform_3, window_bounds = array<i64: 4, 1, 64>}, {pipeline_mode = #tpu.pipeline_mode<synchronous>, transform_indices = @transform_4, window_bounds = array<i64: 4, 2, 64, 64>}, {pipeline_mode = #tpu.pipeline_mode<synchronous>, transform_indices = @transform_5, window_bounds = array<i64: 4, 2, 1, 64>}, {pipeline_mode = #tpu.pipeline_mode<synchronous>, transform_indices = @transform_6, window_bounds = array<i64: 4, 64, 16>}, {pipeline_mode = #tpu.pipeline_mode<synchronous>, transform_indices = @transform_7, window_bounds = array<i64: 4, 1, 16>}, {transform_indices = @transform_8, window_bounds = array<i64: 64, 32>}]} {
    %c0 = arith.constant 0 : index
    %c0_0 = arith.constant 0 : index
    %0 = vector.load %arg1[%c0, %c0_0] : memref<64x32xf32, #tpu.memory_space<vmem>>, vector<64x32xf32>
    %c0_1 = arith.constant 0 : index
    %c0_2 = arith.constant 0 : index
    %1 = vector.load %arg2[%c0_1, %c0_2] : memref<64x32xf32, #tpu.memory_space<vmem>>, vector<64x32xf32>
    %2 = vector.extract_strided_slice %0 {offsets = [0, 0], sizes = [64, 16], strides = [1, 1]} : vector<64x32xf32> to vector<64x16xf32>
    %3 = vector.extract_strided_slice %0 {offsets = [0, 16], sizes = [64, 16], strides = [1, 1]} : vector<64x32xf32> to vector<64x16xf32>
    %4 = tpu.concatenate %2, %1 in 1 : vector<64x16xf32>, vector<64x32xf32> -> vector<64x48xf32>
    %c0_3 = arith.constant 0 : index
    %c0_4 = arith.constant 0 : index
    %c0_5 = arith.constant 0 : index
    %5 = vector.load %arg3[%c0_3, %c0_4, %c0_5] : memref<4x48x64xf32, #tpu.memory_space<vmem>>, vector<1x48x64xf32>
    %6 = vector.shape_cast %5 : vector<1x48x64xf32> to vector<48x64xf32>
    %cst = arith.constant dense<0.000000e+00> : vector<64x64xf32>
    %7 = tpu.matmul %4, %6, %cst {dimension_numbers = #tpu.dot_dimension_numbers<[1], [0], [0], [1], [0, 0, 1, 1], [], []>} : vector<64x48xf32>, vector<48x64xf32>, vector<64x64xf32> -> vector<64x64xf32>
    %c0_6 = arith.constant 0 : index
    %c0_7 = arith.constant 0 : index
    %c0_8 = arith.constant 0 : index
    %8 = vector.load %arg4[%c0_6, %c0_7, %c0_8] : memref<4x1x64xf32, #tpu.memory_space<vmem>>, vector<1x1x64xf32>
    %9 = vector.shape_cast %8 : vector<1x1x64xf32> to vector<1x64xf32>
    %10 = vector.broadcast %9 : vector<1x64xf32> to vector<64x64xf32>
    %11 = arith.addf %7, %10 : vector<64x64xf32>
    %cst_9 = arith.constant 0.000000e+00 : f32
    %12 = vector.broadcast %cst_9 : f32 to vector<64x64xf32>
    %13 = arith.maximumf %11, %12 : vector<64x64xf32>
    %c0_10 = arith.constant 0 : index
    %c0_11 = arith.constant 0 : index
    %c0_12 = arith.constant 0 : index
    %c0_13 = arith.constant 0 : index
    %14 = vector.load %arg5[%c0_10, %c0_11, %c0_12, %c0_13] : memref<4x2x64x64xf32, #tpu.memory_space<vmem>>, vector<1x1x64x64xf32>
    %15 = vector.shape_cast %14 : vector<1x1x64x64xf32> to vector<64x64xf32>
    %cst_14 = arith.constant dense<0.000000e+00> : vector<64x64xf32>
    %16 = tpu.matmul %13, %15, %cst_14 {dimension_numbers = #tpu.dot_dimension_numbers<[1], [0], [0], [1], [0, 0, 1, 1], [], []>} : vector<64x64xf32>, vector<64x64xf32>, vector<64x64xf32> -> vector<64x64xf32>
    %c0_15 = arith.constant 0 : index
    %c0_16 = arith.constant 0 : index
    %c0_17 = arith.constant 0 : index
    %c0_18 = arith.constant 0 : index
    %17 = vector.load %arg6[%c0_15, %c0_16, %c0_17, %c0_18] : memref<4x2x1x64xf32, #tpu.memory_space<vmem>>, vector<1x1x1x64xf32>
    %18 = vector.shape_cast %17 : vector<1x1x1x64xf32> to vector<1x64xf32>
    %19 = vector.broadcast %18 : vector<1x64xf32> to vector<64x64xf32>
    %20 = arith.addf %16, %19 : vector<64x64xf32>
    %cst_19 = arith.constant 0.000000e+00 : f32
    %21 = vector.broadcast %cst_19 : f32 to vector<64x64xf32>
    %22 = arith.maximumf %20, %21 : vector<64x64xf32>
    %c0_20 = arith.constant 0 : index
    %c1 = arith.constant 1 : index
    %c0_21 = arith.constant 0 : index
    %c0_22 = arith.constant 0 : index
    %23 = vector.load %arg5[%c0_20, %c1, %c0_21, %c0_22] : memref<4x2x64x64xf32, #tpu.memory_space<vmem>>, vector<1x1x64x64xf32>
    %24 = vector.shape_cast %23 : vector<1x1x64x64xf32> to vector<64x64xf32>
    %cst_23 = arith.constant dense<0.000000e+00> : vector<64x64xf32>
    %25 = tpu.matmul %22, %24, %cst_23 {dimension_numbers = #tpu.dot_dimension_numbers<[1], [0], [0], [1], [0, 0, 1, 1], [], []>} : vector<64x64xf32>, vector<64x64xf32>, vector<64x64xf32> -> vector<64x64xf32>
    %c0_24 = arith.constant 0 : index
    %c1_25 = arith.constant 1 : index
    %c0_26 = arith.constant 0 : index
    %c0_27 = arith.constant 0 : index
    %26 = vector.load %arg6[%c0_24, %c1_25, %c0_26, %c0_27] : memref<4x2x1x64xf32, #tpu.memory_space<vmem>>, vector<1x1x1x64xf32>
    %27 = vector.shape_cast %26 : vector<1x1x1x64xf32> to vector<1x64xf32>
    %28 = vector.broadcast %27 : vector<1x64xf32> to vector<64x64xf32>
    %29 = arith.addf %25, %28 : vector<64x64xf32>
    %cst_28 = arith.constant 0.000000e+00 : f32
    %30 = vector.broadcast %cst_28 : f32 to vector<64x64xf32>
    %31 = arith.maximumf %29, %30 : vector<64x64xf32>
    %c0_29 = arith.constant 0 : index
    %c0_30 = arith.constant 0 : index
    %c0_31 = arith.constant 0 : index
    %32 = vector.load %arg7[%c0_29, %c0_30, %c0_31] : memref<4x64x16xf32, #tpu.memory_space<vmem>>, vector<1x64x16xf32>
    %33 = vector.shape_cast %32 : vector<1x64x16xf32> to vector<64x16xf32>
    %cst_32 = arith.constant dense<0.000000e+00> : vector<64x16xf32>
    %34 = tpu.matmul %31, %33, %cst_32 {dimension_numbers = #tpu.dot_dimension_numbers<[1], [0], [0], [1], [0, 0, 1, 1], [], []>} : vector<64x64xf32>, vector<64x16xf32>, vector<64x16xf32> -> vector<64x16xf32>
    %c0_33 = arith.constant 0 : index
    %c0_34 = arith.constant 0 : index
    %c0_35 = arith.constant 0 : index
    %35 = vector.load %arg8[%c0_33, %c0_34, %c0_35] : memref<4x1x16xf32, #tpu.memory_space<vmem>>, vector<1x1x16xf32>
    %36 = vector.shape_cast %35 : vector<1x1x16xf32> to vector<1x16xf32>
    %37 = vector.broadcast %36 : vector<1x16xf32> to vector<64x16xf32>
    %38 = arith.addf %34, %37 : vector<64x16xf32>
    %39 = arith.addf %3, %38 : vector<64x16xf32>
    %40 = tpu.concatenate %39, %1 in 1 : vector<64x16xf32>, vector<64x32xf32> -> vector<64x48xf32>
    %c1_36 = arith.constant 1 : index
    %c0_37 = arith.constant 0 : index
    %c0_38 = arith.constant 0 : index
    %41 = vector.load %arg3[%c1_36, %c0_37, %c0_38] : memref<4x48x64xf32, #tpu.memory_space<vmem>>, vector<1x48x64xf32>
    %42 = vector.shape_cast %41 : vector<1x48x64xf32> to vector<48x64xf32>
    %cst_39 = arith.constant dense<0.000000e+00> : vector<64x64xf32>
    %43 = tpu.matmul %40, %42, %cst_39 {dimension_numbers = #tpu.dot_dimension_numbers<[1], [0], [0], [1], [0, 0, 1, 1], [], []>} : vector<64x48xf32>, vector<48x64xf32>, vector<64x64xf32> -> vector<64x64xf32>
    %c1_40 = arith.constant 1 : index
    %c0_41 = arith.constant 0 : index
    %c0_42 = arith.constant 0 : index
    %44 = vector.load %arg4[%c1_40, %c0_41, %c0_42] : memref<4x1x64xf32, #tpu.memory_space<vmem>>, vector<1x1x64xf32>
    %45 = vector.shape_cast %44 : vector<1x1x64xf32> to vector<1x64xf32>
    %46 = vector.broadcast %45 : vector<1x64xf32> to vector<64x64xf32>
    %47 = arith.addf %43, %46 : vector<64x64xf32>
    %cst_43 = arith.constant 0.000000e+00 : f32
    %48 = vector.broadcast %cst_43 : f32 to vector<64x64xf32>
    %49 = arith.maximumf %47, %48 : vector<64x64xf32>
    %c1_44 = arith.constant 1 : index
    %c0_45 = arith.constant 0 : index
    %c0_46 = arith.constant 0 : index
    %c0_47 = arith.constant 0 : index
    %50 = vector.load %arg5[%c1_44, %c0_45, %c0_46, %c0_47] : memref<4x2x64x64xf32, #tpu.memory_space<vmem>>, vector<1x1x64x64xf32>
    %51 = vector.shape_cast %50 : vector<1x1x64x64xf32> to vector<64x64xf32>
    %cst_48 = arith.constant dense<0.000000e+00> : vector<64x64xf32>
    %52 = tpu.matmul %49, %51, %cst_48 {dimension_numbers = #tpu.dot_dimension_numbers<[1], [0], [0], [1], [0, 0, 1, 1], [], []>} : vector<64x64xf32>, vector<64x64xf32>, vector<64x64xf32> -> vector<64x64xf32>
    %c1_49 = arith.constant 1 : index
    %c0_50 = arith.constant 0 : index
    %c0_51 = arith.constant 0 : index
    %c0_52 = arith.constant 0 : index
    %53 = vector.load %arg6[%c1_49, %c0_50, %c0_51, %c0_52] : memref<4x2x1x64xf32, #tpu.memory_space<vmem>>, vector<1x1x1x64xf32>
    %54 = vector.shape_cast %53 : vector<1x1x1x64xf32> to vector<1x64xf32>
    %55 = vector.broadcast %54 : vector<1x64xf32> to vector<64x64xf32>
    %56 = arith.addf %52, %55 : vector<64x64xf32>
    %cst_53 = arith.constant 0.000000e+00 : f32
    %57 = vector.broadcast %cst_53 : f32 to vector<64x64xf32>
    %58 = arith.maximumf %56, %57 : vector<64x64xf32>
    %c1_54 = arith.constant 1 : index
    %c1_55 = arith.constant 1 : index
    %c0_56 = arith.constant 0 : index
    %c0_57 = arith.constant 0 : index
    %59 = vector.load %arg5[%c1_54, %c1_55, %c0_56, %c0_57] : memref<4x2x64x64xf32, #tpu.memory_space<vmem>>, vector<1x1x64x64xf32>
    %60 = vector.shape_cast %59 : vector<1x1x64x64xf32> to vector<64x64xf32>
    %cst_58 = arith.constant dense<0.000000e+00> : vector<64x64xf32>
    %61 = tpu.matmul %58, %60, %cst_58 {dimension_numbers = #tpu.dot_dimension_numbers<[1], [0], [0], [1], [0, 0, 1, 1], [], []>} : vector<64x64xf32>, vector<64x64xf32>, vector<64x64xf32> -> vector<64x64xf32>
    %c1_59 = arith.constant 1 : index
    %c1_60 = arith.constant 1 : index
    %c0_61 = arith.constant 0 : index
    %c0_62 = arith.constant 0 : index
    %62 = vector.load %arg6[%c1_59, %c1_60, %c0_61, %c0_62] : memref<4x2x1x64xf32, #tpu.memory_space<vmem>>, vector<1x1x1x64xf32>
    %63 = vector.shape_cast %62 : vector<1x1x1x64xf32> to vector<1x64xf32>
    %64 = vector.broadcast %63 : vector<1x64xf32> to vector<64x64xf32>
    %65 = arith.addf %61, %64 : vector<64x64xf32>
    %cst_63 = arith.constant 0.000000e+00 : f32
    %66 = vector.broadcast %cst_63 : f32 to vector<64x64xf32>
    %67 = arith.maximumf %65, %66 : vector<64x64xf32>
    %c1_64 = arith.constant 1 : index
    %c0_65 = arith.constant 0 : index
    %c0_66 = arith.constant 0 : index
    %68 = vector.load %arg7[%c1_64, %c0_65, %c0_66] : memref<4x64x16xf32, #tpu.memory_space<vmem>>, vector<1x64x16xf32>
    %69 = vector.shape_cast %68 : vector<1x64x16xf32> to vector<64x16xf32>
    %cst_67 = arith.constant dense<0.000000e+00> : vector<64x16xf32>
    %70 = tpu.matmul %67, %69, %cst_67 {dimension_numbers = #tpu.dot_dimension_numbers<[1], [0], [0], [1], [0, 0, 1, 1], [], []>} : vector<64x64xf32>, vector<64x16xf32>, vector<64x16xf32> -> vector<64x16xf32>
    %c1_68 = arith.constant 1 : index
    %c0_69 = arith.constant 0 : index
    %c0_70 = arith.constant 0 : index
    %71 = vector.load %arg8[%c1_68, %c0_69, %c0_70] : memref<4x1x16xf32, #tpu.memory_space<vmem>>, vector<1x1x16xf32>
    %72 = vector.shape_cast %71 : vector<1x1x16xf32> to vector<1x16xf32>
    %73 = vector.broadcast %72 : vector<1x16xf32> to vector<64x16xf32>
    %74 = arith.addf %70, %73 : vector<64x16xf32>
    %75 = arith.addf %2, %74 : vector<64x16xf32>
    %76 = tpu.concatenate %75, %1 in 1 : vector<64x16xf32>, vector<64x32xf32> -> vector<64x48xf32>
    %c2 = arith.constant 2 : index
    %c0_71 = arith.constant 0 : index
    %c0_72 = arith.constant 0 : index
    %77 = vector.load %arg3[%c2, %c0_71, %c0_72] : memref<4x48x64xf32, #tpu.memory_space<vmem>>, vector<1x48x64xf32>
    %78 = vector.shape_cast %77 : vector<1x48x64xf32> to vector<48x64xf32>
    %cst_73 = arith.constant dense<0.000000e+00> : vector<64x64xf32>
    %79 = tpu.matmul %76, %78, %cst_73 {dimension_numbers = #tpu.dot_dimension_numbers<[1], [0], [0], [1], [0, 0, 1, 1], [], []>} : vector<64x48xf32>, vector<48x64xf32>, vector<64x64xf32> -> vector<64x64xf32>
    %c2_74 = arith.constant 2 : index
    %c0_75 = arith.constant 0 : index
    %c0_76 = arith.constant 0 : index
    %80 = vector.load %arg4[%c2_74, %c0_75, %c0_76] : memref<4x1x64xf32, #tpu.memory_space<vmem>>, vector<1x1x64xf32>
    %81 = vector.shape_cast %80 : vector<1x1x64xf32> to vector<1x64xf32>
    %82 = vector.broadcast %81 : vector<1x64xf32> to vector<64x64xf32>
    %83 = arith.addf %79, %82 : vector<64x64xf32>
    %cst_77 = arith.constant 0.000000e+00 : f32
    %84 = vector.broadcast %cst_77 : f32 to vector<64x64xf32>
    %85 = arith.maximumf %83, %84 : vector<64x64xf32>
    %c2_78 = arith.constant 2 : index
    %c0_79 = arith.constant 0 : index
    %c0_80 = arith.constant 0 : index
    %c0_81 = arith.constant 0 : index
    %86 = vector.load %arg5[%c2_78, %c0_79, %c0_80, %c0_81] : memref<4x2x64x64xf32, #tpu.memory_space<vmem>>, vector<1x1x64x64xf32>
    %87 = vector.shape_cast %86 : vector<1x1x64x64xf32> to vector<64x64xf32>
    %cst_82 = arith.constant dense<0.000000e+00> : vector<64x64xf32>
    %88 = tpu.matmul %85, %87, %cst_82 {dimension_numbers = #tpu.dot_dimension_numbers<[1], [0], [0], [1], [0, 0, 1, 1], [], []>} : vector<64x64xf32>, vector<64x64xf32>, vector<64x64xf32> -> vector<64x64xf32>
    %c2_83 = arith.constant 2 : index
    %c0_84 = arith.constant 0 : index
    %c0_85 = arith.constant 0 : index
    %c0_86 = arith.constant 0 : index
    %89 = vector.load %arg6[%c2_83, %c0_84, %c0_85, %c0_86] : memref<4x2x1x64xf32, #tpu.memory_space<vmem>>, vector<1x1x1x64xf32>
    %90 = vector.shape_cast %89 : vector<1x1x1x64xf32> to vector<1x64xf32>
    %91 = vector.broadcast %90 : vector<1x64xf32> to vector<64x64xf32>
    %92 = arith.addf %88, %91 : vector<64x64xf32>
    %cst_87 = arith.constant 0.000000e+00 : f32
    %93 = vector.broadcast %cst_87 : f32 to vector<64x64xf32>
    %94 = arith.maximumf %92, %93 : vector<64x64xf32>
    %c2_88 = arith.constant 2 : index
    %c1_89 = arith.constant 1 : index
    %c0_90 = arith.constant 0 : index
    %c0_91 = arith.constant 0 : index
    %95 = vector.load %arg5[%c2_88, %c1_89, %c0_90, %c0_91] : memref<4x2x64x64xf32, #tpu.memory_space<vmem>>, vector<1x1x64x64xf32>
    %96 = vector.shape_cast %95 : vector<1x1x64x64xf32> to vector<64x64xf32>
    %cst_92 = arith.constant dense<0.000000e+00> : vector<64x64xf32>
    %97 = tpu.matmul %94, %96, %cst_92 {dimension_numbers = #tpu.dot_dimension_numbers<[1], [0], [0], [1], [0, 0, 1, 1], [], []>} : vector<64x64xf32>, vector<64x64xf32>, vector<64x64xf32> -> vector<64x64xf32>
    %c2_93 = arith.constant 2 : index
    %c1_94 = arith.constant 1 : index
    %c0_95 = arith.constant 0 : index
    %c0_96 = arith.constant 0 : index
    %98 = vector.load %arg6[%c2_93, %c1_94, %c0_95, %c0_96] : memref<4x2x1x64xf32, #tpu.memory_space<vmem>>, vector<1x1x1x64xf32>
    %99 = vector.shape_cast %98 : vector<1x1x1x64xf32> to vector<1x64xf32>
    %100 = vector.broadcast %99 : vector<1x64xf32> to vector<64x64xf32>
    %101 = arith.addf %97, %100 : vector<64x64xf32>
    %cst_97 = arith.constant 0.000000e+00 : f32
    %102 = vector.broadcast %cst_97 : f32 to vector<64x64xf32>
    %103 = arith.maximumf %101, %102 : vector<64x64xf32>
    %c2_98 = arith.constant 2 : index
    %c0_99 = arith.constant 0 : index
    %c0_100 = arith.constant 0 : index
    %104 = vector.load %arg7[%c2_98, %c0_99, %c0_100] : memref<4x64x16xf32, #tpu.memory_space<vmem>>, vector<1x64x16xf32>
    %105 = vector.shape_cast %104 : vector<1x64x16xf32> to vector<64x16xf32>
    %cst_101 = arith.constant dense<0.000000e+00> : vector<64x16xf32>
    %106 = tpu.matmul %103, %105, %cst_101 {dimension_numbers = #tpu.dot_dimension_numbers<[1], [0], [0], [1], [0, 0, 1, 1], [], []>} : vector<64x64xf32>, vector<64x16xf32>, vector<64x16xf32> -> vector<64x16xf32>
    %c2_102 = arith.constant 2 : index
    %c0_103 = arith.constant 0 : index
    %c0_104 = arith.constant 0 : index
    %107 = vector.load %arg8[%c2_102, %c0_103, %c0_104] : memref<4x1x16xf32, #tpu.memory_space<vmem>>, vector<1x1x16xf32>
    %108 = vector.shape_cast %107 : vector<1x1x16xf32> to vector<1x16xf32>
    %109 = vector.broadcast %108 : vector<1x16xf32> to vector<64x16xf32>
    %110 = arith.addf %106, %109 : vector<64x16xf32>
    %111 = arith.addf %39, %110 : vector<64x16xf32>
    %112 = tpu.concatenate %111, %1 in 1 : vector<64x16xf32>, vector<64x32xf32> -> vector<64x48xf32>
    %c3 = arith.constant 3 : index
    %c0_105 = arith.constant 0 : index
    %c0_106 = arith.constant 0 : index
    %113 = vector.load %arg3[%c3, %c0_105, %c0_106] : memref<4x48x64xf32, #tpu.memory_space<vmem>>, vector<1x48x64xf32>
    %114 = vector.shape_cast %113 : vector<1x48x64xf32> to vector<48x64xf32>
    %cst_107 = arith.constant dense<0.000000e+00> : vector<64x64xf32>
    %115 = tpu.matmul %112, %114, %cst_107 {dimension_numbers = #tpu.dot_dimension_numbers<[1], [0], [0], [1], [0, 0, 1, 1], [], []>} : vector<64x48xf32>, vector<48x64xf32>, vector<64x64xf32> -> vector<64x64xf32>
    %c3_108 = arith.constant 3 : index
    %c0_109 = arith.constant 0 : index
    %c0_110 = arith.constant 0 : index
    %116 = vector.load %arg4[%c3_108, %c0_109, %c0_110] : memref<4x1x64xf32, #tpu.memory_space<vmem>>, vector<1x1x64xf32>
    %117 = vector.shape_cast %116 : vector<1x1x64xf32> to vector<1x64xf32>
    %118 = vector.broadcast %117 : vector<1x64xf32> to vector<64x64xf32>
    %119 = arith.addf %115, %118 : vector<64x64xf32>
    %cst_111 = arith.constant 0.000000e+00 : f32
    %120 = vector.broadcast %cst_111 : f32 to vector<64x64xf32>
    %121 = arith.maximumf %119, %120 : vector<64x64xf32>
    %c3_112 = arith.constant 3 : index
    %c0_113 = arith.constant 0 : index
    %c0_114 = arith.constant 0 : index
    %c0_115 = arith.constant 0 : index
    %122 = vector.load %arg5[%c3_112, %c0_113, %c0_114, %c0_115] : memref<4x2x64x64xf32, #tpu.memory_space<vmem>>, vector<1x1x64x64xf32>
    %123 = vector.shape_cast %122 : vector<1x1x64x64xf32> to vector<64x64xf32>
    %cst_116 = arith.constant dense<0.000000e+00> : vector<64x64xf32>
    %124 = tpu.matmul %121, %123, %cst_116 {dimension_numbers = #tpu.dot_dimension_numbers<[1], [0], [0], [1], [0, 0, 1, 1], [], []>} : vector<64x64xf32>, vector<64x64xf32>, vector<64x64xf32> -> vector<64x64xf32>
    %c3_117 = arith.constant 3 : index
    %c0_118 = arith.constant 0 : index
    %c0_119 = arith.constant 0 : index
    %c0_120 = arith.constant 0 : index
    %125 = vector.load %arg6[%c3_117, %c0_118, %c0_119, %c0_120] : memref<4x2x1x64xf32, #tpu.memory_space<vmem>>, vector<1x1x1x64xf32>
    %126 = vector.shape_cast %125 : vector<1x1x1x64xf32> to vector<1x64xf32>
    %127 = vector.broadcast %126 : vector<1x64xf32> to vector<64x64xf32>
    %128 = arith.addf %124, %127 : vector<64x64xf32>
    %cst_121 = arith.constant 0.000000e+00 : f32
    %129 = vector.broadcast %cst_121 : f32 to vector<64x64xf32>
    %130 = arith.maximumf %128, %129 : vector<64x64xf32>
    %c3_122 = arith.constant 3 : index
    %c1_123 = arith.constant 1 : index
    %c0_124 = arith.constant 0 : index
    %c0_125 = arith.constant 0 : index
    %131 = vector.load %arg5[%c3_122, %c1_123, %c0_124, %c0_125] : memref<4x2x64x64xf32, #tpu.memory_space<vmem>>, vector<1x1x64x64xf32>
    %132 = vector.shape_cast %131 : vector<1x1x64x64xf32> to vector<64x64xf32>
    %cst_126 = arith.constant dense<0.000000e+00> : vector<64x64xf32>
    %133 = tpu.matmul %130, %132, %cst_126 {dimension_numbers = #tpu.dot_dimension_numbers<[1], [0], [0], [1], [0, 0, 1, 1], [], []>} : vector<64x64xf32>, vector<64x64xf32>, vector<64x64xf32> -> vector<64x64xf32>
    %c3_127 = arith.constant 3 : index
    %c1_128 = arith.constant 1 : index
    %c0_129 = arith.constant 0 : index
    %c0_130 = arith.constant 0 : index
    %134 = vector.load %arg6[%c3_127, %c1_128, %c0_129, %c0_130] : memref<4x2x1x64xf32, #tpu.memory_space<vmem>>, vector<1x1x1x64xf32>
    %135 = vector.shape_cast %134 : vector<1x1x1x64xf32> to vector<1x64xf32>
    %136 = vector.broadcast %135 : vector<1x64xf32> to vector<64x64xf32>
    %137 = arith.addf %133, %136 : vector<64x64xf32>
    %cst_131 = arith.constant 0.000000e+00 : f32
    %138 = vector.broadcast %cst_131 : f32 to vector<64x64xf32>
    %139 = arith.maximumf %137, %138 : vector<64x64xf32>
    %c3_132 = arith.constant 3 : index
    %c0_133 = arith.constant 0 : index
    %c0_134 = arith.constant 0 : index
    %140 = vector.load %arg7[%c3_132, %c0_133, %c0_134] : memref<4x64x16xf32, #tpu.memory_space<vmem>>, vector<1x64x16xf32>
    %141 = vector.shape_cast %140 : vector<1x64x16xf32> to vector<64x16xf32>
    %cst_135 = arith.constant dense<0.000000e+00> : vector<64x16xf32>
    %142 = tpu.matmul %139, %141, %cst_135 {dimension_numbers = #tpu.dot_dimension_numbers<[1], [0], [0], [1], [0, 0, 1, 1], [], []>} : vector<64x64xf32>, vector<64x16xf32>, vector<64x16xf32> -> vector<64x16xf32>
    %c3_136 = arith.constant 3 : index
    %c0_137 = arith.constant 0 : index
    %c0_138 = arith.constant 0 : index
    %143 = vector.load %arg8[%c3_136, %c0_137, %c0_138] : memref<4x1x16xf32, #tpu.memory_space<vmem>>, vector<1x1x16xf32>
    %144 = vector.shape_cast %143 : vector<1x1x16xf32> to vector<1x16xf32>
    %145 = vector.broadcast %144 : vector<1x16xf32> to vector<64x16xf32>
    %146 = arith.addf %142, %145 : vector<64x16xf32>
    %147 = arith.addf %75, %146 : vector<64x16xf32>
    %148 = tpu.concatenate %147, %111 in 1 : vector<64x16xf32>, vector<64x16xf32> -> vector<64x32xf32>
    %149 = arith.addf %148, %1 : vector<64x32xf32>
    %c0_139 = arith.constant 0 : index
    %c0_140 = arith.constant 0 : index
    %150 = vector.load %arg9[%c0_139, %c0_140] : memref<64x32xf32, #tpu.memory_space<vmem>>, vector<64x32xf32>
    tpu.vector_store %arg9[%c0_139, %c0_140], %149 {strides = array<i32>} : memref<64x32xf32, #tpu.memory_space<vmem>>, vector<64x32xf32>,
    return
  }
  func.func @transform_0(%arg0: i32) -> (i32, i32) {
    %c0_i32 = arith.constant 0 : i32
    %c0_i32_0 = arith.constant 0 : i32
    return %arg0, %c0_i32 : i32, i32
  }
  func.func @transform_1(%arg0: i32) -> (i32, i32) {
    %c0_i32 = arith.constant 0 : i32
    %c0_i32_0 = arith.constant 0 : i32
    return %arg0, %c0_i32 : i32, i32
  }
  func.func @transform_2(%arg0: i32) -> (i32, i32, i32) {
    %c0_i32 = arith.constant 0 : i32
    %c0_i32_0 = arith.constant 0 : i32
    %c0_i32_1 = arith.constant 0 : i32
    %c0_i32_2 = arith.constant 0 : i32
    return %c0_i32, %c0_i32_0, %c0_i32_1 : i32, i32, i32
  }
  func.func @transform_3(%arg0: i32) -> (i32, i32, i32) {
    %c0_i32 = arith.constant 0 : i32
    %c0_i32_0 = arith.constant 0 : i32
    %c0_i32_1 = arith.constant 0 : i32
    %c0_i32_2 = arith.constant 0 : i32
    return %c0_i32, %c0_i32_0, %c0_i32_1 : i32, i32, i32
  }
  func.func @transform_4(%arg0: i32) -> (i32, i32, i32, i32) {
    %c0_i32 = arith.constant 0 : i32
    %c0_i32_0 = arith.constant 0 : i32
    %c0_i32_1 = arith.constant 0 : i32
    %c0_i32_2 = arith.constant 0 : i32
    %c0_i32_3 = arith.constant 0 : i32
    return %c0_i32, %c0_i32_0, %c0_i32_1, %c0_i32_2 : i32, i32, i32, i32
  }
  func.func @transform_5(%arg0: i32) -> (i32, i32, i32, i32) {
    %c0_i32 = arith.constant 0 : i32
    %c0_i32_0 = arith.constant 0 : i32
    %c0_i32_1 = arith.constant 0 : i32
    %c0_i32_2 = arith.constant 0 : i32
    %c0_i32_3 = arith.constant 0 : i32
    return %c0_i32, %c0_i32_0, %c0_i32_1, %c0_i32_2 : i32, i32, i32, i32
  }
  func.func @transform_6(%arg0: i32) -> (i32, i32, i32) {
    %c0_i32 = arith.constant 0 : i32
    %c0_i32_0 = arith.constant 0 : i32
    %c0_i32_1 = arith.constant 0 : i32
    %c0_i32_2 = arith.constant 0 : i32
    return %c0_i32, %c0_i32_0, %c0_i32_1 : i32, i32, i32
  }
  func.func @transform_7(%arg0: i32) -> (i32, i32, i32) {
    %c0_i32 = arith.constant 0 : i32
    %c0_i32_0 = arith.constant 0 : i32
    %c0_i32_1 = arith.constant 0 : i32
    %c0_i32_2 = arith.constant 0 : i32
    return %c0_i32, %c0_i32_0, %c0_i32_1 : i32, i32, i32
  }
  func.func @transform_8(%arg0: i32) -> (i32, i32) {
    %c0_i32 = arith.constant 0 : i32
    %c0_i32_0 = arith.constant 0 : i32
    return %arg0, %c0_i32 : i32, i32
  }
}

</mosaic_0001>

<bundles_post_ra>
// kernel: lstm_nice_forward.2
= control target key start
LH: loop header
LB: loop body
LE: loop exit
PB: predicated region body
PF: predicated region fallthrough
CT: control target
= control target key end

     0   :  { %s1863_s15 = smov 0   ;;  %s1865_s16 = smov 0   ;;  %s2181_s0 = inlined_call_operand.vmem [shape: f32[8,16,128], index: 0, kind: input, shape index: {}]   ;;  %s2182_s1 = inlined_call_operand.vmem [shape: f32[32,128], index: 1, kind: input, shape index: {}]   ;;  %s2183_s2 = inlined_call_operand.vmem [shape: f32[1,64,128], index: 2, kind: input, shape index: {}]   ;;  %s2184_s3 = inlined_call_operand.vmem [shape: f32[1,1,128], index: 3, kind: input, shape index: {}]   ;;  %s2185_s4 = inlined_call_operand.vmem [shape: f32[8,16,32], index: 4, kind: output, shape index: {}]  }
   0x1   :  { %s1867_s17 = smov 0   ;;  %s1869_s18 = smov 0  }
   0x2   :  { %s1871_s19 = smov 0   ;;  %s1873_s20 = smov 0  }
   0x3   :  { %s1875_s21 = smov 0  }
   0x4 LB: > { %s23_s22 = sadd.s32 1, %s1821_s19  ;;  %s26_s23 = sadd.s32 1, %s1825_s20  ;;  %s1829_s21 = sphi %s1875_s21, %s14_s21   ;;  %s1825_s20 = sphi %s1873_s20, %s2192_s20   ;;  %s1821_s19 = sphi %s1871_s19, %s2191_s19   ;;  %s1817_s18 = sphi %s1869_s18, %s2190_s18   ;;  %s1813_s17 = sphi %s1867_s17, %s2189_s17   ;;  %s1809_s16 = sphi %s1865_s16, %s2188_s16   ;;  %s1805_s15 = sphi %s1863_s15, %s2187_s15  }
   0x5   : > { %p24_p0 = scmp.ge.s32.totalorder %s23_s22, 2  ;;  %s1357_s24 = sadd.s32 4294967295, %s1829_s21  }
   0x6   : > { %p42_p1 = scmp.ne.s32.totalorder %s1809_s16, %s1805_s15  ;;  %p43_p2 = scmp.eq.s32.totalorder %s1829_s21, 0 }
   0x7   : > { %s2194_s22 = smov (%p24_p0, %s23_s22), 0  ;;  %s2196_s23 = smov (!%p24_p0, %s26_s23), %s1825_s20 }
   0x8   : > { %p28_p3 = scmp.ge.s32.totalorder %s2196_s23, 2  ;;  %p137_p4 = scmp.eq.s32.totalorder %s1357_s24, 3 }
   0x9   : > { %s30_s25 = ssub.s32 %s1821_s19, %s2194_s22  ;;  %p44_p5 = por %p43_p2, %p42_p1 }
   0xa   : > { %s2198_s23 = smov (%p28_p3, %s2196_s23), 0  ;;  %p1911_p6 = por %p137_p4, %p42_p1 }
   0xb   : > { %s31_s27 = ssub.s32 %s1825_s20, %s2198_s23  ;;  %s35_s29 = sadd.s32 1, %s1809_s16 }
   0xc   : > { %s32_s28 = sor.u32 %s31_s27, %s30_s25  ;;  %p1360_p8 = scmp.ge.s32.totalorder %s1829_s21, 4 }
   0xd   : > { %p33_p7 = scmp.eq.s32.totalorder %s32_s28, 0 }
   0xe   : > { %168 = sbr.rel (%p1360_p8) target bundleno = 29 (0x1d), region = 28 }
   0xf   : > { %s1919_s30 = scalar_select %p33_p7, %s1809_s16, %s35_s29  }
  0x15   : > { %171 = sbr.rel (!%p44_p5) target bundleno = 29 (0x1d), region = 32  ;;  %s173_s5 = sand.u32 (%p44_p5), 1, %s1809_s16  }
  0x16   : > { %s1398_s6 = sshll.u32 (%p44_p5), %s1821_s19, 3  ;;  %s1361_s7 = sshll.u32 (%p44_p5), %s173_s5, 5 }
  0x17   : > { %s178_s8 = sadd.s32 (%p44_p5), %s1825_s20, %s1398_s6  ;;  %s175_s13 = scalar_lea.vmem (%p44_p5), [#allocation4], %s1361_s7 }
  0x18   : > { %s1364_s9 = sshll.u32 (%p44_p5), %s178_s8, 3 }
  0x19   : > { %s180_s12 = scalar_lea.vmem (%p44_p5), %s2181_s0, %s1364_s9 }
  0x1a   : > { %v214_v0 = vld [vmem:[%s180_s12] sm:$0xff] (%p44_p5)  ;;  %v216_v1 = vld [vmem:[%s180_s12 + $0x10] sm:$0xff] (%p44_p5) }
  0x1b   : > { %v218_v2 = vld [vmem:[%s180_s12 + $0x20] sm:$0xff] (%p44_p5)  ;;  %215 = vst [vmem:[%s175_s13] sm:$0xff] (%p44_p5), %v214_v0  ;;  %217 = vst [vmem:[%s175_s13 + $0x8] sm:$0xff] (%p44_p5), %v216_v1  ;;  %v220_v3 = vld [vmem:[%s180_s12 + $0x30] sm:$0xff] (%p44_p5) }
  0x1c   : > { %219 = vst [vmem:[%s175_s13 + $0x10] sm:$0xff] %v218_v2  ;;  %221 = vst [vmem:[%s175_s13 + $0x18] sm:$0xff] %v220_v3 }
  0x1d PF: > { %p1365_p9 = scmp.ge.s32.totalorder %s1829_s21, 1  ;;  %p226_p10 = scmp.lt.s32.totalorder %s1829_s21, 5 }
  0x1f   : > { %p227_p11 = pnand %p1365_p9, %p226_p10 }
  0x20   : > { %s233_s14 = sand.u32 (!%p227_p11), 1, %s1805_s15   ;;  %p1368_p12 = scmp.ne.s32.totalorder (!%p227_p11), %s1813_s17, 0 }
  0x21   : > { %230 = sbr.rel (%p227_p11) target bundleno = 3604 (0xe14), region = 70  ;;  %s1366_s24 = sshll.u32 (!%p227_p11), %s233_s14, 5 }
  0x22   : > { %s1931_s25 = scalar_lea.vmem (!%p227_p11), [#allocation4], %s1366_s24  ;;  %s1933_s27 = scalar_lea.vmem (!%p227_p11), [#allocation5], %s1366_s24 }
  0x28   : > { %262 = sbr.rel (%p1368_p12) target bundleno = 47 (0x2f), region = 78  ;;  %vm263_vm0 = vcmask (!%p1368_p12), 261120   ;;  %v1831_v4 = vmov (!%p1368_p12), 0.0  }
  0x29   : > { %264 = vst.msk [vmem:[#allocation2] sm:$0xff] (!%p1368_p12), %vm263_vm0, %v1831_v4  ;;  %265 = vst.msk [vmem:[#allocation2 + $0x8] sm:$0xff] (!%p1368_p12), %vm263_vm0, %v1831_v4 }
  0x2a   : > { %266 = vst.msk [vmem:[#allocation3] sm:$0xff] (!%p1368_p12), %vm263_vm0, %v1831_v4  ;;  %267 = vst.msk [vmem:[#allocation3 + $0x8] sm:$0xff] (!%p1368_p12), %vm263_vm0, %v1831_v4 }
  0x2f PF: > { %v268_v5 = vld [vmem:[%s2182_s1] sm:$0xff]  ;;  %v269_v6 = vld [vmem:[%s2182_s1 + $0x8] sm:$0xff]  ;;  %v270_v7 = vld [vmem:[%s2182_s1 + $0x10] sm:$0xff]  ;;  %v1832_v8 = vmov 0.0|0.0   ;;  %vm1833_vm1 = vmmov 0   ;;  %v1834_v11 = vmov 0.0  }
  0x30   : > { %1576 = vmatprep.subr.bf16.mxu1 %v1832_v8  ;;  %v1946_v9 = vpack.c.bf16 %v269_v6, %v268_v5  ;;  %v271_v10 = vld [vmem:[%s2182_s1 + $0x18] sm:$0xff]  ;;  %1464 = vmatprep.mubr.msk.f32.mxu1 %vm1833_vm1, %v1834_v11  ;;  %v288_v13 = vld [vmem:[#allocation2] sm:$0xff]  ;;  %vm289_vm2 = vcmask 261120   ;;  %s1835_s10 = smov 64   ;;  %s1836_s11 = smov 32   ;;  %v273_v31 = vld [vmem:[%s2183_s2 + $0x8] sm:$0xff] }
  0x31   : > { %1594 = vmatprep.subr.bf16.mxu0 %v1832_v8  ;;  %1494 = vmatprep.mubr.msk.f32.mxu0 %vm1833_vm1, %v1834_v11  ;;  %v1957_v12 = vpack.c.bf16 %v271_v10, %v270_v7  ;;  %v287_v14 = vld [vmem:[%s1931_s25] sm:$0xff]  ;;  %v364_v19 = vld [vmem:[#allocation3] sm:$0xff]  ;;  %v275_v34 = vld [vmem:[%s2183_s2 + $0x18] sm:$0xff]  ;;  %s1837_s28 = smov 96   ;;  %vm409_vm3 = vcmask 523264  }
  0x32   : > { %1578 = vmatpush3.bf16.msra.mxu1 %v1946_v9  ;;  %1596 = vmatpush3.bf16.msra.mxu0 %v1946_v9  ;;  %v272_v30 = vld [vmem:[%s2183_s2] sm:$0xff]  ;;  %v274_v32 = vld [vmem:[%s2183_s2 + $0x10] sm:$0xff]  ;;  %v277_v37 = vld [vmem:[%s2183_s2 + $0x28] sm:$0xff] }
  0x33   : > { %1579 = vmatprep.subr.bf16.mxu1 %v1832_v8  ;;  %1597 = vmatprep.subr.bf16.mxu0 %v1832_v8  ;;  %v1982_v33 = vpack.c.bf16 %v273_v31, %v272_v30  ;;  %v1988_v35 = vpack.c.bf16 %v275_v34, %v274_v32  ;;  %v276_v36 = vld [vmem:[%s2183_s2 + $0x20] sm:$0xff]  ;;  %v278_v40 = vld [vmem:[%s2183_s2 + $0x30] sm:$0xff]  ;;  %v279_v41 = vld [vmem:[%s2183_s2 + $0x38] sm:$0xff] }
  0x34   : > { %v1999_v39 = vpack.c.bf16 %v277_v37, %v276_v36  ;;  %v2009_v42 = vpack.c.bf16 %v279_v41, %v278_v40  ;;  %v404_v45 = vld [vmem:[#allocation2 + $0x8] sm:$0xff]  ;;  %v2041_v51 = vld [vmem:[%s2184_s3] ss:$0 sm:$0xff]  ;;  %v484_v60 = vld [vmem:[#allocation3 + $0x8] sm:$0xff] }
  0x35   : > { %v1374_v55 = vld [vmem:[%s1931_s25 + $0x8] sm:$0xff]  ;;  %v1380_v41 = vld [vmem:[%s1931_s25 + $0x10] sm:$0xff] }
  0x36   : > { %1581 = vmatpush3.bf16.msra.mxu1 %v1957_v12  ;;  %1599 = vmatpush3.bf16.msra.mxu0 %v1957_v12 }
  0x37   : > { %1582 = vmatprep.subr.bf16.mxu1 %v1832_v8  ;;  %1600 = vmatprep.subr.bf16.mxu0 %v1832_v8 }
  0x39   : > { %1465 = vmatmul.mubr.msk.f32.vlgmr.msra.gmra.mrb[0].mxu1 %vm289_vm2, %v288_v13 }
  0x3a   : > { %1483 = vmatprep.mubr.msk.f32.mxu1 %vm1833_vm1, %v1834_v11  ;;  %1584 = vmatpush3.bf16.msra.mxu1 %v1982_v33 }
  0x3b   : > { %1585 = vmatprep.subr.bf16.mxu1 %v1832_v8 }
  0x3e   : > { %1587 = vmatpush3.bf16.msra.mxu1 %v1988_v35 }
  0x3f   : > { %1588 = vmatprep.subr.bf16.mxu1 %v1832_v8 }
  0x42   : > { %1590 = vmatpush3.bf16.msra.mxu1 %v1999_v39 }
  0x43   : > { %1591 = vmatprep.subr.bf16.mxu1 %v1832_v8 }
  0x46   : > { %1593 = vmatpush3.bf16.msra.mxu1 %v2009_v42 }
  0x47   : > { %1612 = vmatprep.subr.bf16.mxu1 %v1832_v8 }
 0x10c   : > { %v359_v15 = vpop.f32.mrb[0].mxu1 }
 0x10d   : > { %v363_v16 = vadd.f32 %v359_v15, %v287_v14  ;;  %v1466_v17 = vpop.f32.mrb[1].mxu1 }
 0x10f   : > { %1711 = vtanh.f32 %v363_v16  ;;  %v1371_v20 = vmul.f32 -1.442695, %v363_v16 }
 0x111   : > { %1713 = vpow2.f32 %v1371_v20 }
 0x119   : > { %v1712_v18 = vpop.eup %1711 }
 0x11a   : > { %378 = vrot.lane.b32.xlu0 %v1712_v18, %s1835_s10 }
 0x11b   : > { %v1714_v21 = vpop.eup %1713 }
 0x11c   : > { %v368_v22 = vadd.f32 1.0, %v1714_v21 }
 0x11e   : > { %373 = vrot.lane.b32.xlu0 %v364_v19, %s1836_s11  ;;  %1715 = vrcp.f32 %v368_v22 }
 0x128   : > { %v1716_v23 = vpop.eup %1715 }
 0x18c   : > { %v379_v24 = vpop.permute.xlu0 %378 }
 0x18d   : > { %v381_v25 = vmul.f32 %v1716_v23, %v379_v24 }
 0x18f   : > { %383 = vrot.lane.b32.xlu1 %v381_v25, %s1836_s11 }
 0x190   : > { %v374_v26 = vpop.permute.xlu0 %373 }
 0x191   : > { %v376_v27 = vmul.f32 %v1716_v23, %v374_v26 }
 0x201   : > { %v384_v28 = vpop.permute.xlu1 %383 }
 0x202   : > { %v386_v29 = vadd.f32 %v384_v28, %v376_v27 }
 0x204   : > { %1717 = vtanh.f32 %v386_v29 }
 0x20e   : > { %v1718_v38 = vpop.eup %1717 }
 0x20f   : > { %389 = vrot.lane.b32.xlu1 %v1718_v38, %s1835_s10 }
 0x281   : > { %v390_v43 = vpop.permute.xlu1 %389 }
 0x282   : > { %v392_v44 = vmul.f32 %v1716_v23, %v390_v43 }
 0x284   : > { %394 = vrot.lane.b32.xlu1 %v392_v44, %s1836_s11  ;;  %405 = vrot.lane.b32.xlu0 %v392_v44, %s1835_s10 }
 0x288   : > { %399 = vrot.lane.b32.xlu0 %v386_v29, %s1837_s28 }
 0x2f6   : > { %v395_v46 = vpop.permute.xlu1 %394  ;;  %v406_v47 = vpop.permute.xlu0 %405 }
 0x2f7   : > { %397 = vst.msk [vmem:[#allocation2] sm:$0xff] %vm289_vm2, %v395_v46  ;;  %v408_v48 = vsel %vm289_vm2, %v404_v45, %v406_v47 }
 0x2f8   : > { %1484 = vmatmul.mubr.msk.f32.vlgmr.msra.gmra.mrb[2].mxu1 %vm409_vm3, %v408_v48 }
 0x2f9   : > { %1614 = vmatpush3.bf16.msra.mxu1 %v1946_v9  ;;  %1524 = vmatprep.mubr.msk.f32.mxu1 %vm1833_vm1, %v1834_v11 }
 0x2fa   : > { %v400_v49 = vpop.permute.xlu0 %399  ;;  %1615 = vmatprep.subr.bf16.mxu1 %v1832_v8 }
 0x2fb   : > { %402 = vst.msk [vmem:[#allocation3] sm:$0xff] %vm289_vm2, %v400_v49 }
 0x2fd   : > { %1617 = vmatpush3.bf16.msra.mxu1 %v1957_v12 }
 0x2fe   : > { %v526_v50 = vld [vmem:[#allocation2] sm:$0xff]  ;;  %1618 = vmatprep.subr.bf16.mxu1 %v1832_v8 }
 0x2ff   : > { %1495 = vmatmul.mubr.msk.f32.vlgmr.msra.gmra.mrb[0].mxu0 %vm289_vm2, %v526_v50 }
 0x300   : > { %1602 = vmatpush3.bf16.msra.mxu0 %v1982_v33  ;;  %1513 = vmatprep.mubr.msk.f32.mxu0 %vm1833_vm1, %v1834_v11 }
 0x301   : > { %1603 = vmatprep.subr.bf16.mxu0 %v1832_v8 }
 0x302   : > { %v601_v62 = vld [vmem:[#allocation3] sm:$0xff] }
 0x304   : > { %1605 = vmatpush3.bf16.msra.mxu0 %v1988_v35 }
 0x305   : > { %1606 = vmatprep.subr.bf16.mxu0 %v1832_v8 }
 0x308   : > { %1608 = vmatpush3.bf16.msra.mxu0 %v1999_v39 }
 0x309   : > { %1609 = vmatprep.subr.bf16.mxu0 %v1832_v8 }
 0x30c   : > { %1611 = vmatpush3.bf16.msra.mxu0 %v2009_v42 }
 0x30d   : > { %1630 = vmatprep.subr.bf16.mxu0 %v1832_v8 }
 0x3cb   : > { %v479_v52 = vpop.f32.mrb[2].mxu1 }
 0x3cc   : > { %v480_v53 = vadd.f32 %v2041_v51, %v479_v52  ;;  %v1485_v54 = vpop.f32.mrb[3].mxu1 }
 0x3ce   : > { %1719 = vtanh.f32 %v480_v53  ;;  %v1373_v63 = vmul.f32 -1.442695, %v480_v53 }
 0x3d2   : > { %v596_v56 = vpop.f32.mrb[0].mxu0 }
 0x3d3   : > { %v600_v57 = vadd.f32 %v1374_v55, %v596_v56  ;;  %v1496_v58 = vpop.f32.mrb[1].mxu0 }
 0x3d5   : > { %1721 = vtanh.f32 %v600_v57  ;;  %v1376_v0 = vmul.f32 -1.442695, %v600_v57 }
 0x3d6   : > { %1723 = vpow2.f32 %v1373_v63 }
 0x3d7   : > { %1725 = vpow2.f32 %v1376_v0 }
 0x3d8   : > { %v1720_v59 = vpop.eup %1719 }
 0x3d9   : > { %498 = vrot.lane.b32.xlu1 %v1720_v59, %s1835_s10 }
 0x3dd   : > { %493 = vrot.lane.b32.xlu1 %v484_v60, %s1836_s11 }
 0x3df   : > { %v1722_v61 = vpop.eup %1721 }
 0x3e0   : > { %615 = vrot.lane.b32.xlu0 %v1722_v61, %s1835_s10  ;;  %v1724_v1 = vpop.eup %1723 }
 0x3e1   : > { %610 = vrot.lane.b32.xlu1 %v601_v62, %s1836_s11  ;;  %v488_v2 = vadd.f32 1.0, %v1724_v1  ;;  %v1726_v3 = vpop.eup %1725 }
 0x3e2   : > { %v605_v4 = vadd.f32 1.0, %v1726_v3 }
 0x3e3   : > { %1727 = vrcp.f32 %v488_v2 }
 0x3e4   : > { %1729 = vrcp.f32 %v605_v4 }
 0x3ed   : > { %v1728_v5 = vpop.eup %1727 }
 0x3ee   : > { %v1730_v10 = vpop.eup %1729 }
 0x44b   : > { %v499_v6 = vpop.permute.xlu1 %498 }
 0x44c   : > { %v501_v7 = vmul.f32 %v1728_v5, %v499_v6 }
 0x44e   : > { %503 = vrot.lane.b32.xlu0 %v501_v7, %s1836_s11 }
 0x44f   : > { %v494_v15 = vpop.permute.xlu1 %493 }
 0x450   : > { %v496_v16 = vmul.f32 %v1728_v5, %v494_v15 }
 0x452   : > { %v616_v13 = vpop.permute.xlu0 %615 }
 0x453   : > { %v618_v14 = vmul.f32 %v1730_v10, %v616_v13  ;;  %v611_v19 = vpop.permute.xlu1 %610 }
 0x454   : > { %v613_v20 = vmul.f32 %v1730_v10, %v611_v19 }
 0x455   : > { %620 = vrot.lane.b32.xlu0 %v618_v14, %s1836_s11 }
 0x4c0   : > { %v504_v17 = vpop.permute.xlu0 %503 }
 0x4c1   : > { %v506_v18 = vadd.f32 %v504_v17, %v496_v16 }
 0x4c3   : > { %1731 = vtanh.f32 %v506_v18 }
 0x4c7   : > { %v621_v21 = vpop.permute.xlu0 %620 }
 0x4c8   : > { %v623_v22 = vadd.f32 %v621_v21, %v613_v20 }
 0x4ca   : > { %1733 = vtanh.f32 %v623_v22 }
 0x4cd   : > { %v1732_v23 = vpop.eup %1731 }
 0x4ce   : > { %509 = vrot.lane.b32.xlu1 %v1732_v23, %s1835_s10 }
 0x4d4   : > { %v1734_v24 = vpop.eup %1733 }
 0x4d5   : > { %626 = vrot.lane.b32.xlu0 %v1734_v24, %s1835_s10 }
 0x540   : > { %v510_v25 = vpop.permute.xlu1 %509 }
 0x541   : > { %v512_v26 = vmul.f32 %v1728_v5, %v510_v25 }
 0x543   : > { %514 = vrot.lane.b32.xlu1 %v512_v26, %s1836_s11 }
 0x547   : > { %v627_v27 = vpop.permute.xlu0 %626 }
 0x548   : > { %v629_v28 = vmul.f32 %v1730_v10, %v627_v27 }
 0x54a   : > { %641 = vrot.lane.b32.xlu0 %v629_v28, %s1835_s10  ;;  %631 = vrot.lane.b32.xlu1 %v629_v28, %s1836_s11 }
 0x54e   : > { %519 = vrot.lane.b32.xlu0 %v506_v18, %s1837_s28  ;;  %636 = vrot.lane.b32.xlu1 %v623_v22, %s1837_s28 }
 0x5b5   : > { %v515_v29 = vpop.permute.xlu1 %514 }
 0x5b6   : > { %517 = vst.msk [vmem:[#allocation2 + $0x8] sm:$0xff] %vm289_vm2, %v515_v29  ;;  %523 = vst.msk [vmem:[%s1933_s27] sm:$0xff] %vm289_vm2, %v515_v29 }
 0x5bc   : > { %v642_v30 = vpop.permute.xlu0 %641  ;;  %v632_v31 = vpop.permute.xlu1 %631 }
 0x5bd   : > { %v640_v32 = vld [vmem:[#allocation2 + $0x8] sm:$0xff]  ;;  %634 = vst.msk [vmem:[#allocation2] sm:$0xff] %vm289_vm2, %v632_v31 }
 0x5be   : > { %v644_v34 = vsel %vm289_vm2, %v640_v32, %v642_v30 }
 0x5bf   : > { %1514 = vmatmul.mubr.msk.f32.vlgmr.msra.gmra.mrb[2].mxu0 %vm409_vm3, %v644_v34 }
 0x5c0   : > { %v520_v36 = vpop.permute.xlu0 %519  ;;  %v637_v37 = vpop.permute.xlu1 %636  ;;  %1632 = vmatpush3.bf16.msra.mxu0 %v1946_v9  ;;  %1554 = vmatprep.mubr.msk.f32.mxu0 %vm1833_vm1, %v1834_v11 }
 0x5c1   : > { %522 = vst.msk [vmem:[#allocation3 + $0x8] sm:$0xff] %vm289_vm2, %v520_v36  ;;  %639 = vst.msk [vmem:[#allocation3] sm:$0xff] %vm289_vm2, %v637_v37  ;;  %1633 = vmatprep.subr.bf16.mxu0 %v1832_v8 }
 0x5c4   : > { %v761_v38 = vld [vmem:[#allocation2] sm:$0xff]  ;;  %1635 = vmatpush3.bf16.msra.mxu0 %v1957_v12 }
 0x5c5   : > { %1525 = vmatmul.mubr.msk.f32.vlgmr.msra.gmra.mrb[4].mxu1 %vm289_vm2, %v761_v38  ;;  %1636 = vmatprep.subr.bf16.mxu0 %v1832_v8 }
 0x5c6   : > { %1620 = vmatpush3.bf16.msra.mxu1 %v1982_v33  ;;  %1543 = vmatprep.mubr.msk.f32.mxu1 %vm1833_vm1, %v1834_v11 }
 0x5c7   : > { %1621 = vmatprep.subr.bf16.mxu1 %v1832_v8 }
 0x5c8   : > { %v718_v47 = vld [vmem:[#allocation3 + $0x8] sm:$0xff]  ;;  %v836_v49 = vld [vmem:[#allocation3] sm:$0xff] }
 0x5ca   : > { %1623 = vmatpush3.bf16.msra.mxu1 %v1988_v35 }
 0x5cb   : > { %1624 = vmatprep.subr.bf16.mxu1 %v1832_v8 }
 0x5ce   : > { %1626 = vmatpush3.bf16.msra.mxu1 %v1999_v39 }
 0x5cf   : > { %1627 = vmatprep.subr.bf16.mxu1 %v1832_v8 }
 0x5d2   : > { %1629 = vmatpush3.bf16.msra.mxu1 %v2009_v42 }
 0x692   : > { %v714_v9 = vpop.f32.mrb[2].mxu0 }
 0x693   : > { %v715_v12 = vadd.f32 %v2041_v51, %v714_v9  ;;  %v1515_v40 = vpop.f32.mrb[3].mxu0 }
 0x695   : > { %1735 = vtanh.f32 %v715_v12  ;;  %v1378_v50 = vmul.f32 -1.442695, %v715_v12 }
 0x698   : > { %v831_v43 = vpop.f32.mrb[4].mxu1 }
 0x699   : > { %v835_v44 = vadd.f32 %v1380_v41, %v831_v43  ;;  %v1526_v45 = vpop.f32.mrb[5].mxu1 }
 0x69b   : > { %1737 = vtanh.f32 %v835_v44  ;;  %v1382_v52 = vmul.f32 -1.442695, %v835_v44 }
 0x69c   : > { %1739 = vpow2.f32 %v1378_v50 }
 0x69d   : > { %1741 = vpow2.f32 %v1382_v52 }
 0x69f   : > { %v1736_v46 = vpop.eup %1735 }
 0x6a0   : > { %732 = vrot.lane.b32.xlu0 %v1736_v46, %s1835_s10 }
 0x6a4   : > { %727 = vrot.lane.b32.xlu0 %v718_v47, %s1836_s11 }
 0x6a5   : > { %v1738_v48 = vpop.eup %1737 }
 0x6a6   : > { %850 = vrot.lane.b32.xlu1 %v1738_v48, %s1835_s10  ;;  %v1740_v53 = vpop.eup %1739 }
 0x6a7   : > { %v722_v54 = vadd.f32 1.0, %v1740_v53  ;;  %v1742_v55 = vpop.eup %1741 }
 0x6a8   : > { %845 = vrot.lane.b32.xlu0 %v836_v49, %s1836_s11  ;;  %v840_v56 = vadd.f32 1.0, %v1742_v55 }
 0x6a9   : > { %1743 = vrcp.f32 %v722_v54 }
 0x6aa   : > { %1745 = vrcp.f32 %v840_v56 }
 0x6b3   : > { %v1744_v57 = vpop.eup %1743 }
 0x6b4   : > { %v1746_v60 = vpop.eup %1745 }
 0x712   : > { %v733_v58 = vpop.permute.xlu0 %732 }
 0x713   : > { %v735_v59 = vmul.f32 %v1744_v57, %v733_v58 }
 0x715   : > { %737 = vrot.lane.b32.xlu1 %v735_v59, %s1836_s11 }
 0x716   : > { %v728_v63 = vpop.permute.xlu0 %727 }
 0x717   : > { %v730_v0 = vmul.f32 %v1744_v57, %v728_v63 }
 0x718   : > { %v851_v61 = vpop.permute.xlu1 %850 }
 0x719   : > { %v853_v62 = vmul.f32 %v1746_v60, %v851_v61 }
 0x71a   : > { %v846_v3 = vpop.permute.xlu0 %845 }
 0x71b   : > { %855 = vrot.lane.b32.xlu1 %v853_v62, %s1836_s11  ;;  %v848_v4 = vmul.f32 %v1746_v60, %v846_v3 }
 0x787   : > { %v738_v1 = vpop.permute.xlu1 %737 }
 0x788   : > { %v740_v2 = vadd.f32 %v738_v1, %v730_v0 }
 0x78a   : > { %1747 = vtanh.f32 %v740_v2 }
 0x78d   : > { %v856_v5 = vpop.permute.xlu1 %855 }
 0x78e   : > { %v858_v6 = vadd.f32 %v856_v5, %v848_v4 }
 0x790   : > { %1749 = vtanh.f32 %v858_v6 }
 0x794   : > { %v1748_v7 = vpop.eup %1747 }
 0x795   : > { %743 = vrot.lane.b32.xlu0 %v1748_v7, %s1835_s10 }
 0x79a   : > { %v1750_v10 = vpop.eup %1749 }
 0x79b   : > { %861 = vrot.lane.b32.xlu1 %v1750_v10, %s1835_s10 }
 0x807   : > { %v744_v13 = vpop.permute.xlu0 %743 }
 0x808   : > { %v746_v14 = vmul.f32 %v1744_v57, %v744_v13 }
 0x80a   : > { %748 = vrot.lane.b32.xlu0 %v746_v14, %s1836_s11 }
 0x80d   : > { %v862_v15 = vpop.permute.xlu1 %861 }
 0x80e   : > { %v864_v16 = vmul.f32 %v1746_v60, %v862_v15 }
 0x810   : > { %866 = vrot.lane.b32.xlu0 %v864_v16, %s1836_s11  ;;  %876 = vrot.lane.b32.xlu1 %v864_v16, %s1835_s10 }
 0x814   : > { %871 = vrot.lane.b32.xlu0 %v858_v6, %s1837_s28  ;;  %753 = vrot.lane.b32.xlu1 %v740_v2, %s1837_s28 }
 0x87c   : > { %v749_v17 = vpop.permute.xlu0 %748 }
 0x87d   : > { %751 = vst.msk [vmem:[#allocation2 + $0x8] sm:$0xff] %vm289_vm2, %v749_v17  ;;  %1379 = vst.msk [vmem:[%s1933_s27 + $0x8] sm:$0xff] %vm289_vm2, %v749_v17 }
 0x882   : > { %v867_v18 = vpop.permute.xlu0 %866  ;;  %v877_v19 = vpop.permute.xlu1 %876 }
 0x883   : > { %869 = vst.msk [vmem:[#allocation2] sm:$0xff] %vm289_vm2, %v867_v18 }
 0x884   : > { %v875_v20 = vld [vmem:[#allocation2 + $0x8] sm:$0xff] }
 0x885   : > { %v879_v21 = vsel %vm289_vm2, %v875_v20, %v877_v19 }
 0x886   : > { %v872_v22 = vpop.permute.xlu0 %871  ;;  %1544 = vmatmul.mubr.msk.f32.vlgmr.msra.gmra.mrb[6].mxu1 %vm409_vm3, %v879_v21  ;;  %v754_v23 = vpop.permute.xlu1 %753 }
 0x887   : > { %874 = vst.msk [vmem:[#allocation3] sm:$0xff] %vm289_vm2, %v872_v22  ;;  %756 = vst.msk [vmem:[#allocation3 + $0x8] sm:$0xff] %vm289_vm2, %v754_v23 }
 0x88a   : > { %v996_v24 = vld [vmem:[#allocation2] sm:$0xff] }
 0x88b   : > { %1555 = vmatmul.mubr.msk.f32.vlgmr.msra.gmra.mrb[4].mxu0 %vm289_vm2, %v996_v24 }
 0x88c   : > { %1638 = vmatpush3.bf16.msra.mxu0 %v1982_v33  ;;  %1573 = vmatprep.mubr.msk.f32.mxu0 %vm1833_vm1, %v1834_v11  ;;  %v1386_v33 = vld [vmem:[%s1931_s25 + $0x18] sm:$0xff]  ;;  %s1399_s25 = sshll.u32 (%p1911_p6), %s1813_s17, 3 }
 0x88d   : > { %1639 = vmatprep.subr.bf16.mxu0 %v1832_v8 }
 0x890   : > { %1641 = vmatpush3.bf16.msra.mxu0 %v1988_v35  ;;  %v953_v35 = vld [vmem:[#allocation3 + $0x8] sm:$0xff] }
 0x891   : > { %1642 = vmatprep.subr.bf16.mxu0 %v1832_v8 }
 0x894   : > { %1644 = vmatpush3.bf16.msra.mxu0 %v1999_v39 }
 0x895   : > { %1645 = vmatprep.subr.bf16.mxu0 %v1832_v8  ;;  %v1071_v8 = vld [vmem:[#allocation3] sm:$0xff] }
 0x898   : > { %1647 = vmatpush3.bf16.msra.mxu0 %v2009_v42 }
 0x959   : > { %v949_v25 = vpop.f32.mrb[6].mxu1 }
 0x95a   : > { %v950_v26 = vadd.f32 %v2041_v51, %v949_v25  ;;  %v1545_v27 = vpop.f32.mrb[7].mxu1  ;;  %v1274_v25 = vld [vmem:[%s1933_s27] sm:$0xff] (%p1911_p6) }
 0x95c   : > { %1751 = vtanh.f32 %v950_v26  ;;  %v1384_v39 = vmul.f32 -1.442695, %v950_v26  ;;  %v1276_v26 = vld [vmem:[%s1933_s27 + $0x8] sm:$0xff] (%p1911_p6) }
 0x95e   : > { %v1066_v28 = vpop.f32.mrb[4].mxu0 }
 0x95f   : > { %v1070_v11 = vadd.f32 %v1386_v33, %v1066_v28  ;;  %v1556_v29 = vpop.f32.mrb[5].mxu0 }
 0x961   : > { %1753 = vtanh.f32 %v1070_v11  ;;  %v1388_v42 = vmul.f32 -1.442695, %v1070_v11 }
 0x962   : > { %1755 = vpow2.f32 %v1384_v39 }
 0x963   : > { %1757 = vpow2.f32 %v1388_v42 }
 0x966   : > { %v1752_v30 = vpop.eup %1751 }
 0x967   : > { %967 = vrot.lane.b32.xlu1 %v1752_v30, %s1835_s10 }
 0x96b   : > { %v1754_v31 = vpop.eup %1753  ;;  %962 = vrot.lane.b32.xlu1 %v953_v35, %s1836_s11 }
 0x96c   : > { %1085 = vrot.lane.b32.xlu0 %v1754_v31, %s1835_s10  ;;  %v1756_v32 = vpop.eup %1755 }
 0x96d   : > { %v957_v34 = vadd.f32 1.0, %v1756_v32  ;;  %v1758_v36 = vpop.eup %1757 }
 0x96e   : > { %v1075_v37 = vadd.f32 1.0, %v1758_v36 }
 0x96f   : > { %1080 = vrot.lane.b32.xlu1 %v1071_v8, %s1836_s11  ;;  %1759 = vrcp.f32 %v957_v34 }
 0x970   : > { %1761 = vrcp.f32 %v1075_v37 }
 0x979   : > { %v1760_v38 = vpop.eup %1759 }
 0x97a   : > { %v1762_v40 = vpop.eup %1761 }
 0x9d9   : > { %v968_v9 = vpop.permute.xlu1 %967 }
 0x9da   : > { %v970_v12 = vmul.f32 %v1760_v38, %v968_v9 }
 0x9dc   : > { %972 = vrot.lane.b32.xlu0 %v970_v12, %s1836_s11 }
 0x9dd   : > { %v963_v44 = vpop.permute.xlu1 %962 }
 0x9de   : > { %v1086_v41 = vpop.permute.xlu0 %1085  ;;  %v965_v45 = vmul.f32 %v1760_v38, %v963_v44 }
 0x9df   : > { %v1088_v43 = vmul.f32 %v1762_v40, %v1086_v41 }
 0x9e1   : > { %1090 = vrot.lane.b32.xlu0 %v1088_v43, %s1836_s11  ;;  %v1081_v47 = vpop.permute.xlu1 %1080 }
 0x9e2   : > { %v1083_v49 = vmul.f32 %v1762_v40, %v1081_v47 }
 0xa4e   : > { %v973_v46 = vpop.permute.xlu0 %972 }
 0xa4f   : > { %v975_v48 = vadd.f32 %v973_v46, %v965_v45 }
 0xa51   : > { %1763 = vtanh.f32 %v975_v48 }
 0xa53   : > { %v1091_v50 = vpop.permute.xlu0 %1090 }
 0xa54   : > { %v1093_v52 = vadd.f32 %v1091_v50, %v1083_v49 }
 0xa56   : > { %1765 = vtanh.f32 %v1093_v52 }
 0xa5b   : > { %v1764_v53 = vpop.eup %1763 }
 0xa5c   : > { %978 = vrot.lane.b32.xlu1 %v1764_v53, %s1835_s10 }
 0xa60   : > { %v1766_v54 = vpop.eup %1765 }
 0xa61   : > { %1096 = vrot.lane.b32.xlu0 %v1766_v54, %s1835_s10 }
 0xace   : > { %v979_v55 = vpop.permute.xlu1 %978 }
 0xacf   : > { %v981_v56 = vmul.f32 %v1760_v38, %v979_v55 }
 0xad1   : > { %983 = vrot.lane.b32.xlu1 %v981_v56, %s1836_s11 }
 0xad3   : > { %v1097_v57 = vpop.permute.xlu0 %1096 }
 0xad4   : > { %v1099_v58 = vmul.f32 %v1762_v40, %v1097_v57 }
 0xad5   : > { %988 = vrot.lane.b32.xlu1 %v975_v48, %s1837_s28 }
 0xad6   : > { %1111 = vrot.lane.b32.xlu0 %v1099_v58, %s1835_s10 }
 0xb43   : > { %v984_v59 = vpop.permute.xlu1 %983 }
 0xb44   : > { %986 = vst.msk [vmem:[#allocation2 + $0x8] sm:$0xff] %vm289_vm2, %v984_v59  ;;  %1385 = vst.msk [vmem:[%s1933_s27 + $0x10] sm:$0xff] %vm289_vm2, %v984_v59 }
 0xb47   : > { %v989_v60 = vpop.permute.xlu1 %988 }
 0xb48   : > { %991 = vst.msk [vmem:[#allocation3 + $0x8] sm:$0xff] %vm289_vm2, %v989_v60  ;;  %v1112_v61 = vpop.permute.xlu0 %1111 }
 0xb4b   : > { %v1110_v62 = vld [vmem:[#allocation2 + $0x8] sm:$0xff]  ;;  %v1278_v27 = vld [vmem:[%s1933_s27 + $0x10] sm:$0xff] (%p1911_p6) }
 0xb4c   : > { %v1114_v63 = vsel %vm289_vm2, %v1110_v62, %v1112_v61 }
 0xb4d   : > { %1574 = vmatmul.mubr.msk.f32.vlgmr.msra.gmra.mrb[6].mxu0 %vm409_vm3, %v1114_v63 }
 0xb4f   : > { %v1188_v0 = vld [vmem:[#allocation3 + $0x8] sm:$0xff] }
 0xb50   : > { %1197 = vrot.lane.b32.xlu1 %v1188_v0, %s1836_s11 }
 0xbc2   : > { %v1198_v15 = vpop.permute.xlu1 %1197 }
 0xc20   : > { %v1184_v1 = vpop.f32.mrb[6].mxu0 }
 0xc21   : > { %v1185_v2 = vadd.f32 %v2041_v51, %v1184_v1  ;;  %v1575_v3 = vpop.f32.mrb[7].mxu0 }
 0xc23   : > { %1767 = vtanh.f32 %v1185_v2  ;;  %v1390_v5 = vmul.f32 -1.442695, %v1185_v2 }
 0xc25   : > { %1769 = vpow2.f32 %v1390_v5 }
 0xc2d   : > { %v1768_v4 = vpop.eup %1767 }
 0xc2e   : > { %1202 = vrot.lane.b32.xlu0 %v1768_v4, %s1835_s10 }
 0xc2f   : > { %v1770_v6 = vpop.eup %1769 }
 0xc30   : > { %v1192_v7 = vadd.f32 1.0, %v1770_v6 }
 0xc32   : > { %1771 = vrcp.f32 %v1192_v7 }
 0xc3c   : > { %v1772_v10 = vpop.eup %1771 }
 0xc3d   : > { %v1200_v16 = vmul.f32 %v1772_v10, %v1198_v15 }
 0xca0   : > { %v1203_v13 = vpop.permute.xlu0 %1202 }
 0xca1   : > { %v1205_v14 = vmul.f32 %v1772_v10, %v1203_v13 }
 0xca3   : > { %1207 = vrot.lane.b32.xlu0 %v1205_v14, %s1836_s11 }
 0xca7   : > { %1101 = vrot.lane.b32.xlu0 %v1099_v58, %s1836_s11 }
 0xd15   : > { %v1208_v51 = vpop.permute.xlu0 %1207 }
 0xd16   : > { %v1210_v17 = vadd.f32 %v1208_v51, %v1200_v16 }
 0xd18   : > { %1773 = vtanh.f32 %v1210_v17 }
 0xd19   : > { %v1102_v18 = vpop.permute.xlu0 %1101 }
 0xd1a   : > { %1104 = vst.msk [vmem:[#allocation2] sm:$0xff] %vm289_vm2, %v1102_v18 }
 0xd22   : > { %v1774_v19 = vpop.eup %1773 }
 0xd23   : > { %1213 = vrot.lane.b32.xlu1 %v1774_v19, %s1835_s10  ;;  %s1238_s10 = sadd.s32 (%p1911_p6), %s1817_s18, %s1399_s25 }
 0xd27   : > { %1106 = vrot.lane.b32.xlu1 %v1093_v52, %s1837_s28 }
 0xd2b   : > { %1223 = vrot.lane.b32.xlu1 %v1210_v17, %s1837_s28 }
 0xd95   : > { %v1214_v20 = vpop.permute.xlu1 %1213 }
 0xd96   : > { %v1216_v21 = vmul.f32 %v1772_v10, %v1214_v20 }
 0xd98   : > { %1218 = vrot.lane.b32.xlu0 %v1216_v21, %s1836_s11  ;;  %s1395_s11 = sshll.u32 (%p1911_p6), %s1238_s10, 3 }
 0xd99   : > { %v1107_v22 = vpop.permute.xlu1 %1106  ;;  %s1240_s7 = scalar_lea.vmem (%p1911_p6), %s2185_s4, %s1395_s11 }
 0xd9a   : > { %1109 = vst.msk [vmem:[#allocation3] sm:$0xff] %vm289_vm2, %v1107_v22  ;;  %1275 = vst [vmem:[%s1240_s7] sm:$0xff] (%p1911_p6), %v1274_v25 }
 0xd9b   : > { %1277 = vst [vmem:[%s1240_s7 + $0x10] sm:$0xff] (%p1911_p6), %v1276_v26  ;;  %1279 = vst [vmem:[%s1240_s7 + $0x20] sm:$0xff] (%p1911_p6), %v1278_v27 }
 0xd9d   : > { %v1224_v23 = vpop.permute.xlu1 %1223 }
 0xd9e   : > { %1226 = vst.msk [vmem:[#allocation3 + $0x8] sm:$0xff] %vm289_vm2, %v1224_v23 }
 0xe05   : > { %1235 = sbr.rel (!%p1911_p6) target bundleno = 3604 (0xe14), region = 82 }
 0xe0a   : > { %v1219_v24 = vpop.permute.xlu0 %1218 }
 0xe0b   : > { %1221 = vst.msk [vmem:[#allocation2 + $0x8] sm:$0xff] %vm289_vm2, %v1219_v24  ;;  %1391 = vst.msk [vmem:[%s1933_s27 + $0x18] sm:$0xff] %vm289_vm2, %v1219_v24 }
 0xe12   : > { %v1280_v33 = vld [vmem:[%s1933_s27 + $0x18] sm:$0xff] }
 0xe13   : > { %1281 = vst [vmem:[%s1240_s7 + $0x30] sm:$0xff] %v1280_v33 }
 0xe14 PF: > { %s14_s21 = sadd.s32 1, %s1829_s21   ;;  %s2187_s15 = smov %s1809_s16 }
 0xe15   : > { %p11_p13 = scmp.ge.s32.totalorder %s14_s21, 6   ;;  %s2188_s16 = smov %s1919_s30 }
 0xe16   : > { %s2189_s17 = smov %s1821_s19  ;;  %s2190_s18 = smov %s1825_s20 }
 0xe17   : > { %s2191_s19 = smov %s2194_s22  ;;  %s2192_s20 = smov %s2198_s23 }
 0xe18   :  { %13 = sbr.rel (!%p11_p13) target bundleno = 4 (0x4), region = 159 }

// kernel: lstm_nice_forward.3
= control target key start
LH: loop header
LB: loop body
LE: loop exit
PB: predicated region body
PF: predicated region fallthrough
CT: control target
= control target key end

     0   :  { %13 = vsyncpa [#allocation3], 0  ;;  %s5411_s0 = inlined_call_operand.vmem [shape: f32[128,32], index: 0, kind: input, shape index: {}]   ;;  %s5412_s1 = inlined_call_operand.vmem [shape: f32[128,32], index: 1, kind: input, shape index: {}]   ;;  %s5413_s2 = inlined_call_operand.vmem [shape: f32[4,48,64], index: 2, kind: input, shape index: {}]   ;;  %s5414_s3 = inlined_call_operand.vmem [shape: f32[4,1,64], index: 3, kind: input, shape index: {}]   ;;  %s5415_s4 = inlined_call_operand.vmem [shape: f32[4,2,64,64], index: 4, kind: input, shape index: {}]   ;;  %s5416_s5 = inlined_call_operand.vmem [shape: f32[4,2,1,64], index: 5, kind: input, shape index: {}]   ;;  %s5417_s6 = inlined_call_operand.vmem [shape: f32[4,64,16], index: 6, kind: input, shape index: {}]   ;;  %s5418_s7 = inlined_call_operand.vmem [shape: f32[4,1,16], index: 7, kind: input, shape index: {}]   ;;  %s5419_s8 = inlined_call_operand.hbm [shape: f32[128,32], index: 8, kind: output, shape index: {}]  }
   0x1   :  { %15 = vsyncpa [#allocation3 + $0x1], 0  ;;  %s4458_s27 = smov 0   ;;  %s4460_s28 = smov 0  }
   0x2   :  { %s4462_s29 = smov 0   ;;  %s4464_s30 = smov 0  }
   0x3 LB: > { %s4479_s9 = sadd.s32 4294967295, %s4406_s30   ;;  %s3103_s10 = sadd.s32 4294967294, %s4406_s30   ;;  %s4406_s30 = sphi %s4464_s30, %s5425_s30   ;;  %s4402_s29 = sphi %s4462_s29, %s5424_s29   ;;  %s4398_s28 = sphi %s4460_s28, %s5423_s28   ;;  %s4394_s27 = sphi %s4458_s27, %s5422_s27  }
   0x4   : > { %s4483_s11 = sadd.s32 1, %s4406_s30   ;;  %s206_s12 = sadd.s32 1, %s4402_s29 }
   0x5   : > { %s203_s13 = ssub.s32 %s4406_s30, %s4483_s11  ;;  %p216_p0 = scmp.ne.s32.totalorder %s4402_s29, %s4398_s28 }
   0x6   : > { %p204_p1 = scmp.eq.s32.totalorder %s203_s13, 0  ;;  %p217_p2 = scmp.eq.s32.totalorder %s4479_s9, 1 }
   0x7   : > { %p222_p3 = scmp.ne.s32.totalorder %s4398_s28, %s4394_s27  ;;  %p223_p4 = scmp.eq.s32.totalorder %s3103_s10, 1 }
   0x8   : > { %s4494_s14 = scalar_select %p204_p1, %s4402_s29, %s206_s12  }
   0x9   : > { %p4496_p5 = por %p217_p2, %p216_p0  ;;  %p4500_p6 = por %p223_p4, %p222_p3 }
   0xa   : > { %p3106_p7 = scmp.ge.s32.totalorder %s4406_s30, 1  ;;  %p277_p8 = scmp.lt.s32.totalorder %s4406_s30, 3 }
   0xc   : > { %p278_p9 = pnand %p3106_p7, %p277_p8 }
   0xd   : > { %s3108_s17 = sshll.u32 (!%p278_p9), %s4479_s9, 3  ;;  %v386_v0 = vld [vmem:[%s5413_s2] sm:$0xff] (!%p278_p9)  ;;  %v387_v1 = vld [vmem:[%s5413_s2 + $0x8] sm:$0xff] (!%p278_p9)  ;;  %v388_v2 = vld [vmem:[%s5413_s2 + $0x10] sm:$0xff] (!%p278_p9)  ;;  %s4408_s22 = smov (!%p278_p9), 16   ;;  %vm377_vm0 = vcmask (!%p278_p9), 130048  }
   0xe   : > { %281 = sbr.rel (%p278_p9) target bundleno = 4125 (0x101d), region = 52  ;;  %p317_p10 = scmp.lt.s32.totalorder (!%p278_p9), %s3108_s17, 15  ;;  %v4053_v3 = vpack.c.bf16 (!%p278_p9), %v387_v1, %v386_v0  ;;  %v389_v4 = vld [vmem:[%s5413_s2 + $0x18] sm:$0xff] (!%p278_p9)  ;;  %v390_v6 = vld [vmem:[%s5413_s2 + $0x20] sm:$0xff] (!%p278_p9)  ;;  %v391_v7 = vld [vmem:[%s5413_s2 + $0x28] sm:$0xff] (!%p278_p9)  ;;  %vm399_vm1 = vcmask (!%p278_p9), 392192  }
   0xf   : > { %v4057_v5 = vpack.c.bf16 (!%p278_p9), %v389_v4, %v388_v2  ;;  %v4061_v8 = vpack.c.bf16 (!%p278_p9), %v391_v7, %v390_v6  ;;  %v537_v15 = vld [vmem:[%s5415_s4] sm:$0xff] (!%p278_p9)  ;;  %v538_v16 = vld [vmem:[%s5415_s4 + $0x8] sm:$0xff] (!%p278_p9)  ;;  %v539_v17 = vld [vmem:[%s5415_s4 + $0x10] sm:$0xff] (!%p278_p9)  ;;  %vm552_vm2 = vcmask (!%p278_p9), 523264   ;;  %s313_s23 = sand.u32 (!%p278_p9), 1, %s4398_s28   ;;  %vm3006_vm3 = vcmask (!%p278_p9), 261120  }
  0x10   : > { %4054 = vmatprep.subr.bf16.mxu0 (!%p278_p9), %v4053_v3  ;;  %v4065_v18 = vpack.c.bf16 (!%p278_p9), %v538_v16, %v537_v15  ;;  %v540_v19 = vld [vmem:[%s5415_s4 + $0x18] sm:$0xff] (!%p278_p9)  ;;  %v541_v21 = vld [vmem:[%s5415_s4 + $0x20] sm:$0xff] (!%p278_p9)  ;;  %v542_v22 = vld [vmem:[%s5415_s4 + $0x28] sm:$0xff] (!%p278_p9)  ;;  %s3107_s24 = sshll.u32 (!%p278_p9), %s313_s23, 6  ;;  %s4410_s13 = smov (!%p278_p9), [#allocation2]  }
  0x11   : > { %4056 = vmatpush3.bf16.msra.mxu0 (!%p278_p9), %v4053_v3  ;;  %v4069_v20 = vpack.c.bf16 (!%p278_p9), %v540_v19, %v539_v17  ;;  %v4073_v25 = vpack.c.bf16 (!%p278_p9), %v542_v22, %v541_v21  ;;  %v543_v50 = vld [vmem:[%s5415_s4 + $0x30] sm:$0xff] (!%p278_p9)  ;;  %v544_v51 = vld [vmem:[%s5415_s4 + $0x38] sm:$0xff] (!%p278_p9)  ;;  %v3130_v53 = vld [vmem:[%s5415_s4 + $0x40] sm:$0xff] (!%p278_p9)  ;;  %s5318_s25 = scalar_lea.vmem (!%p278_p9), [#allocation2], %s3107_s24  ;;  %s4348_s19 = sshll.u32 (!%p278_p9), %s4410_s13, 4  ;;  %s4349_s19 = int_to_ptr.vmem [resolvable:$false] %s4348_s19 }
  0x12   : > { %4058 = vmatprep.subr.bf16.mxu0 (!%p278_p9), %v4057_v5  ;;  %4066 = vmatprep.subr.bf16.mxu1 (!%p278_p9), %v4065_v18  ;;  %v4077_v52 = vpack.c.bf16 (!%p278_p9), %v544_v51, %v543_v50  ;;  %v3131_v54 = vld [vmem:[%s5415_s4 + $0x48] sm:$0xff] (!%p278_p9)  ;;  %v3132_v55 = vld [vmem:[%s5415_s4 + $0x50] sm:$0xff] (!%p278_p9)  ;;  %v3133_v57 = vld [vmem:[%s5415_s4 + $0x58] sm:$0xff] (!%p278_p9)  ;;  %s4350_s20 = scalar_lea.vmem (!%p278_p9), %s4349_s19, 2048 }
  0x13   : > { %4068 = vmatpush3.bf16.msra.mxu1 (!%p278_p9), %v4065_v18  ;;  %v4081_v56 = vpack.c.bf16 (!%p278_p9), %v3131_v54, %v3130_v53  ;;  %v4085_v58 = vpack.c.bf16 (!%p278_p9), %v3133_v57, %v3132_v55  ;;  %v3134_v59 = vld [vmem:[%s5415_s4 + $0x60] sm:$0xff] (!%p278_p9)  ;;  %v3135_v60 = vld [vmem:[%s5415_s4 + $0x68] sm:$0xff] (!%p278_p9) }
  0x14   : > { %4070 = vmatprep.subr.bf16.mxu1 (!%p278_p9), %v4069_v20  ;;  %v4089_v61 = vpack.c.bf16 (!%p278_p9), %v3135_v60, %v3134_v59  ;;  %v3112_v62 = vld [vmem:[%s5414_s3] ss:$0 sm:$0xff] (!%p278_p9) }
  0x15   : > { %s5427_s17 = smov (!%p317_p10, %s3108_s17), 15  ;;  %4060 = vmatpush3.bf16.msra.mxu0 %v4057_v5  ;;  %v3121_v51 = vld [vmem:[%s5416_s5] ss:$0 sm:$0xff] }
  0x16   : > { %s3109_s18 = sshll.u32 %s5427_s17, 3  ;;  %4062 = vmatprep.subr.bf16.mxu0 %v4061_v8 }
  0x17   : > { %s4533_s21 = scalar_lea.vmem %s5412_s1, %s3109_s18  ;;  %4072 = vmatpush3.bf16.msra.mxu1 %v4069_v20  ;;  %s320_s12 = scalar_lea.vmem %s5411_s0, %s3109_s18 }
  0x18   : > { %v337_v9 = vld [vmem:[%s4533_s21] sm:$0xff]  ;;  %v339_v10 = vld [vmem:[%s4533_s21 + $0x10] sm:$0xff]  ;;  %v338_v11 = vld [vmem:[%s4533_s21 + $0x8] sm:$0xff]  ;;  %4074 = vmatprep.subr.bf16.mxu1 %v4073_v25  ;;  %s4409_s18 = smov 112  }
  0x19   : > { %353 = vrot.lane.b32.xlu0 %v337_v9, %s4408_s22  ;;  %357 = vrot.lane.b32.xlu1 %v339_v10, %s4408_s22  ;;  %v340_v12 = vld [vmem:[%s4533_s21 + $0x18] sm:$0xff]  ;;  %v341_v13 = vld [vmem:[%s4533_s21 + $0x20] sm:$0xff] }
  0x1a   : > { %v342_v14 = vld [vmem:[%s4533_s21 + $0x28] sm:$0xff]  ;;  %4064 = vmatpush3.bf16.msra.mxu0 %v4061_v8  ;;  %v343_v23 = vld [vmem:[%s4533_s21 + $0x30] sm:$0xff]  ;;  %v344_v24 = vld [vmem:[%s4533_s21 + $0x38] sm:$0xff] }
  0x1b   : > { %4076 = vmatpush3.bf16.msra.mxu1 %v4073_v25  ;;  %v4574_v26 = vld [vmem:[%s320_s12] sm:$0xff]  ;;  %v4583_v30 = vld [vmem:[%s320_s12 + $0x10] sm:$0xff]  ;;  %v4586_v31 = vld [vmem:[%s320_s12 + $0x8] sm:$0xff]  ;;  %4082 = vmatprep.subr.bf16.mxu0 %v4081_v56 }
  0x1c   : > { %v4595_v35 = vld [vmem:[%s320_s12 + $0x18] sm:$0xff]  ;;  %v4601_v37 = vld [vmem:[%s320_s12 + $0x20] sm:$0xff]  ;;  %v4611_v41 = vld [vmem:[%s320_s12 + $0x28] sm:$0xff]  ;;  %4078 = vmatprep.subr.bf16.mxu1 %v4077_v52 }
  0x1d   : > { %355 = vrot.lane.b32.xlu0 %v338_v11, %s4408_s22  ;;  %359 = vrot.lane.b32.xlu1 %v340_v12, %s4408_s22  ;;  %v4617_v43 = vld [vmem:[%s320_s12 + $0x30] sm:$0xff]  ;;  %v4627_v47 = vld [vmem:[%s320_s12 + $0x38] sm:$0xff]  ;;  %s5370_s12 = scalar_lea.sflag [#allocation3], %s313_s23 }
  0x1f   : > { %4080 = vmatpush3.bf16.msra.mxu1 %v4077_v52 }
  0x21   : > { %361 = vrot.lane.b32.xlu0 %v341_v13, %s4408_s22  ;;  %363 = vrot.lane.b32.xlu1 %v342_v14, %s4408_s22 }
  0x25   : > { %365 = vrot.lane.b32.xlu0 %v343_v23, %s4408_s22  ;;  %367 = vrot.lane.b32.xlu1 %v344_v24, %s4408_s22  ;;  %v3136_v23 = vld [vmem:[%s5415_s4 + $0x70] sm:$0xff]  ;;  %v3137_v24 = vld [vmem:[%s5415_s4 + $0x78] sm:$0xff] }
  0x26   : > { %v4093_v25 = vpack.c.bf16 %v3137_v24, %v3136_v23 }
  0x8b   : > { %v4576_v27 = vpop.permute.xlu0 %353  ;;  %v4578_v28 = vpop.permute.xlu1 %357 }
  0x8c   : > { %v378_v29 = vsel %vm377_vm0, %v4574_v26, %v4576_v27  ;;  %v380_v33 = vsel %vm377_vm0, %v4583_v30, %v4578_v28 }
  0x8d   : > { %3633 = vmatprep.mubr.msk.f32.mxu0 %vm399_vm1, %v378_v29  ;;  %v844_v29 = vld [vmem:[%s5417_s6] sm:$0xff] }
  0x8f   : > { %v4588_v32 = vpop.permute.xlu0 %355  ;;  %v4593_v34 = vpop.permute.xlu1 %359 }
  0x90   : > { %v379_v36 = vsel %vm377_vm0, %v4586_v31, %v4588_v32  ;;  %v381_v38 = vsel %vm377_vm0, %v4595_v35, %v4593_v34 }
  0x91   : > { %3634 = vmatmul.mubr.msk.f32.vlgmr.msra.gmra.mrb[0].mxu0 %vm399_vm1, %v379_v36  ;;  %v846_v36 = vld [vmem:[%s5417_s6 + $0x10] sm:$0xff] }
  0x92   : > { %3636 = vmatprep.mubr.msk.f32.mxu0 %vm399_vm1, %v380_v33  ;;  %4084 = vmatpush3.bf16.msra.mxu0 %v4081_v56  ;;  %v845_v33 = vld [vmem:[%s5417_s6 + $0x8] sm:$0xff] }
  0x93   : > { %v4607_v39 = vpop.permute.xlu0 %361  ;;  %v4609_v40 = vpop.permute.xlu1 %363  ;;  %4086 = vmatprep.subr.bf16.mxu0 %v4085_v58 }
  0x94   : > { %v382_v42 = vsel %vm377_vm0, %v4601_v37, %v4607_v39  ;;  %v383_v44 = vsel %vm377_vm0, %v4611_v41, %v4609_v40 }
  0x95   : > { %3637 = vmatmul.mubr.msk.f32.gmra.mrb[2].mxu0 %vm399_vm1, %v381_v38  ;;  %v4097_v38 = vpack.c.bf16 %v845_v33, %v844_v29 }
  0x96   : > { %3639 = vmatprep.mubr.msk.f32.mxu0 %vm399_vm1, %v382_v42  ;;  %4088 = vmatpush3.bf16.msra.mxu0 %v4085_v58  ;;  %v847_v42 = vld [vmem:[%s5417_s6 + $0x18] sm:$0xff] }
  0x97   : > { %v4623_v45 = vpop.permute.xlu0 %365  ;;  %v4625_v46 = vpop.permute.xlu1 %367  ;;  %4090 = vmatprep.subr.bf16.mxu0 %v4089_v61  ;;  %4098 = vmatprep.subr.bf16.mxu1 %v4097_v38 }
  0x98   : > { %v384_v48 = vsel %vm377_vm0, %v4617_v43, %v4623_v45  ;;  %v385_v49 = vsel %vm377_vm0, %v4627_v47, %v4625_v46 }
  0x99   : > { %3640 = vmatmul.mubr.msk.f32.gmra.mrb[4].mxu0 %vm399_vm1, %v383_v44  ;;  %v4101_v44 = vpack.c.bf16 %v847_v42, %v846_v36 }
  0x9a   : > { %3642 = vmatprep.mubr.msk.f32.mxu0 %vm399_vm1, %v384_v48  ;;  %4092 = vmatpush3.bf16.msra.mxu0 %v4089_v61  ;;  %v848_v48 = vld [vmem:[%s5417_s6 + $0x20] sm:$0xff] }
  0x9b   : > { %4094 = vmatprep.subr.bf16.mxu0 %v4093_v25 }
  0x9d   : > { %3643 = vmatmul.mubr.msk.f32.gmra.mrb[6].mxu0 %vm399_vm1, %v385_v49  ;;  %v849_v49 = vld [vmem:[%s5417_s6 + $0x28] sm:$0xff] }
  0x9e   : > { %4096 = vmatpush3.bf16.msra.mxu0 %v4093_v25  ;;  %v4105_v50 = vpack.c.bf16 %v849_v49, %v848_v48 }
 0x164   : > { %v3635_v63 = vpop.f32.mrb[0].mxu0 }
 0x165   : > { %v496_v0 = vadd.f32 %v3635_v63, %v3112_v62  ;;  %v490_v1 = vpop.f32.mrb[1].mxu0 }
 0x166   : > { %v491_v2 = vadd.f32 %v3112_v62, %v490_v1 }
 0x167   : > { %v530_v5 = vmax.f32 %v496_v0, 0.0 }
 0x168   : > { %v529_v3 = vmax.f32 %v491_v2, 0.0  ;;  %v3638_v4 = vpop.f32.mrb[2].mxu0 }
 0x169   : > { %v506_v6 = vadd.f32 %v3638_v4, %v3112_v62  ;;  %v500_v7 = vpop.f32.mrb[3].mxu0 }
 0x16a   : > { %v501_v8 = vadd.f32 %v3112_v62, %v500_v7  ;;  %3661 = vmatprep.mubr.msk.f32.mxu1 %vm552_vm2, %v529_v3 }
 0x16b   : > { %3662 = vmatmul.mubr.msk.f32.vlgmr.msra.gmra.mrb[0].mxu1 %vm552_vm2, %v530_v5  ;;  %v532_v11 = vmax.f32 %v506_v6, 0.0 }
 0x16c   : > { %v531_v9 = vmax.f32 %v501_v8, 0.0  ;;  %v3641_v10 = vpop.f32.mrb[4].mxu0  ;;  %4100 = vmatpush3.bf16.msra.mxu1 %v4097_v38 }
 0x16d   : > { %v516_v12 = vadd.f32 %v3641_v10, %v3112_v62  ;;  %v510_v13 = vpop.f32.mrb[5].mxu0  ;;  %4102 = vmatprep.subr.bf16.mxu1 %v4101_v44 }
 0x16e   : > { %v511_v14 = vadd.f32 %v3112_v62, %v510_v13  ;;  %3664 = vmatprep.mubr.msk.f32.mxu1 %vm552_vm2, %v531_v9  ;;  %v851_v13 = vld [vmem:[%s5417_s6 + $0x38] sm:$0xff] }
 0x16f   : > { %3665 = vmatmul.mubr.msk.f32.gmra.mrb[2].mxu1 %vm552_vm2, %v532_v11  ;;  %v534_v17 = vmax.f32 %v516_v12, 0.0  ;;  %v850_v12 = vld [vmem:[%s5417_s6 + $0x30] sm:$0xff] }
 0x170   : > { %v533_v15 = vmax.f32 %v511_v14, 0.0  ;;  %v3644_v16 = vpop.f32.mrb[6].mxu0  ;;  %4104 = vmatpush3.bf16.msra.mxu1 %v4101_v44  ;;  %v4109_v14 = vpack.c.bf16 %v851_v13, %v850_v12 }
 0x171   : > { %v526_v18 = vadd.f32 %v3644_v16, %v3112_v62  ;;  %v520_v19 = vpop.f32.mrb[7].mxu0  ;;  %4106 = vmatprep.subr.bf16.mxu1 %v4105_v50 }
 0x172   : > { %v521_v20 = vadd.f32 %v3112_v62, %v520_v19  ;;  %3667 = vmatprep.mubr.msk.f32.mxu1 %vm552_vm2, %v533_v15  ;;  %v3139_v15 = vld [vmem:[%s5416_s5 + $0x1] ss:$0 sm:$0xff] }
 0x173   : > { %3668 = vmatmul.mubr.msk.f32.gmra.mrb[4].mxu1 %vm552_vm2, %v534_v17  ;;  %v536_v22 = vmax.f32 %v526_v18, 0.0 }
 0x174   : > { %v535_v21 = vmax.f32 %v521_v20, 0.0  ;;  %4108 = vmatpush3.bf16.msra.mxu1 %v4105_v50 }
 0x175   : > { %4110 = vmatprep.subr.bf16.mxu1 %v4109_v14 }
 0x176   : > { %3670 = vmatprep.mubr.msk.f32.mxu1 %vm552_vm2, %v535_v21 }
 0x177   : > { %3671 = vmatmul.mubr.msk.f32.gmra.mrb[6].mxu1 %vm552_vm2, %v536_v22 }
 0x178   : > { %4112 = vmatpush3.bf16.msra.mxu1 %v4109_v14 }
 0x23e   : > { %v3663_v52 = vpop.f32.mrb[0].mxu1 }
 0x23f   : > { %v649_v53 = vadd.f32 %v3663_v52, %v3121_v51  ;;  %v643_v54 = vpop.f32.mrb[1].mxu1 }
 0x240   : > { %v644_v55 = vadd.f32 %v3121_v51, %v643_v54 }
 0x241   : > { %v683_v58 = vmax.f32 %v649_v53, 0.0 }
 0x242   : > { %v682_v56 = vmax.f32 %v644_v55, 0.0  ;;  %v3666_v57 = vpop.f32.mrb[2].mxu1 }
 0x243   : > { %v659_v59 = vadd.f32 %v3666_v57, %v3121_v51  ;;  %v653_v60 = vpop.f32.mrb[3].mxu1 }
 0x244   : > { %v654_v61 = vadd.f32 %v3121_v51, %v653_v60  ;;  %3689 = vmatprep.mubr.msk.f32.mxu0 %vm552_vm2, %v682_v56  ;;  %v3148_v56 = vld [vmem:[%s5418_s7] ss:$0 sm:$0xff] }
 0x245   : > { %3690 = vmatmul.mubr.msk.f32.vlgmr.msra.gmra.mrb[8].mxu0 %vm552_vm2, %v683_v58  ;;  %v685_v0 = vmax.f32 %v659_v59, 0.0 }
 0x246   : > { %v684_v62 = vmax.f32 %v654_v61, 0.0  ;;  %v3669_v63 = vpop.f32.mrb[4].mxu1 }
 0x247   : > { %v669_v1 = vadd.f32 %v3669_v63, %v3121_v51  ;;  %v663_v2 = vpop.f32.mrb[5].mxu1 }
 0x248   : > { %v664_v3 = vadd.f32 %v3121_v51, %v663_v2  ;;  %3692 = vmatprep.mubr.msk.f32.mxu0 %vm552_vm2, %v684_v62  ;;  %v3159_v2 = vld [vmem:[%s5413_s2 + $0x40] sm:$0xff] }
 0x249   : > { %3693 = vmatmul.mubr.msk.f32.gmra.mrb[10].mxu0 %vm552_vm2, %v685_v0  ;;  %v687_v6 = vmax.f32 %v669_v1, 0.0  ;;  %v3157_v0 = vld [vmem:[%s5413_s2 + $0x30] sm:$0xff]  ;;  %v3158_v1 = vld [vmem:[%s5413_s2 + $0x38] sm:$0xff] }
 0x24a   : > { %v686_v4 = vmax.f32 %v664_v3, 0.0  ;;  %v3672_v5 = vpop.f32.mrb[6].mxu1 }
 0x24b   : > { %v679_v7 = vadd.f32 %v3672_v5, %v3121_v51  ;;  %v673_v8 = vpop.f32.mrb[7].mxu1  ;;  %v3160_v5 = vld [vmem:[%s5413_s2 + $0x48] sm:$0xff] }
 0x24c   : > { %v674_v9 = vadd.f32 %v3121_v51, %v673_v8  ;;  %3695 = vmatprep.mubr.msk.f32.mxu0 %vm552_vm2, %v686_v4  ;;  %v4113_v4 = vpack.c.bf16 %v3158_v1, %v3157_v0  ;;  %v3162_v8 = vld [vmem:[%s5413_s2 + $0x58] sm:$0xff] }
 0x24d   : > { %3696 = vmatmul.mubr.msk.f32.gmra.mrb[12].mxu0 %vm552_vm2, %v687_v6  ;;  %v689_v11 = vmax.f32 %v679_v7, 0.0  ;;  %v4117_v6 = vpack.c.bf16 %v3160_v5, %v3159_v2  ;;  %v3161_v7 = vld [vmem:[%s5413_s2 + $0x50] sm:$0xff] }
 0x24e   : > { %v688_v10 = vmax.f32 %v674_v9, 0.0  ;;  %4114 = vmatprep.subr.bf16.mxu0 %v4113_v4  ;;  %v4121_v13 = vpack.c.bf16 %v3162_v8, %v3161_v7 }
 0x24f   : > { %4116 = vmatpush3.bf16.msra.mxu0 %v4113_v4 }
 0x250   : > { %3698 = vmatprep.mubr.msk.f32.mxu0 %vm552_vm2, %v688_v10  ;;  %4118 = vmatprep.subr.bf16.mxu0 %v4117_v6 }
 0x251   : > { %3699 = vmatmul.mubr.msk.f32.gmra.mrb[14].mxu0 %vm552_vm2, %v689_v11 }
 0x253   : > { %4120 = vmatpush3.bf16.msra.mxu0 %v4117_v6 }
 0x254   : > { %4122 = vmatprep.subr.bf16.mxu0 %v4121_v13 }
 0x257   : > { %4124 = vmatpush3.bf16.msra.mxu0 %v4121_v13 }
 0x318   : > { %v3691_v16 = vpop.f32.mrb[8].mxu0 }
 0x319   : > { %v803_v17 = vadd.f32 %v3691_v16, %v3139_v15  ;;  %v797_v18 = vpop.f32.mrb[9].mxu0 }
 0x31a   : > { %v798_v19 = vadd.f32 %v3139_v15, %v797_v18 }
 0x31b   : > { %v837_v22 = vmax.f32 %v803_v17, 0.0 }
 0x31c   : > { %v836_v20 = vmax.f32 %v798_v19, 0.0  ;;  %v3694_v21 = vpop.f32.mrb[10].mxu0 }
 0x31d   : > { %v813_v23 = vadd.f32 %v3694_v21, %v3139_v15  ;;  %v807_v24 = vpop.f32.mrb[11].mxu0 }
 0x31e   : > { %v808_v25 = vadd.f32 %v3139_v15, %v807_v24  ;;  %3717 = vmatprep.mubr.msk.f32.mxu1 %vm552_vm2, %v836_v20 }
 0x31f   : > { %3718 = vmatmul.mubr.msk.f32.vlgmr.msra.gmra.mrb[8].mxu1 %vm552_vm2, %v837_v22  ;;  %v839_v36 = vmax.f32 %v813_v23, 0.0 }
 0x320   : > { %v838_v29 = vmax.f32 %v808_v25, 0.0  ;;  %v3697_v33 = vpop.f32.mrb[12].mxu0  ;;  %v3173_v25 = vld [vmem:[%s5415_s4 + $0x80] sm:$0xff] }
 0x321   : > { %v823_v38 = vadd.f32 %v3697_v33, %v3139_v15  ;;  %v817_v42 = vpop.f32.mrb[13].mxu0  ;;  %v3175_v33 = vld [vmem:[%s5415_s4 + $0x90] sm:$0xff] }
 0x322   : > { %v818_v44 = vadd.f32 %v3139_v15, %v817_v42  ;;  %3720 = vmatprep.mubr.msk.f32.mxu1 %vm552_vm2, %v838_v29  ;;  %v3174_v29 = vld [vmem:[%s5415_s4 + $0x88] sm:$0xff]  ;;  %v3176_v42 = vld [vmem:[%s5415_s4 + $0x98] sm:$0xff] }
 0x323   : > { %3721 = vmatmul.mubr.msk.f32.gmra.mrb[10].mxu1 %vm552_vm2, %v839_v36  ;;  %v841_v50 = vmax.f32 %v823_v38, 0.0  ;;  %v4125_v38 = vpack.c.bf16 %v3174_v29, %v3173_v25  ;;  %v3164_v29 = vld [vmem:[%s5414_s3 + $0x1] ss:$0 sm:$0xff] }
 0x324   : > { %v840_v48 = vmax.f32 %v818_v44, 0.0  ;;  %v3700_v49 = vpop.f32.mrb[14].mxu0  ;;  %v4129_v44 = vpack.c.bf16 %v3176_v42, %v3175_v33 }
 0x325   : > { %v833_v51 = vadd.f32 %v3700_v49, %v3139_v15  ;;  %v827_v52 = vpop.f32.mrb[15].mxu0  ;;  %v3178_v49 = vld [vmem:[%s5415_s4 + $0xa8] sm:$0xff]  ;;  %4126 = vmatprep.subr.bf16.mxu1 %v4125_v38 }
 0x326   : > { %v828_v53 = vadd.f32 %v3139_v15, %v827_v52  ;;  %3723 = vmatprep.mubr.msk.f32.mxu1 %vm552_vm2, %v840_v48  ;;  %v3177_v48 = vld [vmem:[%s5415_s4 + $0xa0] sm:$0xff]  ;;  %4128 = vmatpush3.bf16.msra.mxu1 %v4125_v38 }
 0x327   : > { %3724 = vmatmul.mubr.msk.f32.gmra.mrb[12].mxu1 %vm552_vm2, %v841_v50  ;;  %v843_v55 = vmax.f32 %v833_v51, 0.0  ;;  %4130 = vmatprep.subr.bf16.mxu1 %v4129_v44 }
 0x328   : > { %v842_v54 = vmax.f32 %v828_v53, 0.0 }
 0x32a   : > { %3726 = vmatprep.mubr.msk.f32.mxu1 %vm552_vm2, %v842_v54  ;;  %v4133_v54 = vpack.c.bf16 %v3178_v49, %v3177_v48  ;;  %4132 = vmatpush3.bf16.msra.mxu1 %v4129_v44 }
 0x32b   : > { %3727 = vmatmul.mubr.msk.f32.gmra.mrb[14].mxu1 %vm552_vm2, %v843_v55 }
 0x32c   : > { %4134 = vmatprep.subr.bf16.mxu1 %v4133_v54 }
 0x32e   : > { %4136 = vmatpush3.bf16.msra.mxu1 %v4133_v54 }
 0x3f2   : > { %v3719_v57 = vpop.f32.mrb[8].mxu1 }
 0x3f3   : > { %v955_v58 = vadd.f32 %v3719_v57, %v3148_v56  ;;  %v949_v59 = vpop.f32.mrb[9].mxu1 }
 0x3f4   : > { %v950_v60 = vadd.f32 %v3148_v56, %v949_v59 }
 0x3f5   : > { %998 = vrot.lane.b32.xlu1 %v955_v58, %s4408_s22 }
 0x3f6   : > { %v3722_v61 = vpop.f32.mrb[10].mxu1  ;;  %996 = vrot.lane.b32.xlu0 %v950_v60, %s4408_s22 }
 0x3f7   : > { %v965_v62 = vadd.f32 %v3722_v61, %v3148_v56  ;;  %v959_v63 = vpop.f32.mrb[11].mxu1 }
 0x3f8   : > { %v960_v3 = vadd.f32 %v3148_v56, %v959_v63 }
 0x3f9   : > { %1002 = vrot.lane.b32.xlu1 %v965_v62, %s4408_s22 }
 0x3fa   : > { %v3725_v9 = vpop.f32.mrb[12].mxu1  ;;  %1000 = vrot.lane.b32.xlu0 %v960_v3, %s4408_s22 }
 0x3fb   : > { %v975_v10 = vadd.f32 %v3725_v9, %v3148_v56  ;;  %v969_v11 = vpop.f32.mrb[13].mxu1 }
 0x3fc   : > { %v970_v12 = vadd.f32 %v3148_v56, %v969_v11  ;;  %v3179_v11 = vld [vmem:[%s5415_s4 + $0xb0] sm:$0xff] }
 0x3fd   : > { %1006 = vrot.lane.b32.xlu1 %v975_v10, %s4408_s22 }
 0x3fe   : > { %v3728_v14 = vpop.f32.mrb[14].mxu1  ;;  %1004 = vrot.lane.b32.xlu0 %v970_v12, %s4408_s22  ;;  %v3180_v12 = vld [vmem:[%s5415_s4 + $0xb8] sm:$0xff] }
 0x3ff   : > { %v985_v15 = vadd.f32 %v3728_v14, %v3148_v56  ;;  %v979_v16 = vpop.f32.mrb[15].mxu1  ;;  %v4137_v13 = vpack.c.bf16 %v3180_v12, %v3179_v11  ;;  %v3191_v14 = vld [vmem:[%s5415_s4 + $0xc0] sm:$0xff]  ;;  %v3210_v12 = vld [vmem:[%s5417_s6 + $0x48] sm:$0xff] }
 0x400   : > { %v980_v17 = vadd.f32 %v3148_v56, %v979_v16  ;;  %v3193_v16 = vld [vmem:[%s5415_s4 + $0xd0] sm:$0xff]  ;;  %v3209_v11 = vld [vmem:[%s5417_s6 + $0x40] sm:$0xff] }
 0x401   : > { %1010 = vrot.lane.b32.xlu1 %v985_v15, %s4408_s22  ;;  %4138 = vmatprep.subr.bf16.mxu1 %v4137_v13  ;;  %v3192_v15 = vld [vmem:[%s5415_s4 + $0xc8] sm:$0xff] }
 0x402   : > { %1008 = vrot.lane.b32.xlu0 %v980_v17, %s4408_s22  ;;  %4140 = vmatpush3.bf16.msra.mxu1 %v4137_v13  ;;  %v4141_v17 = vpack.c.bf16 %v3192_v15, %v3191_v14  ;;  %v3211_v13 = vld [vmem:[%s5417_s6 + $0x50] sm:$0xff]  ;;  %v4157_v14 = vpack.c.bf16 %v3210_v12, %v3209_v11  ;;  %v3212_v15 = vld [vmem:[%s5417_s6 + $0x58] sm:$0xff] }
 0x403   : > { %v3230_v12 = vld [vmem:[%s5413_s2 + $0x78] sm:$0xff] }
 0x404   : > { %4142 = vmatprep.subr.bf16.mxu0 %v4141_v17  ;;  %4158 = vmatprep.subr.bf16.mxu1 %v4157_v14 }
 0x467   : > { %v999_v18 = vpop.permute.xlu1 %998 }
 0x468   : > { %v4755_v19 = vadd.f32 %v999_v18, %v4586_v31  ;;  %v997_v20 = vpop.permute.xlu0 %996  ;;  %v3194_v18 = vld [vmem:[%s5415_s4 + $0xd8] sm:$0xff] }
 0x469   : > { %v4758_v21 = vadd.f32 %v997_v20, %v4574_v26  ;;  %v4145_v20 = vpack.c.bf16 %v3194_v18, %v3193_v16  ;;  %v4161_v16 = vpack.c.bf16 %v3212_v15, %v3211_v13  ;;  %v3214_v18 = vld [vmem:[%s5417_s6 + $0x68] sm:$0xff] }
 0x46a   : > { %1038 = vrot.lane.b32.xlu1 %v4755_v19, %s4409_s18 }
 0x46b   : > { %v1003_v22 = vpop.permute.xlu1 %1002  ;;  %1036 = vrot.lane.b32.xlu0 %v4758_v21, %s4409_s18 }
 0x46c   : > { %v4765_v23 = vadd.f32 %v1003_v22, %v4595_v35  ;;  %v1001_v24 = vpop.permute.xlu0 %1000  ;;  %v3195_v22 = vld [vmem:[%s5415_s4 + $0xe0] sm:$0xff] }
 0x46d   : > { %v4777_v36 = vadd.f32 %v1001_v24, %v4583_v30  ;;  %v3196_v24 = vld [vmem:[%s5415_s4 + $0xe8] sm:$0xff] }
 0x46e   : > { %1042 = vrot.lane.b32.xlu1 %v4765_v23, %s4409_s18  ;;  %v4149_v25 = vpack.c.bf16 %v3196_v24, %v3195_v22  ;;  %v3182_v22 = vld [vmem:[%s5416_s5 + $0x2] ss:$0 sm:$0xff] }
 0x46f   : > { %v1007_v50 = vpop.permute.xlu1 %1006  ;;  %1040 = vrot.lane.b32.xlu0 %v4777_v36, %s4409_s18 }
 0x470   : > { %v4793_v51 = vadd.f32 %v1007_v50, %v4611_v41  ;;  %v1005_v52 = vpop.permute.xlu0 %1004 }
 0x471   : > { %v4796_v53 = vadd.f32 %v1005_v52, %v4601_v37 }
 0x472   : > { %1046 = vrot.lane.b32.xlu1 %v4793_v51, %s4409_s18 }
 0x473   : > { %v1011_v55 = vpop.permute.xlu1 %1010  ;;  %1044 = vrot.lane.b32.xlu0 %v4796_v53, %s4409_s18 }
 0x474   : > { %v4803_v56 = vadd.f32 %v1011_v55, %v4627_v47  ;;  %v1009_v57 = vpop.permute.xlu0 %1008 }
 0x475   : > { %v4806_v58 = vadd.f32 %v1009_v57, %v4617_v43 }
 0x476   : > { %1050 = vrot.lane.b32.xlu1 %v4803_v56, %s4409_s18 }
 0x477   : > { %1048 = vrot.lane.b32.xlu0 %v4806_v58, %s4409_s18 }
 0x4dc   : > { %v1039_v59 = vpop.permute.xlu1 %1038 }
 0x4dd   : > { %v1037_v60 = vpop.permute.xlu0 %1036  ;;  %v1061_v62 = vsel %vm377_vm0, %v1039_v59, %v4588_v32 }
 0x4de   : > { %v1060_v61 = vsel %vm377_vm0, %v1037_v60, %v4576_v27 }
 0x4df   : > { %3741 = vmatprep.mubr.msk.f32.mxu0 %vm399_vm1, %v1060_v61 }
 0x4e0   : > { %v1043_v63 = vpop.permute.xlu1 %1042  ;;  %3742 = vmatmul.mubr.msk.f32.vlgmr.msra.gmra.mrb[16].mxu0 %vm399_vm1, %v1061_v62 }
 0x4e1   : > { %v1041_v0 = vpop.permute.xlu0 %1040  ;;  %v1063_v2 = vsel %vm377_vm0, %v1043_v63, %v4593_v34  ;;  %4144 = vmatpush3.bf16.msra.mxu0 %v4141_v17  ;;  %v3213_v17 = vld [vmem:[%s5417_s6 + $0x60] sm:$0xff] }
 0x4e2   : > { %v1062_v1 = vsel %vm377_vm0, %v1041_v0, %v4578_v28  ;;  %4146 = vmatprep.subr.bf16.mxu0 %v4145_v20 }
 0x4e3   : > { %3744 = vmatprep.mubr.msk.f32.mxu0 %vm399_vm1, %v1062_v1 }
 0x4e4   : > { %v1047_v3 = vpop.permute.xlu1 %1046  ;;  %3745 = vmatmul.mubr.msk.f32.gmra.mrb[18].mxu0 %vm399_vm1, %v1063_v2 }
 0x4e5   : > { %v1045_v4 = vpop.permute.xlu0 %1044  ;;  %v1065_v6 = vsel %vm377_vm0, %v1047_v3, %v4609_v40  ;;  %4148 = vmatpush3.bf16.msra.mxu0 %v4145_v20  ;;  %v4165_v20 = vpack.c.bf16 %v3214_v18, %v3213_v17 }
 0x4e6   : > { %v1064_v5 = vsel %vm377_vm0, %v1045_v4, %v4607_v39  ;;  %4150 = vmatprep.subr.bf16.mxu0 %v4149_v25 }
 0x4e7   : > { %3747 = vmatprep.mubr.msk.f32.mxu0 %vm399_vm1, %v1064_v5 }
 0x4e8   : > { %v1051_v7 = vpop.permute.xlu1 %1050  ;;  %3748 = vmatmul.mubr.msk.f32.gmra.mrb[20].mxu0 %vm399_vm1, %v1065_v6 }
 0x4e9   : > { %v1049_v8 = vpop.permute.xlu0 %1048  ;;  %v1067_v10 = vsel %vm377_vm0, %v1051_v7, %v4625_v46  ;;  %4152 = vmatpush3.bf16.msra.mxu0 %v4149_v25 }
 0x4ea   : > { %v1066_v9 = vsel %vm377_vm0, %v1049_v8, %v4623_v45  ;;  %v3197_v8 = vld [vmem:[%s5415_s4 + $0xf0] sm:$0xff] }
 0x4eb   : > { %3750 = vmatprep.mubr.msk.f32.mxu0 %vm399_vm1, %v1066_v9  ;;  %v3198_v9 = vld [vmem:[%s5415_s4 + $0xf8] sm:$0xff] }
 0x4ec   : > { %3751 = vmatmul.mubr.msk.f32.gmra.mrb[22].mxu0 %vm399_vm1, %v1067_v10  ;;  %v4153_v10 = vpack.c.bf16 %v3198_v9, %v3197_v8  ;;  %v3227_v8 = vld [vmem:[%s5413_s2 + $0x60] sm:$0xff]  ;;  %v3228_v9 = vld [vmem:[%s5413_s2 + $0x68] sm:$0xff] }
 0x4ed   : > { %v4173_v11 = vpack.c.bf16 %v3228_v9, %v3227_v8  ;;  %v3247_v8 = vld [vmem:[%s5415_s4 + $0x120] sm:$0xff]  ;;  %v3248_v9 = vld [vmem:[%s5415_s4 + $0x128] sm:$0xff] }
 0x4ee   : > { %4154 = vmatprep.subr.bf16.mxu0 %v4153_v10 }
 0x4ef   : > { %4156 = vmatpush3.bf16.msra.mxu0 %v4153_v10  ;;  %v3229_v10 = vld [vmem:[%s5413_s2 + $0x70] sm:$0xff] }
 0x4f0   : > { %v4177_v13 = vpack.c.bf16 %v3230_v12, %v3229_v10  ;;  %4174 = vmatprep.subr.bf16.mxu0 %v4173_v11  ;;  %v4193_v10 = vpack.c.bf16 %v3248_v9, %v3247_v8  ;;  %v3234_v8 = vld [vmem:[%s5414_s3 + $0x2] ss:$0 sm:$0xff] }
 0x5b3   : > { %v3743_v33 = vpop.f32.mrb[16].mxu0 }
 0x5b4   : > { %v1179_v38 = vadd.f32 %v3743_v33, %v3164_v29  ;;  %v1173_v42 = vpop.f32.mrb[17].mxu0 }
 0x5b5   : > { %v1174_v44 = vadd.f32 %v3164_v29, %v1173_v42 }
 0x5b6   : > { %v1213_v50 = vmax.f32 %v1179_v38, 0.0 }
 0x5b7   : > { %v1212_v48 = vmax.f32 %v1174_v44, 0.0  ;;  %v3746_v49 = vpop.f32.mrb[18].mxu0 }
 0x5b8   : > { %v1189_v52 = vadd.f32 %v3746_v49, %v3164_v29  ;;  %v1183_v54 = vpop.f32.mrb[19].mxu0 }
 0x5b9   : > { %v1184_v55 = vadd.f32 %v3164_v29, %v1183_v54  ;;  %3769 = vmatprep.mubr.msk.f32.mxu1 %vm552_vm2, %v1212_v48 }
 0x5ba   : > { %3770 = vmatmul.mubr.msk.f32.vlgmr.msra.gmra.mrb[16].mxu1 %vm552_vm2, %v1213_v50  ;;  %v1215_v60 = vmax.f32 %v1189_v52, 0.0 }
 0x5bb   : > { %v1214_v57 = vmax.f32 %v1184_v55, 0.0  ;;  %v3749_v59 = vpop.f32.mrb[20].mxu0  ;;  %4160 = vmatpush3.bf16.msra.mxu1 %v4157_v14  ;;  %v3200_v14 = vld [vmem:[%s5416_s5 + $0x3] ss:$0 sm:$0xff] }
 0x5bc   : > { %v1199_v61 = vadd.f32 %v3749_v59, %v3164_v29  ;;  %v1193_v62 = vpop.f32.mrb[21].mxu0  ;;  %4162 = vmatprep.subr.bf16.mxu1 %v4161_v16 }
 0x5bd   : > { %v1194_v63 = vadd.f32 %v3164_v29, %v1193_v62  ;;  %3772 = vmatprep.mubr.msk.f32.mxu1 %vm552_vm2, %v1214_v57 }
 0x5be   : > { %3773 = vmatmul.mubr.msk.f32.gmra.mrb[18].mxu1 %vm552_vm2, %v1215_v60  ;;  %v1217_v2 = vmax.f32 %v1199_v61, 0.0 }
 0x5bf   : > { %v1216_v0 = vmax.f32 %v1194_v63, 0.0  ;;  %v3752_v1 = vpop.f32.mrb[22].mxu0  ;;  %4164 = vmatpush3.bf16.msra.mxu1 %v4161_v16 }
 0x5c0   : > { %v1209_v3 = vadd.f32 %v3752_v1, %v3164_v29  ;;  %v1203_v4 = vpop.f32.mrb[23].mxu0  ;;  %4166 = vmatprep.subr.bf16.mxu1 %v4165_v20 }
 0x5c1   : > { %v1204_v5 = vadd.f32 %v3164_v29, %v1203_v4  ;;  %3775 = vmatprep.mubr.msk.f32.mxu1 %vm552_vm2, %v1216_v0 }
 0x5c2   : > { %3776 = vmatmul.mubr.msk.f32.gmra.mrb[20].mxu1 %vm552_vm2, %v1217_v2  ;;  %v1219_v7 = vmax.f32 %v1209_v3, 0.0 }
 0x5c3   : > { %v1218_v6 = vmax.f32 %v1204_v5, 0.0  ;;  %4168 = vmatpush3.bf16.msra.mxu1 %v4165_v20  ;;  %v3215_v5 = vld [vmem:[%s5417_s6 + $0x70] sm:$0xff] }
 0x5c5   : > { %3778 = vmatprep.mubr.msk.f32.mxu1 %vm552_vm2, %v1218_v6  ;;  %v3216_v6 = vld [vmem:[%s5417_s6 + $0x78] sm:$0xff] }
 0x5c6   : > { %3779 = vmatmul.mubr.msk.f32.gmra.mrb[22].mxu1 %vm552_vm2, %v1219_v7  ;;  %v4169_v7 = vpack.c.bf16 %v3216_v6, %v3215_v5  ;;  %v3246_v6 = vld [vmem:[%s5415_s4 + $0x118] sm:$0xff] }
 0x5c8   : > { %4170 = vmatprep.subr.bf16.mxu1 %v4169_v7 }
 0x5c9   : > { %4172 = vmatpush3.bf16.msra.mxu1 %v4169_v7 }
 0x68d   : > { %v3771_v24 = vpop.f32.mrb[16].mxu1 }
 0x68e   : > { %v1333_v25 = vadd.f32 %v3771_v24, %v3182_v22  ;;  %v1327_v29 = vpop.f32.mrb[17].mxu1 }
 0x68f   : > { %v1328_v33 = vadd.f32 %v3182_v22, %v1327_v29 }
 0x690   : > { %v1367_v44 = vmax.f32 %v1333_v25, 0.0 }
 0x691   : > { %v1366_v38 = vmax.f32 %v1328_v33, 0.0  ;;  %v3774_v42 = vpop.f32.mrb[18].mxu1 }
 0x692   : > { %v1343_v48 = vadd.f32 %v3774_v42, %v3182_v22  ;;  %v1337_v49 = vpop.f32.mrb[19].mxu1 }
 0x693   : > { %v1338_v50 = vadd.f32 %v3182_v22, %v1337_v49  ;;  %3797 = vmatprep.mubr.msk.f32.mxu0 %vm552_vm2, %v1366_v38 }
 0x694   : > { %3798 = vmatmul.mubr.msk.f32.vlgmr.msra.gmra.mrb[24].mxu0 %vm552_vm2, %v1367_v44  ;;  %v1369_v55 = vmax.f32 %v1343_v48, 0.0 }
 0x695   : > { %v1368_v52 = vmax.f32 %v1338_v50, 0.0  ;;  %v3777_v54 = vpop.f32.mrb[20].mxu1  ;;  %4176 = vmatpush3.bf16.msra.mxu0 %v4173_v11  ;;  %v3218_v11 = vld [vmem:[%s5418_s7 + $0x1] ss:$0 sm:$0xff] }
 0x696   : > { %v1353_v57 = vadd.f32 %v3777_v54, %v3182_v22  ;;  %v1347_v59 = vpop.f32.mrb[21].mxu1  ;;  %4178 = vmatprep.subr.bf16.mxu0 %v4177_v13 }
 0x697   : > { %v1348_v60 = vadd.f32 %v3182_v22, %v1347_v59  ;;  %3800 = vmatprep.mubr.msk.f32.mxu0 %vm552_vm2, %v1368_v52 }
 0x698   : > { %3801 = vmatmul.mubr.msk.f32.gmra.mrb[26].mxu0 %vm552_vm2, %v1369_v55  ;;  %v1371_v63 = vmax.f32 %v1353_v57, 0.0 }
 0x699   : > { %v1370_v61 = vmax.f32 %v1348_v60, 0.0  ;;  %v3780_v62 = vpop.f32.mrb[22].mxu1  ;;  %4180 = vmatpush3.bf16.msra.mxu0 %v4177_v13 }
 0x69a   : > { %v1363_v0 = vadd.f32 %v3780_v62, %v3182_v22  ;;  %v1357_v1 = vpop.f32.mrb[23].mxu1 }
 0x69b   : > { %v1358_v2 = vadd.f32 %v3182_v22, %v1357_v1  ;;  %3803 = vmatprep.mubr.msk.f32.mxu0 %vm552_vm2, %v1370_v61 }
 0x69c   : > { %3804 = vmatmul.mubr.msk.f32.gmra.mrb[28].mxu0 %vm552_vm2, %v1371_v63  ;;  %v1373_v4 = vmax.f32 %v1363_v0, 0.0  ;;  %v3231_v63 = vld [vmem:[%s5413_s2 + $0x80] sm:$0xff]  ;;  %v3232_v0 = vld [vmem:[%s5413_s2 + $0x88] sm:$0xff] }
 0x69d   : > { %v1372_v3 = vmax.f32 %v1358_v2, 0.0  ;;  %v4181_v1 = vpack.c.bf16 %v3232_v0, %v3231_v63  ;;  %v3243_v2 = vld [vmem:[%s5415_s4 + $0x100] sm:$0xff]  ;;  %v3262_v0 = vld [vmem:[%s5415_s4 + $0x148] sm:$0xff] }
 0x69e   : > { %v3261_v63 = vld [vmem:[%s5415_s4 + $0x140] sm:$0xff] }
 0x69f   : > { %3806 = vmatprep.mubr.msk.f32.mxu0 %vm552_vm2, %v1372_v3  ;;  %4182 = vmatprep.subr.bf16.mxu0 %v4181_v1  ;;  %v3244_v3 = vld [vmem:[%s5415_s4 + $0x108] sm:$0xff] }
 0x6a0   : > { %3807 = vmatmul.mubr.msk.f32.gmra.mrb[30].mxu0 %vm552_vm2, %v1373_v4  ;;  %v3245_v4 = vld [vmem:[%s5415_s4 + $0x110] sm:$0xff]  ;;  %v4185_v5 = vpack.c.bf16 %v3244_v3, %v3243_v2  ;;  %v4201_v2 = vpack.c.bf16 %v3262_v0, %v3261_v63  ;;  %v3264_v3 = vld [vmem:[%s5415_s4 + $0x158] sm:$0xff] }
 0x6a1   : > { %4184 = vmatpush3.bf16.msra.mxu0 %v4181_v1  ;;  %v4189_v7 = vpack.c.bf16 %v3246_v6, %v3245_v4  ;;  %v3263_v1 = vld [vmem:[%s5415_s4 + $0x150] sm:$0xff]  ;;  %v3266_v6 = vld [vmem:[%s5415_s4 + $0x168] sm:$0xff]  ;;  %v3282_v0 = vld [vmem:[%s5417_s6 + $0x98] sm:$0xff] }
 0x6a2   : > { %4186 = vmatprep.subr.bf16.mxu1 %v4185_v5  ;;  %v4205_v4 = vpack.c.bf16 %v3264_v3, %v3263_v1  ;;  %4202 = vmatprep.subr.bf16.mxu0 %v4201_v2  ;;  %v3284_v3 = vld [vmem:[%s5417_s6 + $0xa8] sm:$0xff] }
 0x767   : > { %v3799_v15 = vpop.f32.mrb[24].mxu0 }
 0x768   : > { %v1487_v16 = vadd.f32 %v3799_v15, %v3200_v14  ;;  %v1481_v17 = vpop.f32.mrb[25].mxu0 }
 0x769   : > { %v1482_v18 = vadd.f32 %v3200_v14, %v1481_v17 }
 0x76a   : > { %v1521_v24 = vmax.f32 %v1487_v16, 0.0 }
 0x76b   : > { %v1520_v20 = vmax.f32 %v1482_v18, 0.0  ;;  %v3802_v22 = vpop.f32.mrb[26].mxu0 }
 0x76c   : > { %v1497_v25 = vadd.f32 %v3802_v22, %v3200_v14  ;;  %v1491_v29 = vpop.f32.mrb[27].mxu0 }
 0x76d   : > { %v1492_v33 = vadd.f32 %v3200_v14, %v1491_v29  ;;  %3825 = vmatprep.mubr.msk.f32.mxu1 %vm552_vm2, %v1520_v20 }
 0x76e   : > { %3826 = vmatmul.mubr.msk.f32.vlgmr.msra.gmra.mrb[24].mxu1 %vm552_vm2, %v1521_v24  ;;  %v1523_v44 = vmax.f32 %v1497_v25, 0.0 }
 0x76f   : > { %v1522_v38 = vmax.f32 %v1492_v33, 0.0  ;;  %v3805_v42 = vpop.f32.mrb[28].mxu0  ;;  %4188 = vmatpush3.bf16.msra.mxu1 %v4185_v5  ;;  %v3265_v5 = vld [vmem:[%s5415_s4 + $0x160] sm:$0xff] }
 0x770   : > { %v1507_v48 = vadd.f32 %v3805_v42, %v3200_v14  ;;  %v1501_v49 = vpop.f32.mrb[29].mxu0  ;;  %4190 = vmatprep.subr.bf16.mxu1 %v4189_v7 }
 0x771   : > { %v1502_v50 = vadd.f32 %v3200_v14, %v1501_v49  ;;  %3828 = vmatprep.mubr.msk.f32.mxu1 %vm552_vm2, %v1522_v38 }
 0x772   : > { %3829 = vmatmul.mubr.msk.f32.gmra.mrb[26].mxu1 %vm552_vm2, %v1523_v44  ;;  %v1525_v55 = vmax.f32 %v1507_v48, 0.0 }
 0x773   : > { %v1524_v52 = vmax.f32 %v1502_v50, 0.0  ;;  %v3808_v54 = vpop.f32.mrb[30].mxu0  ;;  %4192 = vmatpush3.bf16.msra.mxu1 %v4189_v7  ;;  %v4209_v7 = vpack.c.bf16 %v3266_v6, %v3265_v5  ;;  %v3252_v5 = vld [vmem:[%s5416_s5 + $0x4] ss:$0 sm:$0xff] }
 0x774   : > { %v1517_v57 = vadd.f32 %v3808_v54, %v3200_v14  ;;  %v1511_v59 = vpop.f32.mrb[31].mxu0  ;;  %4194 = vmatprep.subr.bf16.mxu1 %v4193_v10 }
 0x775   : > { %v1512_v60 = vadd.f32 %v3200_v14, %v1511_v59  ;;  %3831 = vmatprep.mubr.msk.f32.mxu1 %vm552_vm2, %v1524_v52 }
 0x776   : > { %3832 = vmatmul.mubr.msk.f32.gmra.mrb[28].mxu1 %vm552_vm2, %v1525_v55  ;;  %v1527_v62 = vmax.f32 %v1517_v57, 0.0 }
 0x777   : > { %v1526_v61 = vmax.f32 %v1512_v60, 0.0  ;;  %4196 = vmatpush3.bf16.msra.mxu1 %v4193_v10 }
 0x779   : > { %3834 = vmatprep.mubr.msk.f32.mxu1 %vm552_vm2, %v1526_v61  ;;  %v3249_v61 = vld [vmem:[%s5415_s4 + $0x130] sm:$0xff] }
 0x77a   : > { %3835 = vmatmul.mubr.msk.f32.gmra.mrb[30].mxu1 %vm552_vm2, %v1527_v62 }
 0x841   : > { %v3827_v12 = vpop.f32.mrb[24].mxu1 }
 0x842   : > { %v1641_v13 = vadd.f32 %v3827_v12, %v3218_v11  ;;  %v1635_v14 = vpop.f32.mrb[25].mxu1 }
 0x843   : > { %v1636_v15 = vadd.f32 %v3218_v11, %v1635_v14 }
 0x844   : > { %v4963_v16 = vadd.f32 %v1641_v13, %v4586_v31 }
 0x845   : > { %v4966_v17 = vadd.f32 %v1636_v15, %v4574_v26  ;;  %v3830_v18 = vpop.f32.mrb[26].mxu1 }
 0x846   : > { %v1651_v20 = vadd.f32 %v3830_v18, %v3218_v11  ;;  %v1645_v22 = vpop.f32.mrb[27].mxu1  ;;  %v1683_v29 = vsel %vm377_vm0, %v4963_v16, %v4588_v32 }
 0x847   : > { %v1646_v24 = vadd.f32 %v3218_v11, %v1645_v22  ;;  %v1682_v25 = vsel %vm377_vm0, %v4966_v17, %v4576_v27 }
 0x848   : > { %v4975_v33 = vadd.f32 %v1651_v20, %v4595_v35  ;;  %3849 = vmatprep.mubr.msk.f32.mxu0 %vm399_vm1, %v1682_v25 }
 0x849   : > { %v4979_v26 = vadd.f32 %v1646_v24, %v4583_v30  ;;  %v3833_v31 = vpop.f32.mrb[28].mxu1  ;;  %3850 = vmatmul.mubr.msk.f32.vlgmr.msra.gmra.mrb[32].mxu0 %vm399_vm1, %v1683_v29 }
 0x84a   : > { %v1661_v38 = vadd.f32 %v3833_v31, %v3218_v11  ;;  %v1655_v42 = vpop.f32.mrb[29].mxu1  ;;  %v1685_v30 = vsel %vm377_vm0, %v4975_v33, %v4593_v34  ;;  %4204 = vmatpush3.bf16.msra.mxu0 %v4201_v2  ;;  %v3283_v2 = vld [vmem:[%s5417_s6 + $0xa0] sm:$0xff] }
 0x84b   : > { %v1656_v44 = vadd.f32 %v3218_v11, %v1655_v42  ;;  %v1684_v48 = vsel %vm377_vm0, %v4979_v26, %v4578_v28  ;;  %4206 = vmatprep.subr.bf16.mxu0 %v4205_v4 }
 0x84c   : > { %v4986_v49 = vadd.f32 %v1661_v38, %v4611_v41  ;;  %3852 = vmatprep.mubr.msk.f32.mxu0 %vm399_vm1, %v1684_v48 }
 0x84d   : > { %v4993_v35 = vadd.f32 %v1656_v44, %v4601_v37  ;;  %v3836_v50 = vpop.f32.mrb[30].mxu1  ;;  %3853 = vmatmul.mubr.msk.f32.gmra.mrb[34].mxu0 %vm399_vm1, %v1685_v30 }
 0x84e   : > { %v1671_v52 = vadd.f32 %v3836_v50, %v3218_v11  ;;  %v1665_v54 = vpop.f32.mrb[31].mxu1  ;;  %v1687_v37 = vsel %vm377_vm0, %v4986_v49, %v4609_v40  ;;  %4208 = vmatpush3.bf16.msra.mxu0 %v4205_v4  ;;  %v4225_v4 = vpack.c.bf16 %v3284_v3, %v3283_v2 }
 0x84f   : > { %v1666_v55 = vadd.f32 %v3218_v11, %v1665_v54  ;;  %v1686_v41 = vsel %vm377_vm0, %v4993_v35, %v4607_v39  ;;  %4210 = vmatprep.subr.bf16.mxu0 %v4209_v7 }
 0x850   : > { %v5000_v57 = vadd.f32 %v1671_v52, %v4627_v47  ;;  %3855 = vmatprep.mubr.msk.f32.mxu0 %vm399_vm1, %v1686_v41 }
 0x851   : > { %v5007_v59 = vadd.f32 %v1666_v55, %v4617_v43  ;;  %3856 = vmatmul.mubr.msk.f32.gmra.mrb[36].mxu0 %vm399_vm1, %v1687_v37  ;;  %v3250_v43 = vld [vmem:[%s5415_s4 + $0x138] sm:$0xff]  ;;  %v3267_v37 = vld [vmem:[%s5415_s4 + $0x170] sm:$0xff] }
 0x852   : > { %v1689_v47 = vsel %vm377_vm0, %v5000_v57, %v4625_v46  ;;  %v4197_v62 = vpack.c.bf16 %v3250_v43, %v3249_v61  ;;  %4212 = vmatpush3.bf16.msra.mxu0 %v4209_v7  ;;  %v3279_v61 = vld [vmem:[%s5417_s6 + $0x80] sm:$0xff]  ;;  %v3280_v43 = vld [vmem:[%s5417_s6 + $0x88] sm:$0xff] }
 0x853   : > { %v1688_v60 = vsel %vm377_vm0, %v5007_v59, %v4623_v45  ;;  %v4217_v63 = vpack.c.bf16 %v3280_v43, %v3279_v61 }
 0x854   : > { %3858 = vmatprep.mubr.msk.f32.mxu0 %vm399_vm1, %v1688_v60  ;;  %4198 = vmatprep.subr.bf16.mxu1 %v4197_v62  ;;  %v3268_v60 = vld [vmem:[%s5415_s4 + $0x178] sm:$0xff] }
 0x855   : > { %3859 = vmatmul.mubr.msk.f32.gmra.mrb[38].mxu0 %vm399_vm1, %v1689_v47  ;;  %4200 = vmatpush3.bf16.msra.mxu1 %v4197_v62  ;;  %v4213_v47 = vpack.c.bf16 %v3268_v60, %v3267_v37  ;;  %v3281_v62 = vld [vmem:[%s5417_s6 + $0x90] sm:$0xff]  ;;  %v3270_v37 = vld [vmem:[%s5416_s5 + $0x5] ss:$0 sm:$0xff] }
 0x856   : > { %v4221_v1 = vpack.c.bf16 %v3282_v0, %v3281_v62  ;;  %4218 = vmatprep.subr.bf16.mxu1 %v4217_v63 }
 0x857   : > { %4214 = vmatprep.subr.bf16.mxu0 %v4213_v47 }
 0x858   : > { %4216 = vmatpush3.bf16.msra.mxu0 %v4213_v47 }
 0x91c   : > { %v3851_v9 = vpop.f32.mrb[32].mxu0 }
 0x91d   : > { %v1801_v10 = vadd.f32 %v3851_v9, %v3234_v8  ;;  %v1795_v11 = vpop.f32.mrb[33].mxu0 }
 0x91e   : > { %v1796_v12 = vadd.f32 %v3234_v8, %v1795_v11 }
 0x91f   : > { %v1835_v15 = vmax.f32 %v1801_v10, 0.0 }
 0x920   : > { %v1834_v13 = vmax.f32 %v1796_v12, 0.0  ;;  %v3854_v14 = vpop.f32.mrb[34].mxu0 }
 0x921   : > { %v1811_v18 = vadd.f32 %v3854_v14, %v3234_v8  ;;  %v1805_v20 = vpop.f32.mrb[35].mxu0 }
 0x922   : > { %v1806_v22 = vadd.f32 %v3234_v8, %v1805_v20  ;;  %3877 = vmatprep.mubr.msk.f32.mxu1 %vm552_vm2, %v1834_v13 }
 0x923   : > { %3878 = vmatmul.mubr.msk.f32.vlgmr.msra.gmra.mrb[32].mxu1 %vm552_vm2, %v1835_v15  ;;  %v1837_v29 = vmax.f32 %v1811_v18, 0.0 }
 0x924   : > { %v1836_v24 = vmax.f32 %v1806_v22, 0.0  ;;  %v3857_v25 = vpop.f32.mrb[36].mxu0  ;;  %4220 = vmatpush3.bf16.msra.mxu1 %v4217_v63 }
 0x925   : > { %v1821_v31 = vadd.f32 %v3857_v25, %v3234_v8  ;;  %v1815_v38 = vpop.f32.mrb[37].mxu0  ;;  %4222 = vmatprep.subr.bf16.mxu1 %v4221_v1 }
 0x926   : > { %v1816_v42 = vadd.f32 %v3234_v8, %v1815_v38  ;;  %3880 = vmatprep.mubr.msk.f32.mxu1 %vm552_vm2, %v1836_v24 }
 0x927   : > { %3881 = vmatmul.mubr.msk.f32.gmra.mrb[34].mxu1 %vm552_vm2, %v1837_v29  ;;  %v1839_v30 = vmax.f32 %v1821_v31, 0.0 }
 0x928   : > { %v1838_v44 = vmax.f32 %v1816_v42, 0.0  ;;  %v3860_v48 = vpop.f32.mrb[38].mxu0  ;;  %4224 = vmatpush3.bf16.msra.mxu1 %v4221_v1 }
 0x929   : > { %v1831_v50 = vadd.f32 %v3860_v48, %v3234_v8  ;;  %v1825_v52 = vpop.f32.mrb[39].mxu0  ;;  %4226 = vmatprep.subr.bf16.mxu1 %v4225_v4 }
 0x92a   : > { %v1826_v54 = vadd.f32 %v3234_v8, %v1825_v52  ;;  %3883 = vmatprep.mubr.msk.f32.mxu1 %vm552_vm2, %v1838_v44 }
 0x92b   : > { %3884 = vmatmul.mubr.msk.f32.gmra.mrb[36].mxu1 %vm552_vm2, %v1839_v30  ;;  %v1841_v41 = vmax.f32 %v1831_v50, 0.0 }
 0x92c   : > { %v1840_v55 = vmax.f32 %v1826_v54, 0.0  ;;  %4228 = vmatpush3.bf16.msra.mxu1 %v4225_v4  ;;  %v3285_v54 = vld [vmem:[%s5417_s6 + $0xb0] sm:$0xff] }
 0x92e   : > { %3886 = vmatprep.mubr.msk.f32.mxu1 %vm552_vm2, %v1840_v55  ;;  %v3286_v55 = vld [vmem:[%s5417_s6 + $0xb8] sm:$0xff] }
 0x92f   : > { %3887 = vmatmul.mubr.msk.f32.gmra.mrb[38].mxu1 %vm552_vm2, %v1841_v41  ;;  %v4229_v41 = vpack.c.bf16 %v3286_v55, %v3285_v54  ;;  %v3300_v55 = vld [vmem:[%s5413_s2 + $0xa8] sm:$0xff] }
 0x931   : > { %4230 = vmatprep.subr.bf16.mxu1 %v4229_v41 }
 0x932   : > { %4232 = vmatpush3.bf16.msra.mxu1 %v4229_v41 }
 0x9f6   : > { %v3879_v6 = vpop.f32.mrb[32].mxu1 }
 0x9f7   : > { %v1955_v7 = vadd.f32 %v3879_v6, %v3252_v5  ;;  %v1949_v8 = vpop.f32.mrb[33].mxu1 }
 0x9f8   : > { %v1950_v9 = vadd.f32 %v3252_v5, %v1949_v8 }
 0x9f9   : > { %v1989_v12 = vmax.f32 %v1955_v7, 0.0 }
 0x9fa   : > { %v1988_v10 = vmax.f32 %v1950_v9, 0.0  ;;  %v3882_v11 = vpop.f32.mrb[34].mxu1 }
 0x9fb   : > { %v1965_v13 = vadd.f32 %v3882_v11, %v3252_v5  ;;  %v1959_v14 = vpop.f32.mrb[35].mxu1 }
 0x9fc   : > { %v1960_v15 = vadd.f32 %v3252_v5, %v1959_v14  ;;  %3905 = vmatprep.mubr.msk.f32.mxu0 %vm552_vm2, %v1988_v10 }
 0x9fd   : > { %3906 = vmatmul.mubr.msk.f32.vlgmr.msra.gmra.mrb[40].mxu0 %vm552_vm2, %v1989_v12  ;;  %v1991_v22 = vmax.f32 %v1965_v13, 0.0 }
 0x9fe   : > { %v1990_v18 = vmax.f32 %v1960_v15, 0.0  ;;  %v3885_v20 = vpop.f32.mrb[36].mxu1 }
 0x9ff   : > { %v1975_v24 = vadd.f32 %v3885_v20, %v3252_v5  ;;  %v1969_v25 = vpop.f32.mrb[37].mxu1 }
 0xa00   : > { %v1970_v29 = vadd.f32 %v3252_v5, %v1969_v25  ;;  %3908 = vmatprep.mubr.msk.f32.mxu0 %vm552_vm2, %v1990_v18 }
 0xa01   : > { %3909 = vmatmul.mubr.msk.f32.gmra.mrb[42].mxu0 %vm552_vm2, %v1991_v22  ;;  %v1993_v42 = vmax.f32 %v1975_v24, 0.0  ;;  %v3288_v22 = vld [vmem:[%s5418_s7 + $0x2] ss:$0 sm:$0xff] }
 0xa02   : > { %v1992_v31 = vmax.f32 %v1970_v29, 0.0  ;;  %v3888_v38 = vpop.f32.mrb[38].mxu1 }
 0xa03   : > { %v1985_v44 = vadd.f32 %v3888_v38, %v3252_v5  ;;  %v1979_v48 = vpop.f32.mrb[39].mxu1 }
 0xa04   : > { %v1980_v30 = vadd.f32 %v3252_v5, %v1979_v48  ;;  %3911 = vmatprep.mubr.msk.f32.mxu0 %vm552_vm2, %v1992_v31  ;;  %v3297_v48 = vld [vmem:[%s5413_s2 + $0x90] sm:$0xff] }
 0xa05   : > { %3912 = vmatmul.mubr.msk.f32.gmra.mrb[44].mxu0 %vm552_vm2, %v1993_v42  ;;  %v1995_v52 = vmax.f32 %v1985_v44, 0.0 }
 0xa06   : > { %v1994_v50 = vmax.f32 %v1980_v30, 0.0  ;;  %v3298_v30 = vld [vmem:[%s5413_s2 + $0x98] sm:$0xff] }
 0xa07   : > { %v4233_v54 = vpack.c.bf16 %v3298_v30, %v3297_v48 }
 0xa08   : > { %3914 = vmatprep.mubr.msk.f32.mxu0 %vm552_vm2, %v1994_v50  ;;  %v3299_v50 = vld [vmem:[%s5413_s2 + $0xa0] sm:$0xff] }
 0xa09   : > { %3915 = vmatmul.mubr.msk.f32.gmra.mrb[46].mxu0 %vm552_vm2, %v1995_v52  ;;  %v4237_v41 = vpack.c.bf16 %v3300_v55, %v3299_v50  ;;  %4234 = vmatprep.subr.bf16.mxu0 %v4233_v54 }
 0xa0a   : > { %4236 = vmatpush3.bf16.msra.mxu0 %v4233_v54 }
 0xa0b   : > { %4238 = vmatprep.subr.bf16.mxu0 %v4237_v41 }
 0xa0e   : > { %4240 = vmatpush3.bf16.msra.mxu0 %v4237_v41 }
 0xad0   : > { %v3907_v60 = vpop.f32.mrb[40].mxu0 }
 0xad1   : > { %v2109_v47 = vadd.f32 %v3907_v60, %v3270_v37  ;;  %v2103_v61 = vpop.f32.mrb[41].mxu0  ;;  %v3302_v60 = vld [vmem:[%s5413_s2 + $0xb8] sm:$0xff] }
 0xad2   : > { %v2104_v43 = vadd.f32 %v3270_v37, %v2103_v61 }
 0xad3   : > { %v2143_v0 = vmax.f32 %v2109_v47, 0.0 }
 0xad4   : > { %v2142_v62 = vmax.f32 %v2104_v43, 0.0  ;;  %v3910_v63 = vpop.f32.mrb[42].mxu0 }
 0xad5   : > { %v2119_v1 = vadd.f32 %v3910_v63, %v3270_v37  ;;  %v2113_v2 = vpop.f32.mrb[43].mxu0 }
 0xad6   : > { %v2114_v3 = vadd.f32 %v3270_v37, %v2113_v2  ;;  %3933 = vmatprep.mubr.msk.f32.mxu1 %vm552_vm2, %v2142_v62 }
 0xad7   : > { %3934 = vmatmul.mubr.msk.f32.vlgmr.msra.gmra.mrb[40].mxu1 %vm552_vm2, %v2143_v0  ;;  %v2145_v6 = vmax.f32 %v2119_v1, 0.0 }
 0xad8   : > { %v2144_v4 = vmax.f32 %v2114_v3, 0.0  ;;  %v3913_v5 = vpop.f32.mrb[44].mxu0 }
 0xad9   : > { %v2129_v7 = vadd.f32 %v3913_v5, %v3270_v37  ;;  %v2123_v8 = vpop.f32.mrb[45].mxu0 }
 0xada   : > { %v2124_v9 = vadd.f32 %v3270_v37, %v2123_v8  ;;  %3936 = vmatprep.mubr.msk.f32.mxu1 %vm552_vm2, %v2144_v4 }
 0xadb   : > { %3937 = vmatmul.mubr.msk.f32.gmra.mrb[42].mxu1 %vm552_vm2, %v2145_v6  ;;  %v2147_v12 = vmax.f32 %v2129_v7, 0.0 }
 0xadc   : > { %v2146_v10 = vmax.f32 %v2124_v9, 0.0  ;;  %v3916_v11 = vpop.f32.mrb[46].mxu0 }
 0xadd   : > { %v2139_v13 = vadd.f32 %v3916_v11, %v3270_v37  ;;  %v2133_v14 = vpop.f32.mrb[47].mxu0  ;;  %v3315_v11 = vld [vmem:[%s5415_s4 + $0x190] sm:$0xff] }
 0xade   : > { %v2134_v15 = vadd.f32 %v3270_v37, %v2133_v14  ;;  %3939 = vmatprep.mubr.msk.f32.mxu1 %vm552_vm2, %v2146_v10  ;;  %v3301_v37 = vld [vmem:[%s5413_s2 + $0xb0] sm:$0xff] }
 0xadf   : > { %3940 = vmatmul.mubr.msk.f32.gmra.mrb[44].mxu1 %vm552_vm2, %v2147_v12  ;;  %v2149_v20 = vmax.f32 %v2139_v13, 0.0  ;;  %v4241_v63 = vpack.c.bf16 %v3302_v60, %v3301_v37  ;;  %v3333_v60 = vld [vmem:[%s5415_s4 + $0x1d0] sm:$0xff] }
 0xae0   : > { %v2148_v18 = vmax.f32 %v2134_v15, 0.0  ;;  %v3317_v15 = vld [vmem:[%s5415_s4 + $0x1a0] sm:$0xff] }
 0xae1   : > { %4242 = vmatprep.subr.bf16.mxu0 %v4241_v63 }
 0xae2   : > { %3942 = vmatprep.mubr.msk.f32.mxu1 %vm552_vm2, %v2148_v18  ;;  %4244 = vmatpush3.bf16.msra.mxu0 %v4241_v63  ;;  %v3318_v18 = vld [vmem:[%s5415_s4 + $0x1a8] sm:$0xff] }
 0xae3   : > { %3943 = vmatmul.mubr.msk.f32.gmra.mrb[46].mxu1 %vm552_vm2, %v2149_v20  ;;  %v3336_v63 = vld [vmem:[%s5415_s4 + $0x1e8] sm:$0xff] }
 0xbaa   : > { %v3935_v24 = vpop.f32.mrb[40].mxu1 }
 0xbab   : > { %v2263_v25 = vadd.f32 %v3935_v24, %v3288_v22  ;;  %v2257_v29 = vpop.f32.mrb[41].mxu1 }
 0xbac   : > { %v2258_v31 = vadd.f32 %v3288_v22, %v2257_v29 }
 0xbad   : > { %2306 = vrot.lane.b32.xlu1 %v2263_v25, %s4408_s22  ;;  %v4253_v25 = vpack.c.bf16 %v3318_v18, %v3317_v15 }
 0xbae   : > { %v3938_v38 = vpop.f32.mrb[42].mxu1  ;;  %2304 = vrot.lane.b32.xlu0 %v2258_v31, %s4408_s22 }
 0xbaf   : > { %v2273_v42 = vadd.f32 %v3938_v38, %v3288_v22  ;;  %v2267_v44 = vpop.f32.mrb[43].mxu1 }
 0xbb0   : > { %v2268_v52 = vadd.f32 %v3288_v22, %v2267_v44 }
 0xbb1   : > { %2310 = vrot.lane.b32.xlu1 %v2273_v42, %s4408_s22 }
 0xbb2   : > { %v3941_v47 = vpop.f32.mrb[44].mxu1  ;;  %2308 = vrot.lane.b32.xlu0 %v2268_v52, %s4408_s22 }
 0xbb3   : > { %v2283_v61 = vadd.f32 %v3941_v47, %v3288_v22  ;;  %v2277_v43 = vpop.f32.mrb[45].mxu1 }
 0xbb4   : > { %v2278_v62 = vadd.f32 %v3288_v22, %v2277_v43 }
 0xbb5   : > { %2314 = vrot.lane.b32.xlu1 %v2283_v61, %s4408_s22  ;;  %v3334_v61 = vld [vmem:[%s5415_s4 + $0x1d8] sm:$0xff] }
 0xbb6   : > { %2312 = vrot.lane.b32.xlu0 %v2278_v62, %s4408_s22  ;;  %v3944_v0 = vpop.f32.mrb[46].mxu1  ;;  %v4265_v43 = vpack.c.bf16 %v3334_v61, %v3333_v60  ;;  %v3335_v62 = vld [vmem:[%s5415_s4 + $0x1e0] sm:$0xff] }
 0xbb7   : > { %v2293_v1 = vadd.f32 %v3944_v0, %v3288_v22  ;;  %v2287_v2 = vpop.f32.mrb[47].mxu1  ;;  %v4269_v0 = vpack.c.bf16 %v3336_v63, %v3335_v62 }
 0xbb8   : > { %v2288_v3 = vadd.f32 %v3288_v22, %v2287_v2 }
 0xbb9   : > { %2318 = vrot.lane.b32.xlu1 %v2293_v1, %s4408_s22  ;;  %v3304_v1 = vld [vmem:[%s5414_s3 + $0x3] ss:$0 sm:$0xff] }
 0xbba   : > { %2316 = vrot.lane.b32.xlu0 %v2288_v3, %s4408_s22  ;;  %s3372_s22 = sshll.u32 %s4479_s9, 10 }
 0xbbb   : > { %s5359_s9 = scalar_lea.hbm %s5419_s8, %s3372_s22 }
 0xc1f   : > { %v2307_v4 = vpop.permute.xlu1 %2306 }
 0xc20   : > { %v5135_v5 = vadd.f32 %v2307_v4, %v4755_v19  ;;  %v2305_v6 = vpop.permute.xlu0 %2304  ;;  %v3313_v19 = vld [vmem:[%s5415_s4 + $0x180] sm:$0xff] }
 0xc21   : > { %v5138_v7 = vadd.f32 %v2305_v6, %v4758_v21  ;;  %v3314_v21 = vld [vmem:[%s5415_s4 + $0x188] sm:$0xff] }
 0xc22   : > { %2346 = vrot.lane.b32.xlu1 %v5135_v5, %s4409_s18  ;;  %v4245_v13 = vpack.c.bf16 %v3314_v21, %v3313_v19 }
 0xc23   : > { %v2311_v8 = vpop.permute.xlu1 %2310  ;;  %2344 = vrot.lane.b32.xlu0 %v5138_v7, %s4409_s18 }
 0xc24   : > { %v5145_v9 = vadd.f32 %v2311_v8, %v4765_v23  ;;  %v2309_v10 = vpop.permute.xlu0 %2308  ;;  %v3316_v23 = vld [vmem:[%s5415_s4 + $0x198] sm:$0xff]  ;;  %4246 = vmatprep.subr.bf16.mxu1 %v4245_v13 }
 0xc25   : > { %v5157_v12 = vadd.f32 %v2309_v10, %v4777_v36  ;;  %v4249_v14 = vpack.c.bf16 %v3316_v23, %v3315_v11  ;;  %4248 = vmatpush3.bf16.msra.mxu1 %v4245_v13 }
 0xc26   : > { %2350 = vrot.lane.b32.xlu1 %v5145_v9, %s4409_s18 }
 0xc27   : > { %v2315_v20 = vpop.permute.xlu1 %2314  ;;  %2348 = vrot.lane.b32.xlu0 %v5157_v12, %s4409_s18  ;;  %4250 = vmatprep.subr.bf16.mxu1 %v4249_v14 }
 0xc28   : > { %v5173_v36 = vadd.f32 %v2315_v20, %v4793_v51  ;;  %v2313_v22 = vpop.permute.xlu0 %2312 }
 0xc29   : > { %v5176_v24 = vadd.f32 %v2313_v22, %v4796_v53  ;;  %4252 = vmatpush3.bf16.msra.mxu1 %v4249_v14 }
 0xc2a   : > { %2354 = vrot.lane.b32.xlu1 %v5173_v36, %s4409_s18  ;;  %4254 = vmatprep.subr.bf16.mxu1 %v4253_v25 }
 0xc2b   : > { %v2319_v29 = vpop.permute.xlu1 %2318  ;;  %2352 = vrot.lane.b32.xlu0 %v5176_v24, %s4409_s18 }
 0xc2c   : > { %v5183_v31 = vadd.f32 %v2319_v29, %v4803_v56  ;;  %v2317_v38 = vpop.permute.xlu0 %2316 }
 0xc2d   : > { %v5186_v51 = vadd.f32 %v2317_v38, %v4806_v58  ;;  %4256 = vmatpush3.bf16.msra.mxu1 %v4253_v25 }
 0xc2e   : > { %2358 = vrot.lane.b32.xlu1 %v5183_v31, %s4409_s18 }
 0xc2f   : > { %2356 = vrot.lane.b32.xlu0 %v5186_v51, %s4409_s18  ;;  %s3029_s18 = sshll.u32 %s5318_s25, 4  ;;  %s5361_s18 = int_to_ptr.vmem [resolvable:$true] %s3029_s18 }
 0xc30   : > { %s4344_s17 = scalar_lea.vmem %s5361_s18, 1024  ;;  %p4351_p0 = scmp.lt.s32.totalorder %s5361_s18, %s4349_s19 }
 0xc31   : > { %p4345_p11 = scmp.ne.s32.totalorder %s5361_s18, %s4344_s17  ;;  %p4352_p1 = scmp.lt.s32.totalorder %s4350_s20, %s4344_s17 }
 0xc33   : > { %p4346_p12 = pnand %p4345_p11, %p4496_p5  ;;  %p4353_p2 = por %p4352_p1, %p4351_p0 }
 0xc35   : > { %p4347_p13 = pneg %p4346_p12 }
 0xc37   : > { %p4354_p3 = pnand %p4353_p2, %p4347_p13 }
 0xc94   : > { %v2347_v53 = vpop.permute.xlu1 %2346 }
 0xc95   : > { %v2345_v42 = vpop.permute.xlu0 %2344  ;;  %v2369_v56 = vsel %vm377_vm0, %v2347_v53, %v4588_v32 }
 0xc96   : > { %v2368_v44 = vsel %vm377_vm0, %v2345_v42, %v4576_v27 }
 0xc97   : > { %3957 = vmatprep.mubr.msk.f32.mxu0 %vm399_vm1, %v2368_v44 }
 0xc98   : > { %v2351_v58 = vpop.permute.xlu1 %2350  ;;  %3958 = vmatmul.mubr.msk.f32.vlgmr.msra.gmra.mrb[48].mxu0 %vm399_vm1, %v2369_v56 }
 0xc99   : > { %v2349_v48 = vpop.permute.xlu0 %2348  ;;  %v2371_v50 = vsel %vm377_vm0, %v2351_v58, %v4593_v34 }
 0xc9a   : > { %v2370_v30 = vsel %vm377_vm0, %v2349_v48, %v4578_v28  ;;  %v3337_v48 = vld [vmem:[%s5415_s4 + $0x1f0] sm:$0xff] }
 0xc9b   : > { %3960 = vmatprep.mubr.msk.f32.mxu0 %vm399_vm1, %v2370_v30  ;;  %v3338_v30 = vld [vmem:[%s5415_s4 + $0x1f8] sm:$0xff] }
 0xc9c   : > { %v2355_v52 = vpop.permute.xlu1 %2354  ;;  %3961 = vmatmul.mubr.msk.f32.gmra.mrb[50].mxu0 %vm399_vm1, %v2371_v50  ;;  %v4273_v50 = vpack.c.bf16 %v3338_v30, %v3337_v48 }
 0xc9d   : > { %v2353_v27 = vpop.permute.xlu0 %2352  ;;  %v2373_v54 = vsel %vm377_vm0, %v2355_v52, %v4609_v40  ;;  %v3320_v40 = vld [vmem:[%s5415_s4 + $0x1b8] sm:$0xff]  ;;  %v3349_v52 = vld [vmem:[%s5417_s6 + $0xc0] sm:$0xff] }
 0xc9e   : > { %v2372_v32 = vsel %vm377_vm0, %v2353_v27, %v4607_v39  ;;  %v3319_v39 = vld [vmem:[%s5415_s4 + $0x1b0] sm:$0xff]  ;;  %v3350_v27 = vld [vmem:[%s5417_s6 + $0xc8] sm:$0xff] }
 0xc9f   : > { %3963 = vmatprep.mubr.msk.f32.mxu0 %vm399_vm1, %v2372_v32  ;;  %v4257_v37 = vpack.c.bf16 %v3320_v40, %v3319_v39  ;;  %v3351_v32 = vld [vmem:[%s5417_s6 + $0xd0] sm:$0xff]  ;;  %v3322_v40 = vld [vmem:[%s5416_s5 + $0x6] ss:$0 sm:$0xff] }
 0xca0   : > { %v2359_v55 = vpop.permute.xlu1 %2358  ;;  %3964 = vmatmul.mubr.msk.f32.gmra.mrb[52].mxu0 %vm399_vm1, %v2373_v54  ;;  %v4277_v54 = vpack.c.bf16 %v3350_v27, %v3349_v52 }
 0xca1   : > { %v2357_v28 = vpop.permute.xlu0 %2356  ;;  %v2375_v41 = vsel %vm377_vm0, %v2359_v55, %v4625_v46  ;;  %4258 = vmatprep.subr.bf16.mxu1 %v4257_v37  ;;  %v3332_v46 = vld [vmem:[%s5415_s4 + $0x1c8] sm:$0xff]  ;;  %v3352_v55 = vld [vmem:[%s5417_s6 + $0xd8] sm:$0xff] }
 0xca2   : > { %v2374_v34 = vsel %vm377_vm0, %v2357_v28, %v4623_v45  ;;  %4260 = vmatpush3.bf16.msra.mxu1 %v4257_v37  ;;  %v3331_v45 = vld [vmem:[%s5415_s4 + $0x1c0] sm:$0xff]  ;;  %v4281_v28 = vpack.c.bf16 %v3352_v55, %v3351_v32 }
 0xca3   : > { %3966 = vmatprep.mubr.msk.f32.mxu0 %vm399_vm1, %v2374_v34  ;;  %v4261_v47 = vpack.c.bf16 %v3332_v46, %v3331_v45  ;;  %v3353_v34 = vld [vmem:[%s5417_s6 + $0xe0] sm:$0xff]  ;;  %4278 = vmatprep.subr.bf16.mxu1 %v4277_v54 }
 0xca4   : > { %3967 = vmatmul.mubr.msk.f32.gmra.mrb[54].mxu0 %vm399_vm1, %v2375_v41  ;;  %v3354_v41 = vld [vmem:[%s5417_s6 + $0xe8] sm:$0xff] }
 0xca5   : > { %4262 = vmatprep.subr.bf16.mxu0 %v4261_v47  ;;  %v4285_v39 = vpack.c.bf16 %v3354_v41, %v3353_v34 }
 0xca6   : > { %4264 = vmatpush3.bf16.msra.mxu0 %v4261_v47 }
 0xca7   : > { %4266 = vmatprep.subr.bf16.mxu0 %v4265_v43 }
 0xcaa   : > { %4268 = vmatpush3.bf16.msra.mxu0 %v4265_v43 }
 0xcab   : > { %4270 = vmatprep.subr.bf16.mxu0 %v4269_v0 }
 0xcae   : > { %4272 = vmatpush3.bf16.msra.mxu0 %v4269_v0 }
 0xcaf   : > { %4274 = vmatprep.subr.bf16.mxu0 %v4273_v50 }
 0xcb2   : > { %4276 = vmatpush3.bf16.msra.mxu0 %v4273_v50 }
 0xd6b   : > { %v3959_v2 = vpop.f32.mrb[48].mxu0 }
 0xd6c   : > { %v2487_v3 = vadd.f32 %v3959_v2, %v3304_v1  ;;  %v2481_v4 = vpop.f32.mrb[49].mxu0 }
 0xd6d   : > { %v2482_v6 = vadd.f32 %v3304_v1, %v2481_v4 }
 0xd6e   : > { %v2521_v19 = vmax.f32 %v2487_v3, 0.0 }
 0xd6f   : > { %v2520_v8 = vmax.f32 %v2482_v6, 0.0  ;;  %v3962_v10 = vpop.f32.mrb[50].mxu0 }
 0xd70   : > { %v2497_v21 = vadd.f32 %v3962_v10, %v3304_v1  ;;  %v2491_v11 = vpop.f32.mrb[51].mxu0 }
 0xd71   : > { %v2492_v13 = vadd.f32 %v3304_v1, %v2491_v11  ;;  %3985 = vmatprep.mubr.msk.f32.mxu1 %vm552_vm2, %v2520_v8 }
 0xd72   : > { %3986 = vmatmul.mubr.msk.f32.vlgmr.msra.gmra.mrb[48].mxu1 %vm552_vm2, %v2521_v19  ;;  %v2523_v15 = vmax.f32 %v2497_v21, 0.0 }
 0xd73   : > { %v2522_v23 = vmax.f32 %v2492_v13, 0.0  ;;  %v3965_v14 = vpop.f32.mrb[52].mxu0  ;;  %4280 = vmatpush3.bf16.msra.mxu1 %v4277_v54 }
 0xd74   : > { %v2507_v18 = vadd.f32 %v3965_v14, %v3304_v1  ;;  %v2501_v20 = vpop.f32.mrb[53].mxu0  ;;  %4282 = vmatprep.subr.bf16.mxu1 %v4281_v28 }
 0xd75   : > { %v2502_v22 = vadd.f32 %v3304_v1, %v2501_v20  ;;  %3988 = vmatprep.mubr.msk.f32.mxu1 %vm552_vm2, %v2522_v23  ;;  %v3356_v20 = vld [vmem:[%s5417_s6 + $0xf8] sm:$0xff] }
 0xd76   : > { %3989 = vmatmul.mubr.msk.f32.gmra.mrb[50].mxu1 %vm552_vm2, %v2523_v15  ;;  %v2525_v38 = vmax.f32 %v2507_v18, 0.0  ;;  %v3355_v18 = vld [vmem:[%s5417_s6 + $0xf0] sm:$0xff] }
 0xd77   : > { %v2524_v25 = vmax.f32 %v2502_v22, 0.0  ;;  %v3968_v29 = vpop.f32.mrb[54].mxu0  ;;  %4284 = vmatpush3.bf16.msra.mxu1 %v4281_v28  ;;  %v4289_v22 = vpack.c.bf16 %v3356_v20, %v3355_v18 }
 0xd78   : > { %v2517_v53 = vadd.f32 %v3968_v29, %v3304_v1  ;;  %v2511_v42 = vpop.f32.mrb[55].mxu0  ;;  %4286 = vmatprep.subr.bf16.mxu1 %v4285_v39 }
 0xd79   : > { %v2512_v44 = vadd.f32 %v3304_v1, %v2511_v42  ;;  %3991 = vmatprep.mubr.msk.f32.mxu1 %vm552_vm2, %v2524_v25  ;;  %v3340_v25 = vld [vmem:[%s5416_s5 + $0x7] ss:$0 sm:$0xff] }
 0xd7a   : > { %3992 = vmatmul.mubr.msk.f32.gmra.mrb[52].mxu1 %vm552_vm2, %v2525_v38  ;;  %v2527_v58 = vmax.f32 %v2517_v53, 0.0 }
 0xd7b   : > { %v2526_v56 = vmax.f32 %v2512_v44, 0.0  ;;  %4288 = vmatpush3.bf16.msra.mxu1 %v4285_v39 }
 0xd7c   : > { %4290 = vmatprep.subr.bf16.mxu1 %v4289_v22 }
 0xd7d   : > { %3994 = vmatprep.mubr.msk.f32.mxu1 %vm552_vm2, %v2526_v56 }
 0xd7e   : > { %3995 = vmatmul.mubr.msk.f32.gmra.mrb[54].mxu1 %vm552_vm2, %v2527_v58 }
 0xd7f   : > { %4292 = vmatpush3.bf16.msra.mxu1 %v4289_v22  ;;  %v4339_v22 = vld [vmem:[%s4533_s21 + $0x10] sm:$0xff] }
 0xe45   : > { %v3987_v37 = vpop.f32.mrb[48].mxu1 }
 0xe46   : > { %v2641_v45 = vadd.f32 %v3987_v37, %v3322_v40  ;;  %v2635_v46 = vpop.f32.mrb[49].mxu1 }
 0xe47   : > { %v2636_v60 = vadd.f32 %v3322_v40, %v2635_v46 }
 0xe48   : > { %v2675_v43 = vmax.f32 %v2641_v45, 0.0 }
 0xe49   : > { %v2674_v47 = vmax.f32 %v2636_v60, 0.0  ;;  %v3990_v61 = vpop.f32.mrb[50].mxu1 }
 0xe4a   : > { %v2651_v62 = vadd.f32 %v3990_v61, %v3322_v40  ;;  %v2645_v63 = vpop.f32.mrb[51].mxu1 }
 0xe4b   : > { %v2646_v0 = vadd.f32 %v3322_v40, %v2645_v63  ;;  %4013 = vmatprep.mubr.msk.f32.mxu0 %vm552_vm2, %v2674_v47  ;;  %v3358_v47 = vld [vmem:[%s5418_s7 + $0x3] ss:$0 sm:$0xff] }
 0xe4c   : > { %4014 = vmatmul.mubr.msk.f32.vlgmr.msra.gmra.mrb[56].mxu0 %vm552_vm2, %v2675_v43  ;;  %v2677_v3 = vmax.f32 %v2651_v62, 0.0 }
 0xe4d   : > { %v2676_v1 = vmax.f32 %v2646_v0, 0.0  ;;  %v3993_v2 = vpop.f32.mrb[52].mxu1 }
 0xe4e   : > { %v2661_v4 = vadd.f32 %v3993_v2, %v3322_v40  ;;  %v2655_v6 = vpop.f32.mrb[53].mxu1 }
 0xe4f   : > { %v2656_v8 = vadd.f32 %v3322_v40, %v2655_v6  ;;  %4016 = vmatprep.mubr.msk.f32.mxu0 %vm552_vm2, %v2676_v1 }
 0xe50   : > { %4017 = vmatmul.mubr.msk.f32.gmra.mrb[58].mxu0 %vm552_vm2, %v2677_v3  ;;  %v2679_v21 = vmax.f32 %v2661_v4, 0.0 }
 0xe51   : > { %v2678_v10 = vmax.f32 %v2656_v8, 0.0  ;;  %v3996_v19 = vpop.f32.mrb[54].mxu1  ;;  %v4336_v8 = vld [vmem:[%s4533_s21 + $0x8] sm:$0xff] }
 0xe52   : > { %v2671_v11 = vadd.f32 %v3996_v19, %v3322_v40  ;;  %v2665_v13 = vpop.f32.mrb[55].mxu1 }
 0xe53   : > { %v2666_v23 = vadd.f32 %v3322_v40, %v2665_v13  ;;  %4019 = vmatprep.mubr.msk.f32.mxu0 %vm552_vm2, %v2678_v10 }
 0xe54   : > { %4020 = vmatmul.mubr.msk.f32.gmra.mrb[60].mxu0 %vm552_vm2, %v2679_v21  ;;  %v2681_v15 = vmax.f32 %v2671_v11, 0.0  ;;  %v4337_v11 = vld [vmem:[%s4533_s21] sm:$0xff] }
 0xe55   : > { %v2680_v14 = vmax.f32 %v2666_v23, 0.0 }
 0xe57   : > { %4022 = vmatprep.mubr.msk.f32.mxu0 %vm552_vm2, %v2680_v14 }
 0xe58   : > { %4023 = vmatmul.mubr.msk.f32.gmra.mrb[62].mxu0 %vm552_vm2, %v2681_v15 }
 0xf1f   : > { %v4015_v29 = vpop.f32.mrb[56].mxu0 }
 0xf20   : > { %v2795_v38 = vadd.f32 %v4015_v29, %v3340_v25  ;;  %v2789_v53 = vpop.f32.mrb[57].mxu0 }
 0xf21   : > { %v2790_v42 = vadd.f32 %v3340_v25, %v2789_v53 }
 0xf22   : > { %v2829_v58 = vmax.f32 %v2795_v38, 0.0 }
 0xf23   : > { %v2828_v44 = vmax.f32 %v2790_v42, 0.0  ;;  %v4018_v56 = vpop.f32.mrb[58].mxu0  ;;  %v4340_v42 = vld [vmem:[%s4533_s21 + $0x28] sm:$0xff] }
 0xf24   : > { %v2805_v48 = vadd.f32 %v4018_v56, %v3340_v25  ;;  %v2799_v30 = vpop.f32.mrb[59].mxu0 }
 0xf25   : > { %v2800_v50 = vadd.f32 %v3340_v25, %v2799_v30  ;;  %4041 = vmatprep.mubr.msk.f32.mxu1 %vm552_vm2, %v2828_v44  ;;  %v4342_v30 = vld [vmem:[%s4533_s21 + $0x38] sm:$0xff] }
 0xf26   : > { %4042 = vmatmul.mubr.msk.f32.vlgmr.msra.gmra.mrb[56].mxu1 %vm552_vm2, %v2829_v58  ;;  %v2831_v32 = vmax.f32 %v2805_v48, 0.0  ;;  %v4341_v58 = vld [vmem:[%s4533_s21 + $0x20] sm:$0xff] }
 0xf27   : > { %v2830_v52 = vmax.f32 %v2800_v50, 0.0  ;;  %v4021_v27 = vpop.f32.mrb[60].mxu0 }
 0xf28   : > { %v2815_v54 = vadd.f32 %v4021_v27, %v3340_v25  ;;  %v2809_v55 = vpop.f32.mrb[61].mxu0 }
 0xf29   : > { %v2810_v28 = vadd.f32 %v3340_v25, %v2809_v55  ;;  %4044 = vmatprep.mubr.msk.f32.mxu1 %vm552_vm2, %v2830_v52 }
 0xf2a   : > { %4045 = vmatmul.mubr.msk.f32.gmra.mrb[58].mxu1 %vm552_vm2, %v2831_v32  ;;  %v2833_v39 = vmax.f32 %v2815_v54, 0.0 }
 0xf2b   : > { %v2832_v34 = vmax.f32 %v2810_v28, 0.0  ;;  %v4024_v41 = vpop.f32.mrb[62].mxu0 }
 0xf2c   : > { %v2825_v40 = vadd.f32 %v4024_v41, %v3340_v25  ;;  %v2819_v37 = vpop.f32.mrb[63].mxu0 }
 0xf2d   : > { %v2820_v45 = vadd.f32 %v3340_v25, %v2819_v37  ;;  %4047 = vmatprep.mubr.msk.f32.mxu1 %vm552_vm2, %v2832_v34 }
 0xf2e   : > { %4048 = vmatmul.mubr.msk.f32.gmra.mrb[60].mxu1 %vm552_vm2, %v2833_v39  ;;  %v2835_v60 = vmax.f32 %v2825_v40, 0.0 }
 0xf2f   : > { %v2834_v46 = vmax.f32 %v2820_v45, 0.0 }
 0xf31   : > { %4050 = vmatprep.mubr.msk.f32.mxu1 %vm552_vm2, %v2834_v46 }
 0xf32   : > { %4051 = vmatmul.mubr.msk.f32.gmra.mrb[62].mxu1 %vm552_vm2, %v2835_v60 }
 0xff9   : > { %v4043_v61 = vpop.f32.mrb[56].mxu1 }
 0xffa   : > { %v2949_v43 = vadd.f32 %v4043_v61, %v3358_v47  ;;  %v2943_v62 = vpop.f32.mrb[57].mxu1 }
 0xffb   : > { %v2944_v63 = vadd.f32 %v3358_v47, %v2943_v62 }
 0xffc   : > { %v2983_v0 = vadd.f32 %v2949_v43, %v4963_v16 }
 0xffd   : > { %v2982_v1 = vadd.f32 %v2944_v63, %v4966_v17  ;;  %v4046_v2 = vpop.f32.mrb[58].mxu1 }
 0xffe   : > { %v2991_v3 = vsel %vm377_vm0, %v2983_v0, %v5135_v5  ;;  %v2959_v4 = vadd.f32 %v4046_v2, %v3358_v47  ;;  %v2953_v6 = vpop.f32.mrb[59].mxu1 }
 0xfff   : > { %v2999_v10 = vadd.f32 %v4336_v8, %v2991_v3  ;;  %v2990_v19 = vsel %vm377_vm0, %v2982_v1, %v5138_v7  ;;  %v2954_v21 = vadd.f32 %v3358_v47, %v2953_v6 }
0x1000   : > { %v2998_v13 = vadd.f32 %v4337_v11, %v2990_v19  ;;  %v2985_v16 = vadd.f32 %v2959_v4, %v4975_v33  ;;  %v4338_v33 = vld [vmem:[%s4533_s21 + $0x18] sm:$0xff] }
0x1001   : > { %3008 = vst.msk [vmem:[%s5318_s25 + $0x8] sm:$0xff] %vm3006_vm3, %v2999_v10  ;;  %v2984_v17 = vadd.f32 %v2954_v21, %v4979_v26  ;;  %v4049_v5 = vpop.f32.mrb[60].mxu1 }
0x1002   : > { %3007 = vst.msk [vmem:[%s5318_s25] sm:$0xff] %vm3006_vm3, %v2998_v13  ;;  %v2993_v7 = vsel %vm377_vm0, %v2985_v16, %v5145_v9  ;;  %v2969_v23 = vadd.f32 %v4049_v5, %v3358_v47  ;;  %v2963_v14 = vpop.f32.mrb[61].mxu1 }
0x1003   : > { %v3001_v15 = vadd.f32 %v4338_v33, %v2993_v7  ;;  %v2992_v18 = vsel %vm377_vm0, %v2984_v17, %v5157_v12  ;;  %v2964_v20 = vadd.f32 %v3358_v47, %v2963_v14 }
0x1004   : > { %v3000_v25 = vadd.f32 %v4339_v22, %v2992_v18  ;;  %v2987_v26 = vadd.f32 %v2969_v23, %v4986_v49 }
0x1005   : > { %3010 = vst.msk [vmem:[%s5318_s25 + $0x18] sm:$0xff] %vm3006_vm3, %v3001_v15  ;;  %v2986_v9 = vadd.f32 %v2964_v20, %v4993_v35  ;;  %v4052_v29 = vpop.f32.mrb[62].mxu1 }
0x1006   : > { %3009 = vst.msk [vmem:[%s5318_s25 + $0x10] sm:$0xff] %vm3006_vm3, %v3000_v25  ;;  %v2995_v12 = vsel %vm377_vm0, %v2987_v26, %v5173_v36  ;;  %v2979_v38 = vadd.f32 %v4052_v29, %v3358_v47  ;;  %v2973_v53 = vpop.f32.mrb[63].mxu1 }
0x1007   : > { %v3003_v44 = vadd.f32 %v4340_v42, %v2995_v12  ;;  %v2994_v49 = vsel %vm377_vm0, %v2986_v9, %v5176_v24  ;;  %v2974_v56 = vadd.f32 %v3358_v47, %v2973_v53 }
0x1008   : > { %v3002_v35 = vadd.f32 %v4341_v58, %v2994_v49  ;;  %v2989_v48 = vadd.f32 %v2979_v38, %v5000_v57  ;;  %v4343_v57 = vld [vmem:[%s4533_s21 + $0x30] sm:$0xff] }
0x1009   : > { %3012 = vst.msk [vmem:[%s5318_s25 + $0x28] sm:$0xff] %vm3006_vm3, %v3003_v44  ;;  %v2988_v36 = vadd.f32 %v2974_v56, %v5007_v59 }
0x100a   : > { %3011 = vst.msk [vmem:[%s5318_s25 + $0x20] sm:$0xff] %vm3006_vm3, %v3002_v35  ;;  %v2997_v24 = vsel %vm377_vm0, %v2989_v48, %v5183_v31 }
0x100b   : > { %v3005_v50 = vadd.f32 %v4342_v30, %v2997_v24  ;;  %v2996_v52 = vsel %vm377_vm0, %v2988_v36, %v5186_v51 }
0x100c   : > { %v3004_v59 = vadd.f32 %v4343_v57, %v2996_v52 }
0x100d   : > { %3014 = vst.msk [vmem:[%s5318_s25 + $0x38] sm:$0xff] %vm3006_vm3, %v3005_v50 }
0x100e   : > { %3013 = vst.msk [vmem:[%s5318_s25 + $0x30] sm:$0xff] %vm3006_vm3, %v3004_v59 }
0x100f   : > { %4357 = shalt.err (!%p4354_p3)
}
0x1010   : > { %s4358_s21 = scalar_lea.hbm %s5359_s9, 1024  ;;  %s4362_s25 = scalar_lea.hbm %s5419_s8, 2048 }
0x1011   : > { %p4359_p4 = scmp.ne.s32.totalorder %s5359_s9, %s4358_s21  ;;  %p4363_p9 = scmp.lt.u32.totalorder %s5359_s9, %s5419_s8 }
0x1012   : > { %p4364_p10 = scmp.lt.u32.totalorder %s4362_s25, %s4358_s21  ;;  %p4366_p12 = scmp.lt.u32.totalorder %s4358_s21, %s5359_s9 }
0x1013   : > { %p4360_p7 = pnand %p4359_p4, %p4496_p5 }
0x1014   : > { %p4365_p11 = por %p4364_p10, %p4363_p9 }
0x1015   : > { %p4361_p8 = pneg %p4360_p7 }
0x1016   : > { %p4367_p13 = por %p4366_p12, %p4365_p11 }
0x1018   : > { %p4368_p0 = pnand %p4367_p13, %p4361_p8 }
0x101a   : > { %4371 = shalt.err (!%p4368_p0)
}
0x101b   : > { %s4411_s10 = smov 128   ;;  %s4412_s17 = smov 8  }
0x101c   : > { %4293 = dma.vmem_to_hbm [thread:$0]  (%p4496_p5), %s5361_s18, 1024, %s5359_s9, %s5370_s12, %s4411_s10, %s4411_s10, %s4412_s17  }
0x101d PF: > { %p4299_p1 = scmp.ge.s32.totalorder %s4406_s30, 2  ;;  %s3044_s13 = sand.u32 1, %s4394_s27  }
0x101e   : > { %s3045_s19 = scalar_lea.sflag [#allocation3], %s3044_s13 }
0x101f   : > { %p4296_p2 = pnand %p4299_p1, %p4500_p6 }
0x1021   : > { %4389 = dma.done.wait (!%p4296_p2), %s3045_s19, 1024  }
0x1022   : > { %4391 = vsyncadd (!%p4296_p2), %s3045_s19, 4294966272  ;;  %p18_p3 = scmp.ge.s32.totalorder %s4483_s11, 4   ;;  %s5422_s27 = smov %s4398_s28 }
0x1023   : > { %s5423_s28 = smov %s4402_s29  ;;  %s5424_s29 = smov %s4494_s14 }
0x1024   : > { %s5425_s30 = smov %s4483_s11  ;;  %20 = sbr.rel (!%p18_p3) target bundleno = 3 (0x3), region = 116 }
0x102b   :  { %3050 = vsyncpa [#allocation3], 1 }
0x102c   :  { %3052 = vsyncpa [#allocation3 + $0x1], 1 }

</bundles_post_ra>
